<compile_context>
chip_gen: v7x
topology: tpu7x:2x2x1
jax: 0.10.0
libtpu: 0.0.40
codegen_flags: <defaults>
</compile_context>

<pallas_src>
import functools
import math

import jax
import jax.numpy as jnp
import numpy as np
from jax.experimental import pallas as pl
from jax.experimental.pallas import tpu as pltpu


def _star_kernel(cycle_num, eps,
                 x_ref,
                 w_h_ref, b_h_ref,        # (d, 3d), (1, 3d)   old-h  [q|k|v]
                 w_s5_ref, b_s5_ref,      # (d, 5d), (1, 5d)   old-s  [k|v|qr|kr|vr]
                 w_e_ref, b_e_ref,        # (d, 2d), (1, 2d)   e      [k|v]
                 w_hr_ref, b_hr_ref,      # (d, 2d), (1, 2d)   new-h  [kr|vr]
                 w_o_ref, b_o_ref,        # (d, d),  (1, d)    satellite out proj
                 w_or_ref, b_or_ref,      # (d, d),  (1, d)    relay out proj
                 ln_s_ref, ln_r_ref,      # (2, d) each        layernorm gamma/beta
                 w_fc_ref, b_fc_ref,      # (d, Lpad), (1, Lpad)  lane-padded fc
                 rrt_ref,                 # (d, d) f32, block-diag, scale folded in
                 out_ref):                # (1, Bt, Lpad)
    e3 = x_ref[...].astype(jnp.float32)          # (Bt, l, d)
    Bt, l, d = e3.shape
    rows = Bt * l

    # Load weights once; md is the MXU dtype (bf16 on v6e/v7x).
    w_h, b_h = w_h_ref[...], b_h_ref[...]
    w_s5, b_s5 = w_s5_ref[...], b_s5_ref[...]
    w_e, b_e = w_e_ref[...], b_e_ref[...]
    w_hr, b_hr = w_hr_ref[...], b_hr_ref[...]
    w_o, b_o = w_o_ref[...], b_o_ref[...]
    w_or, b_or = w_or_ref[...], b_or_ref[...]
    ln_s, ln_r = ln_s_ref[...], ln_r_ref[...]
    w_fc, b_fc = w_fc_ref[...], b_fc_ref[...]
    rrt = rrt_ref[...]                            # f32
    md = w_h.dtype

    def proj(t_md, w, bias):
        # t_md already cast to the matmul dtype by the caller (cast hoisted);
        # accumulate + bias add in f32.
        return jnp.dot(t_md, w, preferred_element_type=jnp.float32) + bias

    def head_scores(qk):
        # Per-head dot product broadcast back to every lane of the head:
        # one lane-dense (M, d) @ (d, d) matmul (f32 for numerical fidelity;
        # tiny at these sizes).  1/sqrt(dh) is folded into rrt.
        return jnp.dot(qk, rrt, preferred_element_type=jnp.float32)

    def layer_norm(t, gb):
        u = jnp.mean(t, axis=-1, keepdims=True)
        var = jnp.mean((t - u) ** 2, axis=-1, keepdims=True)
        return gb[0:1] * ((t - u) * jax.lax.rsqrt(var + eps)) + gb[1:2]   # EUP rsqrt

    # All batch elements stacked row-wise; every linear is row-wise so the
    # stacking is exact.
    e = e3.reshape(rows, d)
    e_md = e.astype(md)

    # Cycle-invariant satellite K/V of e: hoisted out of the cycle loop.
    kv_e = proj(e_md, w_e, b_e)                   # (rows, 2d)
    k_e, v_e = kv_e[:, :d], kv_e[:, d:]

    h = e                                         # (rows, d) f32
    s = jnp.mean(e3, axis=1)                      # (Bt, d)  == avg_pool2d over seq

    # Static unroll is fine for small cycle_num; switch to lax.fori_loop if it
    # ever grows large (vreg live ranges scale with the unroll).
    for _ in range(cycle_num):
        # ---------------- satellite attention ----------------
        pk_h = proj(h.astype(md), w_h, b_h)               # (rows, 3d) = [q|k|v]
        q, k_h, v_h = pk_h[:, :d], pk_h[:, d:2 * d], pk_h[:, 2 * d:]
        pk_s = proj(s.astype(md), w_s5, b_s5)             # (Bt, 5d) = [k|v|qr|kr|vr]
        k_s, v_s = pk_s[:, :d], pk_s[:, d:2 * d]
        qr = pk_s[:, 2 * d:3 * d]
        kr_s, vr_s = pk_s[:, 3 * d:4 * d], pk_s[:, 4 * d:]

        k_h3 = k_h.reshape(Bt, l, d)
        v_h3 = v_h.reshape(Bt, l, d)
        # "h_last" = cycle_shift(forward=False) with torch view aliasing:
        #   rows 0..l-2 <- old rows 1..l-1, row l-1 <- old row 1
        k_last = jnp.concatenate([k_h3[:, 1:], k_h3[:, 1:2]], axis=1).reshape(rows, d)
        v_last = jnp.concatenate([v_h3[:, 1:], v_h3[:, 1:2]], axis=1).reshape(rows, d)
        # "h_next" = cycle_shift(forward=True) with torch view aliasing:
        #   every row <- old row 0
        k_next = jnp.broadcast_to(k_h3[:, :1], (Bt, l, d)).reshape(rows, d)
        v_next = jnp.broadcast_to(v_h3[:, :1], (Bt, l, d)).reshape(rows, d)
        # relay state broadcast to every position of its own sequence
        k_s_r = jnp.broadcast_to(k_s.reshape(Bt, 1, d), (Bt, l, d)).reshape(rows, d)
        v_s_r = jnp.broadcast_to(v_s.reshape(Bt, 1, d), (Bt, l, d)).reshape(rows, d)

        # 5 per-head score maps in one stacked (5*rows, d) @ (d, d) matmul;
        # the softmax stays lane-dense (scores are identical within a head's
        # dh lanes, so per-lane max/exp/sum/mul == per-head softmax).
        qk_all = jnp.concatenate(
            [q * k_last, q * k_h, q * k_next, q * k_e, q * k_s_r], axis=0)
        sc5 = head_scores(qk_all).reshape(5, rows, d)
        mx = jnp.max(sc5, axis=0)                                   # (rows, d)
        ex5 = jnp.exp(sc5 - mx)
        inv = pl.reciprocal(jnp.sum(ex5, axis=0), approx=True)      # EUP
        p5 = ex5 * inv                                              # probs per lane
        v_all = jnp.concatenate([v_last, v_h, v_next, v_e, v_s_r],
                                axis=0).reshape(5, rows, d)
        ctx = jnp.sum(p5 * v_all, axis=0)                           # (rows, d)

        att = proj(ctx.astype(md), w_o, b_o)
        h = layer_norm(jnp.maximum(att, 0.0), ln_s)                 # (rows, d)

        # ---------------- relay attention ----------------
        # keys/values are [s ; new h]; the single s row is kept separate from
        # the l h rows so nothing (l+1, d)-shaped is ever materialized.
        kv_hr = proj(h.astype(md), w_hr, b_hr)                      # (rows, 2d)
        kr_h, vr_h = kv_hr[:, :d], kv_hr[:, d:]

        qr_rows = jnp.broadcast_to(qr.reshape(Bt, 1, d), (Bt, l, d)).reshape(rows, d)
        sc_s = head_scores(qr * kr_s)                               # (Bt, d)
        sc_h = head_scores(qr_rows * kr_h).reshape(Bt, l, d)        # (Bt, l, d)
        mx_r = jnp.maximum(sc_s, jnp.max(sc_h, axis=1))             # (Bt, d)
        ex_s = jnp.exp(sc_s - mx_r)
        ex_h = jnp.exp(sc_h - mx_r.reshape(Bt, 1, d))
        inv_r = pl.reciprocal(ex_s + jnp.sum(ex_h, axis=1), approx=True)
        ctx_r = (ex_s * inv_r) * vr_s + jnp.sum(
            (ex_h * inv_r.reshape(Bt, 1, d)) * vr_h.reshape(Bt, l, d), axis=1)
        att_r = proj(ctx_r.astype(md), w_or, b_or)
        s = layer_norm(jnp.maximum(att_r, 0.0), ln_r)               # (Bt, d)

    # classifier head: mean-pool h over seq, add relay state, final linear
    # into a 128-lane-padded slab (lane-dense store; wrapper slices).
    h_mean = jnp.mean(h.reshape(Bt, l, d), axis=1)                  # (Bt, d)
    logits = proj((h_mean + s).astype(md), w_fc, b_fc)              # (Bt, Lpad)
    out_ref[0] = logits.astype(out_ref.dtype)


def star_transformer_classifier(x, params, *, cycle_num, num_heads, eps=1e-12,
                                batch_tile=None, matmul_dtype=jnp.bfloat16):
    b, l, d = x.shape
    w_s, b_s, w_r, b_r, ln_s, ln_r, w_fc, b_fc = params
    label_num = w_fc.shape[-1]
    nh = num_heads
    assert d % nh == 0
    dh = d // nh
    md = matmul_dtype

    if batch_tile is None:
        # Fewest, fattest grid steps: largest divisor of b that keeps the
        # stacked row count (batch_tile * l) <= 512 — rows is the only axis
        # that can fill the MXU's M dimension (d and nh are tiny), and grid
        # steps cost ~0.35 us each on single-TC v5e/v6e.  On v7x, prefer an
        # even num_tiles (2 TensorCores) only once each tile keeps >=128-256
        # rows; override batch_tile explicitly for that.
        batch_tile = 1
        for cand in range(1, b + 1):
            if b % cand == 0 and cand * l <= 512:
                batch_tile = cand
    assert b % batch_tile == 0
    num_tiles = b // batch_tile

    wq, wk, wv, wo = w_s[0], w_s[1], w_s[2], w_s[3]
    bq, bk, bv, bo = b_s[0], b_s[1], b_s[2], b_s[3]
    wqr, wkr, wvr, wor = w_r[0], w_r[1], w_r[2], w_r[3]
    bqr, bkr, bvr, bor = b_r[0], b_r[1], b_r[2], b_r[3]

    f32 = jnp.float32
    # Fused per-source weight matmuls (weights in the MXU dtype, biases f32).
    W_h = jnp.concatenate([wq, wk, wv], axis=1).astype(md)                 # (d, 3d)
    B_h = jnp.concatenate([bq, bk, bv]).reshape(1, 3 * d).astype(f32)
    W_s5 = jnp.concatenate([wk, wv, wqr, wkr, wvr], axis=1).astype(md)     # (d, 5d)
    B_s5 = jnp.concatenate([bk, bv, bqr, bkr, bvr]).reshape(1, 5 * d).astype(f32)
    W_e = jnp.concatenate([wk, wv], axis=1).astype(md)                     # (d, 2d)
    B_e = jnp.concatenate([bk, bv]).reshape(1, 2 * d).astype(f32)
    W_hr = jnp.concatenate([wkr, wvr], axis=1).astype(md)                  # (d, 2d)
    B_hr = jnp.concatenate([bkr, bvr]).reshape(1, 2 * d).astype(f32)
    W_o = wo.astype(md)
    B_o = bo.reshape(1, d).astype(f32)
    W_or = wor.astype(md)
    B_or = bor.reshape(1, d).astype(f32)

    # Lane-dense classifier output: pad labels to a multiple of 128 lanes.
    lab_pad = int(pl.cdiv(label_num, 128)) * 128
    W_fc = jnp.zeros((d, lab_pad), f32).at[:, :label_num].set(w_fc).astype(md)
    B_fc = jnp.zeros((1, lab_pad), f32).at[:, :label_num].set(
        b_fc.reshape(1, label_num))

    # Block-diagonal "sum within head, broadcast to the head's lanes" matrix,
    # with the 1/sqrt(dh) attention scale folded in (kept f32).
    R = (jnp.arange(d)[:, None] // dh == jnp.arange(nh)[None, :]).astype(f32)
    RRT = (R @ R.T) / math.sqrt(dh)

    kernel = functools.partial(_star_kernel, cycle_num, eps)
    full = lambda i: (0, 0)

    out = pl.pallas_call(
        kernel,
        out_shape=jax.ShapeDtypeStruct((num_tiles, batch_tile, lab_pad), f32),
        grid=(num_tiles,),
        in_specs=[
            pl.BlockSpec((batch_tile, l, d), lambda i: (i, 0, 0)),     # x (batch tile)
            pl.BlockSpec((d, 3 * d), full), pl.BlockSpec((1, 3 * d), full),
            pl.BlockSpec((d, 5 * d), full), pl.BlockSpec((1, 5 * d), full),
            pl.BlockSpec((d, 2 * d), full), pl.BlockSpec((1, 2 * d), full),
            pl.BlockSpec((d, 2 * d), full), pl.BlockSpec((1, 2 * d), full),
            pl.BlockSpec((d, d), full), pl.BlockSpec((1, d), full),
            pl.BlockSpec((d, d), full), pl.BlockSpec((1, d), full),
            pl.BlockSpec((2, d), full), pl.BlockSpec((2, d), full),
            pl.BlockSpec((d, lab_pad), full), pl.BlockSpec((1, lab_pad), full),
            pl.BlockSpec((d, d), full),
        ],
        # per-step private output block -> safe under a "parallel" batch axis
        # (useful on v7x; measured no-op on single-TC v5e/v6e).
        out_specs=pl.BlockSpec((1, batch_tile, lab_pad), lambda i: (i, 0, 0)),
        compiler_params=pltpu.CompilerParams(
            dimension_semantics=("parallel",)),
        # NOTE: VMEM footprint is tiny at these sizes; set vmem_limit_bytes
        # here if d / batch_tile are scaled up (especially on 64 MiB v7x).
    )(x, W_h, B_h, W_s5, B_s5, W_e, B_e, W_hr, B_hr,
      W_o, B_o, W_or, B_or, ln_s, ln_r, W_fc, B_fc, RRT)
    return out.reshape(b, lab_pad)[:, :label_num]


# ---------------- pure-JAX reference (mirrors the torch forward) --------------
def ref_forward(x, params, cycle_num, num_heads, eps=1e-12):
    w_s, b_s, w_r, b_r, ln_s, ln_r, w_fc, b_fc = params
    b, l, d = x.shape
    nh = num_heads
    dh = d // nh

    def linear(t, w, bias):
        return t @ w + bias

    def layer_norm(t, gamma, beta):
        u = t.mean(-1, keepdims=True)
        var = ((t - u) ** 2).mean(-1, keepdims=True)
        return gamma * ((t - u) / jnp.sqrt(var + eps)) + beta

    def mha(q, k, v, w, bias):
        B, Lq, _ = q.shape
        Lk = k.shape[1]
        Q = linear(q, w[0], bias[0]).reshape(B, Lq, nh, dh).transpose(0, 2, 1, 3)
        K = linear(k, w[1], bias[1]).reshape(B, Lk, nh, dh).transpose(0, 2, 1, 3)
        V = linear(v, w[2], bias[2]).reshape(B, Lk, nh, dh).transpose(0, 2, 1, 3)
        sc = jnp.einsum("bhqe,bhke->bhqk", Q, K) / math.sqrt(dh)
        p = jax.nn.softmax(sc, axis=-1)
        ctx = jnp.einsum("bhqk,bhke->bhqe", p, V).transpose(0, 2, 1, 3).reshape(B, Lq, d)
        return linear(ctx, w[3], bias[3])

    # cycle_shift replicating the torch in-place + view-aliasing semantics
    def shift_backward(h):   # cycle_shift(h.clone(), forward=False)
        return jnp.concatenate([h[:, 1:], h[:, 1:2]], axis=1)

    def shift_forward(h):    # cycle_shift(h.clone(), forward=True)
        return jnp.broadcast_to(h[:, 0:1], h.shape)

    e = x
    h = x
    s = h.mean(axis=1)
    for _ in range(cycle_num):
        h_last = shift_backward(h)
        h_next = shift_forward(h)
        s_m = jnp.broadcast_to(s[:, None, :], (b, l, d))
        c = jnp.stack([h_last, h, h_next, e, s_m], axis=2).reshape(b * l, 5, d)
        hq = h.reshape(b * l, 1, d)
        h = layer_norm(jax.nn.relu(mha(hq, c, c, w_s, b_s)),
                       ln_s[0], ln_s[1]).reshape(b, l, d)
        s1 = s[:, None, :]
        m_c = jnp.concatenate([s1, h], axis=1)
        s = layer_norm(jax.nn.relu(mha(s1, m_c, m_c, w_r, b_r)),
                       ln_r[0], ln_r[1])[:, 0]
    h_mean = h.mean(axis=1)
    return (h_mean + s) @ w_fc + b_fc


if __name__ == "__main__":
    b, l, d = 4, 8, 32
    num_heads, cycle_num, label_num = 4, 2, 2

    key = jax.random.PRNGKey(0)
    keys = jax.random.split(key, 8)
    x = jax.random.normal(keys[0], (b, l, d), jnp.float32)
    # attention weights packed as [q, k, v, out] in (in, out) layout
    w_s = 0.1 * jax.random.normal(keys[1], (4, d, d), jnp.float32)
    b_s = 0.1 * jax.random.normal(keys[2], (4, d), jnp.float32)
    w_r = 0.1 * jax.random.normal(keys[3], (4, d, d), jnp.float32)
    b_r = 0.1 * jax.random.normal(keys[4], (4, d), jnp.float32)
    ln_s = jnp.stack([jnp.ones((d,)), jnp.zeros((d,))]).astype(jnp.float32)
    ln_r = jnp.stack([jnp.ones((d,)), jnp.zeros((d,))]).astype(jnp.float32)
    w_fc = 0.1 * jax.random.normal(keys[5], (d, label_num), jnp.float32)
    b_fc = 0.1 * jax.random.normal(keys[6], (1, label_num), jnp.float32)

    params = (w_s, b_s, w_r, b_r, ln_s, ln_r, w_fc, b_fc)

    out = star_transformer_classifier(x, params, cycle_num=cycle_num,
                                      num_heads=num_heads)
    out = jax.block_until_ready(out)

    ref = ref_forward(x, params, cycle_num, num_heads)
    np.testing.assert_allclose(np.asarray(out), np.asarray(ref),
                               rtol=5e-2, atol=5e-2)
    print("KERNEL_OK")
</pallas_src>

<mosaic_0001>
module attributes {stable_mosaic.version = 11 : i64} {
  func.func @_star_kernel(%arg0: i32, %arg1: memref<4x8x32xf32, #tpu.memory_space<vmem>>, %arg2: memref<32x96xbf16, #tpu.memory_space<vmem>>, %arg3: memref<1x96xf32, #tpu.memory_space<vmem>>, %arg4: memref<32x160xbf16, #tpu.memory_space<vmem>>, %arg5: memref<1x160xf32, #tpu.memory_space<vmem>>, %arg6: memref<32x64xbf16, #tpu.memory_space<vmem>>, %arg7: memref<1x64xf32, #tpu.memory_space<vmem>>, %arg8: memref<32x64xbf16, #tpu.memory_space<vmem>>, %arg9: memref<1x64xf32, #tpu.memory_space<vmem>>, %arg10: memref<32x32xbf16, #tpu.memory_space<vmem>>, %arg11: memref<1x32xf32, #tpu.memory_space<vmem>>, %arg12: memref<32x32xbf16, #tpu.memory_space<vmem>>, %arg13: memref<1x32xf32, #tpu.memory_space<vmem>>, %arg14: memref<2x32xf32, #tpu.memory_space<vmem>>, %arg15: memref<2x32xf32, #tpu.memory_space<vmem>>, %arg16: memref<32x128xbf16, #tpu.memory_space<vmem>>, %arg17: memref<1x128xf32, #tpu.memory_space<vmem>>, %arg18: memref<32x32xf32, #tpu.memory_space<vmem>>, %arg19: memref<1x4x128xf32, #tpu.memory_space<vmem>>) attributes {dimension_semantics = [#tpu.dimension_semantics<parallel>], iteration_bounds = array<i64: 1>, scalar_prefetch = 0 : i64, scratch_operands = 0 : i64, tpu.core_type = #tpu.core_type<tc>, window_params = [{transform_indices = @transform_0, window_bounds = array<i64: 4, 8, 32>}, {pipeline_mode = #tpu.pipeline_mode<synchronous>, transform_indices = @transform_1, window_bounds = array<i64: 32, 96>}, {pipeline_mode = #tpu.pipeline_mode<synchronous>, transform_indices = @transform_2, window_bounds = array<i64: 1, 96>}, {pipeline_mode = #tpu.pipeline_mode<synchronous>, transform_indices = @transform_3, window_bounds = array<i64: 32, 160>}, {pipeline_mode = #tpu.pipeline_mode<synchronous>, transform_indices = @transform_4, window_bounds = array<i64: 1, 160>}, {pipeline_mode = #tpu.pipeline_mode<synchronous>, transform_indices = @transform_5, window_bounds = array<i64: 32, 64>}, {pipeline_mode = #tpu.pipeline_mode<synchronous>, transform_indices = @transform_6, window_bounds = array<i64: 1, 64>}, {pipeline_mode = #tpu.pipeline_mode<synchronous>, transform_indices = @transform_7, window_bounds = array<i64: 32, 64>}, {pipeline_mode = #tpu.pipeline_mode<synchronous>, transform_indices = @transform_8, window_bounds = array<i64: 1, 64>}, {pipeline_mode = #tpu.pipeline_mode<synchronous>, transform_indices = @transform_9, window_bounds = array<i64: 32, 32>}, {pipeline_mode = #tpu.pipeline_mode<synchronous>, transform_indices = @transform_10, window_bounds = array<i64: 1, 32>}, {pipeline_mode = #tpu.pipeline_mode<synchronous>, transform_indices = @transform_11, window_bounds = array<i64: 32, 32>}, {pipeline_mode = #tpu.pipeline_mode<synchronous>, transform_indices = @transform_12, window_bounds = array<i64: 1, 32>}, {pipeline_mode = #tpu.pipeline_mode<synchronous>, transform_indices = @transform_13, window_bounds = array<i64: 2, 32>}, {pipeline_mode = #tpu.pipeline_mode<synchronous>, transform_indices = @transform_14, window_bounds = array<i64: 2, 32>}, {pipeline_mode = #tpu.pipeline_mode<synchronous>, transform_indices = @transform_15, window_bounds = array<i64: 32, 128>}, {pipeline_mode = #tpu.pipeline_mode<synchronous>, transform_indices = @transform_16, window_bounds = array<i64: 1, 128>}, {pipeline_mode = #tpu.pipeline_mode<synchronous>, transform_indices = @transform_17, window_bounds = array<i64: 32, 32>}, {transform_indices = @transform_18, window_bounds = array<i64: 1, 4, 128>}]} {
    %c0 = arith.constant 0 : index
    %c0_0 = arith.constant 0 : index
    %c0_1 = arith.constant 0 : index
    %0 = vector.load %arg1[%c0, %c0_0, %c0_1] : memref<4x8x32xf32, #tpu.memory_space<vmem>>, vector<4x8x32xf32>
    %c0_2 = arith.constant 0 : index
    %c0_3 = arith.constant 0 : index
    %1 = vector.load %arg2[%c0_2, %c0_3] : memref<32x96xbf16, #tpu.memory_space<vmem>>, vector<32x96xbf16>
    %c0_4 = arith.constant 0 : index
    %c0_5 = arith.constant 0 : index
    %2 = vector.load %arg3[%c0_4, %c0_5] : memref<1x96xf32, #tpu.memory_space<vmem>>, vector<1x96xf32>
    %c0_6 = arith.constant 0 : index
    %c0_7 = arith.constant 0 : index
    %3 = vector.load %arg4[%c0_6, %c0_7] : memref<32x160xbf16, #tpu.memory_space<vmem>>, vector<32x160xbf16>
    %c0_8 = arith.constant 0 : index
    %c0_9 = arith.constant 0 : index
    %4 = vector.load %arg5[%c0_8, %c0_9] : memref<1x160xf32, #tpu.memory_space<vmem>>, vector<1x160xf32>
    %c0_10 = arith.constant 0 : index
    %c0_11 = arith.constant 0 : index
    %5 = vector.load %arg6[%c0_10, %c0_11] : memref<32x64xbf16, #tpu.memory_space<vmem>>, vector<32x64xbf16>
    %c0_12 = arith.constant 0 : index
    %c0_13 = arith.constant 0 : index
    %6 = vector.load %arg7[%c0_12, %c0_13] : memref<1x64xf32, #tpu.memory_space<vmem>>, vector<1x64xf32>
    %c0_14 = arith.constant 0 : index
    %c0_15 = arith.constant 0 : index
    %7 = vector.load %arg8[%c0_14, %c0_15] : memref<32x64xbf16, #tpu.memory_space<vmem>>, vector<32x64xbf16>
    %c0_16 = arith.constant 0 : index
    %c0_17 = arith.constant 0 : index
    %8 = vector.load %arg9[%c0_16, %c0_17] : memref<1x64xf32, #tpu.memory_space<vmem>>, vector<1x64xf32>
    %c0_18 = arith.constant 0 : index
    %c0_19 = arith.constant 0 : index
    %9 = vector.load %arg10[%c0_18, %c0_19] : memref<32x32xbf16, #tpu.memory_space<vmem>>, vector<32x32xbf16>
    %c0_20 = arith.constant 0 : index
    %c0_21 = arith.constant 0 : index
    %10 = vector.load %arg11[%c0_20, %c0_21] : memref<1x32xf32, #tpu.memory_space<vmem>>, vector<1x32xf32>
    %c0_22 = arith.constant 0 : index
    %c0_23 = arith.constant 0 : index
    %11 = vector.load %arg12[%c0_22, %c0_23] : memref<32x32xbf16, #tpu.memory_space<vmem>>, vector<32x32xbf16>
    %c0_24 = arith.constant 0 : index
    %c0_25 = arith.constant 0 : index
    %12 = vector.load %arg13[%c0_24, %c0_25] : memref<1x32xf32, #tpu.memory_space<vmem>>, vector<1x32xf32>
    %c0_26 = arith.constant 0 : index
    %c0_27 = arith.constant 0 : index
    %13 = vector.load %arg14[%c0_26, %c0_27] : memref<2x32xf32, #tpu.memory_space<vmem>>, vector<2x32xf32>
    %c0_28 = arith.constant 0 : index
    %c0_29 = arith.constant 0 : index
    %14 = vector.load %arg15[%c0_28, %c0_29] : memref<2x32xf32, #tpu.memory_space<vmem>>, vector<2x32xf32>
    %c0_30 = arith.constant 0 : index
    %c0_31 = arith.constant 0 : index
    %15 = vector.load %arg16[%c0_30, %c0_31] : memref<32x128xbf16, #tpu.memory_space<vmem>>, vector<32x128xbf16>
    %c0_32 = arith.constant 0 : index
    %c0_33 = arith.constant 0 : index
    %16 = vector.load %arg17[%c0_32, %c0_33] : memref<1x128xf32, #tpu.memory_space<vmem>>, vector<1x128xf32>
    %c0_34 = arith.constant 0 : index
    %c0_35 = arith.constant 0 : index
    %17 = vector.load %arg18[%c0_34, %c0_35] : memref<32x32xf32, #tpu.memory_space<vmem>>, vector<32x32xf32>
    %18 = vector.shape_cast %0 : vector<4x8x32xf32> to vector<32x32xf32>
    %19 = arith.truncf %18 : vector<32x32xf32> to vector<32x32xbf16>
    %cst = arith.constant dense<0.000000e+00> : vector<32x64xf32>
    %20 = tpu.matmul %19, %5, %cst {dimension_numbers = #tpu.dot_dimension_numbers<[1], [0], [0], [1], [0, 0, 1, 1], [], []>} : vector<32x32xbf16>, vector<32x64xbf16>, vector<32x64xf32> -> vector<32x64xf32>
    %21 = vector.broadcast %6 : vector<1x64xf32> to vector<32x64xf32>
    %22 = arith.addf %20, %21 : vector<32x64xf32>
    %23 = vector.extract_strided_slice %22 {offsets = [0, 0], sizes = [32, 32], strides = [1, 1]} : vector<32x64xf32> to vector<32x32xf32>
    %24 = vector.extract_strided_slice %22 {offsets = [0, 32], sizes = [32, 32], strides = [1, 1]} : vector<32x64xf32> to vector<32x32xf32>
    %cst_36 = arith.constant dense<0.000000e+00> : vector<4x32xf32>
    %25 = vector.multi_reduction <add>, %0, %cst_36 [1] : vector<4x8x32xf32> to vector<4x32xf32>
    %cst_37 = arith.constant 8.000000e+00 : f32
    %26 = vector.broadcast %cst_37 : f32 to vector<4x32xf32>
    %27 = arith.divf %25, %26 : vector<4x32xf32>
    %28 = arith.truncf %18 : vector<32x32xf32> to vector<32x32xbf16>
    %cst_38 = arith.constant dense<0.000000e+00> : vector<32x96xf32>
    %29 = tpu.matmul %28, %1, %cst_38 {dimension_numbers = #tpu.dot_dimension_numbers<[1], [0], [0], [1], [0, 0, 1, 1], [], []>} : vector<32x32xbf16>, vector<32x96xbf16>, vector<32x96xf32> -> vector<32x96xf32>
    %30 = vector.broadcast %2 : vector<1x96xf32> to vector<32x96xf32>
    %31 = arith.addf %29, %30 : vector<32x96xf32>
    %32 = vector.extract_strided_slice %31 {offsets = [0, 0], sizes = [32, 32], strides = [1, 1]} : vector<32x96xf32> to vector<32x32xf32>
    %33 = vector.extract_strided_slice %31 {offsets = [0, 32], sizes = [32, 32], strides = [1, 1]} : vector<32x96xf32> to vector<32x32xf32>
    %34 = vector.extract_strided_slice %31 {offsets = [0, 64], sizes = [32, 32], strides = [1, 1]} : vector<32x96xf32> to vector<32x32xf32>
    %35 = arith.truncf %27 : vector<4x32xf32> to vector<4x32xbf16>
    %cst_39 = arith.constant dense<0.000000e+00> : vector<4x160xf32>
    %36 = tpu.matmul %35, %3, %cst_39 {dimension_numbers = #tpu.dot_dimension_numbers<[1], [0], [0], [1], [0, 0, 1, 1], [], []>} : vector<4x32xbf16>, vector<32x160xbf16>, vector<4x160xf32> -> vector<4x160xf32>
    %37 = vector.broadcast %4 : vector<1x160xf32> to vector<4x160xf32>
    %38 = arith.addf %36, %37 : vector<4x160xf32>
    %39 = vector.extract_strided_slice %38 {offsets = [0, 0], sizes = [4, 32], strides = [1, 1]} : vector<4x160xf32> to vector<4x32xf32>
    %40 = vector.extract_strided_slice %38 {offsets = [0, 32], sizes = [4, 32], strides = [1, 1]} : vector<4x160xf32> to vector<4x32xf32>
    %41 = vector.extract_strided_slice %38 {offsets = [0, 64], sizes = [4, 32], strides = [1, 1]} : vector<4x160xf32> to vector<4x32xf32>
    %42 = vector.extract_strided_slice %38 {offsets = [0, 96], sizes = [4, 32], strides = [1, 1]} : vector<4x160xf32> to vector<4x32xf32>
    %43 = vector.extract_strided_slice %38 {offsets = [0, 128], sizes = [4, 32], strides = [1, 1]} : vector<4x160xf32> to vector<4x32xf32>
    %44 = vector.shape_cast %33 : vector<32x32xf32> to vector<4x8x32xf32>
    %45 = vector.shape_cast %34 : vector<32x32xf32> to vector<4x8x32xf32>
    %46 = vector.extract_strided_slice %44 {offsets = [0, 1, 0], sizes = [4, 7, 32], strides = [1, 1, 1]} : vector<4x8x32xf32> to vector<4x7x32xf32>
    %47 = vector.extract_strided_slice %44 {offsets = [0, 1, 0], sizes = [4, 1, 32], strides = [1, 1, 1]} : vector<4x8x32xf32> to vector<4x1x32xf32>
    %48 = tpu.concatenate %46, %47 in 1 : vector<4x7x32xf32>, vector<4x1x32xf32> -> vector<4x8x32xf32>
    %49 = vector.shape_cast %48 : vector<4x8x32xf32> to vector<32x32xf32>
    %50 = vector.extract_strided_slice %45 {offsets = [0, 1, 0], sizes = [4, 7, 32], strides = [1, 1, 1]} : vector<4x8x32xf32> to vector<4x7x32xf32>
    %51 = vector.extract_strided_slice %45 {offsets = [0, 1, 0], sizes = [4, 1, 32], strides = [1, 1, 1]} : vector<4x8x32xf32> to vector<4x1x32xf32>
    %52 = tpu.concatenate %50, %51 in 1 : vector<4x7x32xf32>, vector<4x1x32xf32> -> vector<4x8x32xf32>
    %53 = vector.shape_cast %52 : vector<4x8x32xf32> to vector<32x32xf32>
    %54 = vector.extract_strided_slice %44 {offsets = [0, 0, 0], sizes = [4, 1, 32], strides = [1, 1, 1]} : vector<4x8x32xf32> to vector<4x1x32xf32>
    %55 = vector.shape_cast %54 : vector<4x1x32xf32> to vector<4x1x32xf32>
    %56 = vector.broadcast %55 : vector<4x1x32xf32> to vector<4x8x32xf32>
    %57 = vector.shape_cast %56 : vector<4x8x32xf32> to vector<32x32xf32>
    %58 = vector.extract_strided_slice %45 {offsets = [0, 0, 0], sizes = [4, 1, 32], strides = [1, 1, 1]} : vector<4x8x32xf32> to vector<4x1x32xf32>
    %59 = vector.shape_cast %58 : vector<4x1x32xf32> to vector<4x1x32xf32>
    %60 = vector.broadcast %59 : vector<4x1x32xf32> to vector<4x8x32xf32>
    %61 = vector.shape_cast %60 : vector<4x8x32xf32> to vector<32x32xf32>
    %62 = vector.shape_cast %39 : vector<4x32xf32> to vector<4x1x32xf32>
    %63 = vector.shape_cast %62 : vector<4x1x32xf32> to vector<4x1x32xf32>
    %64 = vector.broadcast %63 : vector<4x1x32xf32> to vector<4x8x32xf32>
    %65 = vector.shape_cast %64 : vector<4x8x32xf32> to vector<32x32xf32>
    %66 = vector.shape_cast %40 : vector<4x32xf32> to vector<4x1x32xf32>
    %67 = vector.shape_cast %66 : vector<4x1x32xf32> to vector<4x1x32xf32>
    %68 = vector.broadcast %67 : vector<4x1x32xf32> to vector<4x8x32xf32>
    %69 = vector.shape_cast %68 : vector<4x8x32xf32> to vector<32x32xf32>
    %70 = arith.mulf %32, %49 : vector<32x32xf32>
    %71 = arith.mulf %32, %33 : vector<32x32xf32>
    %72 = arith.mulf %32, %57 : vector<32x32xf32>
    %73 = arith.mulf %32, %23 : vector<32x32xf32>
    %74 = arith.mulf %32, %65 : vector<32x32xf32>
    %75 = tpu.concatenate %70, %71, %72, %73, %74 in 0 : vector<32x32xf32>, vector<32x32xf32>, vector<32x32xf32>, vector<32x32xf32>, vector<32x32xf32> -> vector<160x32xf32>
    %cst_40 = arith.constant dense<0.000000e+00> : vector<160x32xf32>
    %76 = tpu.matmul %75, %17, %cst_40 {dimension_numbers = #tpu.dot_dimension_numbers<[1], [0], [0], [1], [0, 0, 1, 1], [], []>} : vector<160x32xf32>, vector<32x32xf32>, vector<160x32xf32> -> vector<160x32xf32>
    %77 = vector.shape_cast %76 : vector<160x32xf32> to vector<5x32x32xf32>
    %cst_41 = arith.constant dense<0xFF800000> : vector<32x32xf32>
    %78 = vector.multi_reduction <maximumf>, %77, %cst_41 [0] : vector<5x32x32xf32> to vector<32x32xf32>
    %79 = vector.shape_cast %78 : vector<32x32xf32> to vector<1x32x32xf32>
    %80 = vector.broadcast %79 : vector<1x32x32xf32> to vector<5x32x32xf32>
    %81 = arith.subf %77, %80 : vector<5x32x32xf32>
    %82 = math.exp %81 : vector<5x32x32xf32>
    %cst_42 = arith.constant dense<0.000000e+00> : vector<32x32xf32>
    %83 = vector.multi_reduction <add>, %82, %cst_42 [0] : vector<5x32x32xf32> to vector<32x32xf32>
    %84 = tpu.reciprocal %83 {approx = true} : vector<32x32xf32> -> vector<32x32xf32>
    %85 = vector.shape_cast %84 : vector<32x32xf32> to vector<1x32x32xf32>
    %86 = vector.broadcast %85 : vector<1x32x32xf32> to vector<5x32x32xf32>
    %87 = arith.mulf %82, %86 : vector<5x32x32xf32>
    %88 = tpu.concatenate %53, %34, %61, %24, %69 in 0 : vector<32x32xf32>, vector<32x32xf32>, vector<32x32xf32>, vector<32x32xf32>, vector<32x32xf32> -> vector<160x32xf32>
    %89 = vector.shape_cast %88 : vector<160x32xf32> to vector<5x32x32xf32>
    %90 = arith.mulf %87, %89 : vector<5x32x32xf32>
    %cst_43 = arith.constant dense<0.000000e+00> : vector<32x32xf32>
    %91 = vector.multi_reduction <add>, %90, %cst_43 [0] : vector<5x32x32xf32> to vector<32x32xf32>
    %92 = arith.truncf %91 : vector<32x32xf32> to vector<32x32xbf16>
    %cst_44 = arith.constant dense<0.000000e+00> : vector<32x32xf32>
    %93 = tpu.matmul %92, %9, %cst_44 {dimension_numbers = #tpu.dot_dimension_numbers<[1], [0], [0], [1], [0, 0, 1, 1], [], []>} : vector<32x32xbf16>, vector<32x32xbf16>, vector<32x32xf32> -> vector<32x32xf32>
    %94 = vector.broadcast %10 : vector<1x32xf32> to vector<32x32xf32>
    %95 = arith.addf %93, %94 : vector<32x32xf32>
    %cst_45 = arith.constant 0.000000e+00 : f32
    %96 = vector.broadcast %cst_45 : f32 to vector<32x32xf32>
    %97 = arith.maximumf %95, %96 : vector<32x32xf32>
    %cst_46 = arith.constant dense<0.000000e+00> : vector<32xf32>
    %98 = vector.multi_reduction <add>, %97, %cst_46 [1] : vector<32x32xf32> to vector<32xf32>
    %99 = vector.shape_cast %98 : vector<32xf32> to vector<32x1xf32>
    %cst_47 = arith.constant 3.200000e+01 : f32
    %100 = vector.broadcast %cst_47 : f32 to vector<32x1xf32>
    %101 = arith.divf %99, %100 : vector<32x1xf32>
    %102 = vector.broadcast %101 : vector<32x1xf32> to vector<32x32xf32>
    %103 = arith.subf %97, %102 : vector<32x32xf32>
    %104 = arith.mulf %103, %103 : vector<32x32xf32>
    %cst_48 = arith.constant dense<0.000000e+00> : vector<32xf32>
    %105 = vector.multi_reduction <add>, %104, %cst_48 [1] : vector<32x32xf32> to vector<32xf32>
    %106 = vector.shape_cast %105 : vector<32xf32> to vector<32x1xf32>
    %cst_49 = arith.constant 3.200000e+01 : f32
    %107 = vector.broadcast %cst_49 : f32 to vector<32x1xf32>
    %108 = arith.divf %106, %107 : vector<32x1xf32>
    %109 = vector.extract_strided_slice %13 {offsets = [0, 0], sizes = [1, 32], strides = [1, 1]} : vector<2x32xf32> to vector<1x32xf32>
    %110 = vector.broadcast %101 : vector<32x1xf32> to vector<32x32xf32>
    %111 = arith.subf %97, %110 : vector<32x32xf32>
    %cst_50 = arith.constant 9.99999996E-13 : f32
    %112 = vector.broadcast %cst_50 : f32 to vector<32x1xf32>
    %113 = arith.addf %108, %112 : vector<32x1xf32>
    %114 = math.rsqrt %113 : vector<32x1xf32>
    %115 = vector.broadcast %114 : vector<32x1xf32> to vector<32x32xf32>
    %116 = arith.mulf %111, %115 : vector<32x32xf32>
    %117 = vector.broadcast %109 : vector<1x32xf32> to vector<32x32xf32>
    %118 = arith.mulf %117, %116 : vector<32x32xf32>
    %119 = vector.extract_strided_slice %13 {offsets = [1, 0], sizes = [1, 32], strides = [1, 1]} : vector<2x32xf32> to vector<1x32xf32>
    %120 = vector.broadcast %119 : vector<1x32xf32> to vector<32x32xf32>
    %121 = arith.addf %118, %120 : vector<32x32xf32>
    %122 = arith.truncf %121 : vector<32x32xf32> to vector<32x32xbf16>
    %cst_51 = arith.constant dense<0.000000e+00> : vector<32x64xf32>
    %123 = tpu.matmul %122, %7, %cst_51 {dimension_numbers = #tpu.dot_dimension_numbers<[1], [0], [0], [1], [0, 0, 1, 1], [], []>} : vector<32x32xbf16>, vector<32x64xbf16>, vector<32x64xf32> -> vector<32x64xf32>
    %124 = vector.broadcast %8 : vector<1x64xf32> to vector<32x64xf32>
    %125 = arith.addf %123, %124 : vector<32x64xf32>
    %126 = vector.extract_strided_slice %125 {offsets = [0, 0], sizes = [32, 32], strides = [1, 1]} : vector<32x64xf32> to vector<32x32xf32>
    %127 = vector.extract_strided_slice %125 {offsets = [0, 32], sizes = [32, 32], strides = [1, 1]} : vector<32x64xf32> to vector<32x32xf32>
    %128 = vector.shape_cast %41 : vector<4x32xf32> to vector<4x1x32xf32>
    %129 = vector.shape_cast %128 : vector<4x1x32xf32> to vector<4x1x32xf32>
    %130 = vector.broadcast %129 : vector<4x1x32xf32> to vector<4x8x32xf32>
    %131 = vector.shape_cast %130 : vector<4x8x32xf32> to vector<32x32xf32>
    %132 = arith.mulf %41, %42 : vector<4x32xf32>
    %cst_52 = arith.constant dense<0.000000e+00> : vector<4x32xf32>
    %133 = tpu.matmul %132, %17, %cst_52 {dimension_numbers = #tpu.dot_dimension_numbers<[1], [0], [0], [1], [0, 0, 1, 1], [], []>} : vector<4x32xf32>, vector<32x32xf32>, vector<4x32xf32> -> vector<4x32xf32>
    %134 = arith.mulf %131, %126 : vector<32x32xf32>
    %cst_53 = arith.constant dense<0.000000e+00> : vector<32x32xf32>
    %135 = tpu.matmul %134, %17, %cst_53 {dimension_numbers = #tpu.dot_dimension_numbers<[1], [0], [0], [1], [0, 0, 1, 1], [], []>} : vector<32x32xf32>, vector<32x32xf32>, vector<32x32xf32> -> vector<32x32xf32>
    %136 = vector.shape_cast %135 : vector<32x32xf32> to vector<4x8x32xf32>
    %cst_54 = arith.constant dense<0xFF800000> : vector<4x32xf32>
    %137 = vector.multi_reduction <maximumf>, %136, %cst_54 [1] : vector<4x8x32xf32> to vector<4x32xf32>
    %138 = arith.maximumf %133, %137 : vector<4x32xf32>
    %139 = arith.subf %133, %138 : vector<4x32xf32>
    %140 = math.exp %139 : vector<4x32xf32>
    %141 = vector.shape_cast %138 : vector<4x32xf32> to vector<4x1x32xf32>
    %142 = vector.broadcast %141 : vector<4x1x32xf32> to vector<4x8x32xf32>
    %143 = arith.subf %136, %142 : vector<4x8x32xf32>
    %144 = math.exp %143 : vector<4x8x32xf32>
    %cst_55 = arith.constant dense<0.000000e+00> : vector<4x32xf32>
    %145 = vector.multi_reduction <add>, %144, %cst_55 [1] : vector<4x8x32xf32> to vector<4x32xf32>
    %146 = arith.addf %140, %145 : vector<4x32xf32>
    %147 = tpu.reciprocal %146 {approx = true} : vector<4x32xf32> -> vector<4x32xf32>
    %148 = arith.mulf %140, %147 : vector<4x32xf32>
    %149 = arith.mulf %148, %43 : vector<4x32xf32>
    %150 = vector.shape_cast %147 : vector<4x32xf32> to vector<4x1x32xf32>
    %151 = vector.broadcast %150 : vector<4x1x32xf32> to vector<4x8x32xf32>
    %152 = arith.mulf %144, %151 : vector<4x8x32xf32>
    %153 = vector.shape_cast %127 : vector<32x32xf32> to vector<4x8x32xf32>
    %154 = arith.mulf %152, %153 : vector<4x8x32xf32>
    %cst_56 = arith.constant dense<0.000000e+00> : vector<4x32xf32>
    %155 = vector.multi_reduction <add>, %154, %cst_56 [1] : vector<4x8x32xf32> to vector<4x32xf32>
    %156 = arith.addf %149, %155 : vector<4x32xf32>
    %157 = arith.truncf %156 : vector<4x32xf32> to vector<4x32xbf16>
    %cst_57 = arith.constant dense<0.000000e+00> : vector<4x32xf32>
    %158 = tpu.matmul %157, %11, %cst_57 {dimension_numbers = #tpu.dot_dimension_numbers<[1], [0], [0], [1], [0, 0, 1, 1], [], []>} : vector<4x32xbf16>, vector<32x32xbf16>, vector<4x32xf32> -> vector<4x32xf32>
    %159 = vector.broadcast %12 : vector<1x32xf32> to vector<4x32xf32>
    %160 = arith.addf %158, %159 : vector<4x32xf32>
    %cst_58 = arith.constant 0.000000e+00 : f32
    %161 = vector.broadcast %cst_58 : f32 to vector<4x32xf32>
    %162 = arith.maximumf %160, %161 : vector<4x32xf32>
    %cst_59 = arith.constant dense<0.000000e+00> : vector<4xf32>
    %163 = vector.multi_reduction <add>, %162, %cst_59 [1] : vector<4x32xf32> to vector<4xf32>
    %164 = vector.shape_cast %163 : vector<4xf32> to vector<4x1xf32>
    %cst_60 = arith.constant 3.200000e+01 : f32
    %165 = vector.broadcast %cst_60 : f32 to vector<4x1xf32>
    %166 = arith.divf %164, %165 : vector<4x1xf32>
    %167 = vector.broadcast %166 : vector<4x1xf32> to vector<4x32xf32>
    %168 = arith.subf %162, %167 : vector<4x32xf32>
    %169 = arith.mulf %168, %168 : vector<4x32xf32>
    %cst_61 = arith.constant dense<0.000000e+00> : vector<4xf32>
    %170 = vector.multi_reduction <add>, %169, %cst_61 [1] : vector<4x32xf32> to vector<4xf32>
    %171 = vector.shape_cast %170 : vector<4xf32> to vector<4x1xf32>
    %cst_62 = arith.constant 3.200000e+01 : f32
    %172 = vector.broadcast %cst_62 : f32 to vector<4x1xf32>
    %173 = arith.divf %171, %172 : vector<4x1xf32>
    %174 = vector.extract_strided_slice %14 {offsets = [0, 0], sizes = [1, 32], strides = [1, 1]} : vector<2x32xf32> to vector<1x32xf32>
    %175 = vector.broadcast %166 : vector<4x1xf32> to vector<4x32xf32>
    %176 = arith.subf %162, %175 : vector<4x32xf32>
    %cst_63 = arith.constant 9.99999996E-13 : f32
    %177 = vector.broadcast %cst_63 : f32 to vector<4x1xf32>
    %178 = arith.addf %173, %177 : vector<4x1xf32>
    %179 = math.rsqrt %178 : vector<4x1xf32>
    %180 = vector.broadcast %179 : vector<4x1xf32> to vector<4x32xf32>
    %181 = arith.mulf %176, %180 : vector<4x32xf32>
    %182 = vector.broadcast %174 : vector<1x32xf32> to vector<4x32xf32>
    %183 = arith.mulf %182, %181 : vector<4x32xf32>
    %184 = vector.extract_strided_slice %14 {offsets = [1, 0], sizes = [1, 32], strides = [1, 1]} : vector<2x32xf32> to vector<1x32xf32>
    %185 = vector.broadcast %184 : vector<1x32xf32> to vector<4x32xf32>
    %186 = arith.addf %183, %185 : vector<4x32xf32>
    %187 = arith.truncf %121 : vector<32x32xf32> to vector<32x32xbf16>
    %cst_64 = arith.constant dense<0.000000e+00> : vector<32x96xf32>
    %188 = tpu.matmul %187, %1, %cst_64 {dimension_numbers = #tpu.dot_dimension_numbers<[1], [0], [0], [1], [0, 0, 1, 1], [], []>} : vector<32x32xbf16>, vector<32x96xbf16>, vector<32x96xf32> -> vector<32x96xf32>
    %189 = vector.broadcast %2 : vector<1x96xf32> to vector<32x96xf32>
    %190 = arith.addf %188, %189 : vector<32x96xf32>
    %191 = vector.extract_strided_slice %190 {offsets = [0, 0], sizes = [32, 32], strides = [1, 1]} : vector<32x96xf32> to vector<32x32xf32>
    %192 = vector.extract_strided_slice %190 {offsets = [0, 32], sizes = [32, 32], strides = [1, 1]} : vector<32x96xf32> to vector<32x32xf32>
    %193 = vector.extract_strided_slice %190 {offsets = [0, 64], sizes = [32, 32], strides = [1, 1]} : vector<32x96xf32> to vector<32x32xf32>
    %194 = arith.truncf %186 : vector<4x32xf32> to vector<4x32xbf16>
    %cst_65 = arith.constant dense<0.000000e+00> : vector<4x160xf32>
    %195 = tpu.matmul %194, %3, %cst_65 {dimension_numbers = #tpu.dot_dimension_numbers<[1], [0], [0], [1], [0, 0, 1, 1], [], []>} : vector<4x32xbf16>, vector<32x160xbf16>, vector<4x160xf32> -> vector<4x160xf32>
    %196 = vector.broadcast %4 : vector<1x160xf32> to vector<4x160xf32>
    %197 = arith.addf %195, %196 : vector<4x160xf32>
    %198 = vector.extract_strided_slice %197 {offsets = [0, 0], sizes = [4, 32], strides = [1, 1]} : vector<4x160xf32> to vector<4x32xf32>
    %199 = vector.extract_strided_slice %197 {offsets = [0, 32], sizes = [4, 32], strides = [1, 1]} : vector<4x160xf32> to vector<4x32xf32>
    %200 = vector.extract_strided_slice %197 {offsets = [0, 64], sizes = [4, 32], strides = [1, 1]} : vector<4x160xf32> to vector<4x32xf32>
    %201 = vector.extract_strided_slice %197 {offsets = [0, 96], sizes = [4, 32], strides = [1, 1]} : vector<4x160xf32> to vector<4x32xf32>
    %202 = vector.extract_strided_slice %197 {offsets = [0, 128], sizes = [4, 32], strides = [1, 1]} : vector<4x160xf32> to vector<4x32xf32>
    %203 = vector.shape_cast %192 : vector<32x32xf32> to vector<4x8x32xf32>
    %204 = vector.shape_cast %193 : vector<32x32xf32> to vector<4x8x32xf32>
    %205 = vector.extract_strided_slice %203 {offsets = [0, 1, 0], sizes = [4, 7, 32], strides = [1, 1, 1]} : vector<4x8x32xf32> to vector<4x7x32xf32>
    %206 = vector.extract_strided_slice %203 {offsets = [0, 1, 0], sizes = [4, 1, 32], strides = [1, 1, 1]} : vector<4x8x32xf32> to vector<4x1x32xf32>
    %207 = tpu.concatenate %205, %206 in 1 : vector<4x7x32xf32>, vector<4x1x32xf32> -> vector<4x8x32xf32>
    %208 = vector.shape_cast %207 : vector<4x8x32xf32> to vector<32x32xf32>
    %209 = vector.extract_strided_slice %204 {offsets = [0, 1, 0], sizes = [4, 7, 32], strides = [1, 1, 1]} : vector<4x8x32xf32> to vector<4x7x32xf32>
    %210 = vector.extract_strided_slice %204 {offsets = [0, 1, 0], sizes = [4, 1, 32], strides = [1, 1, 1]} : vector<4x8x32xf32> to vector<4x1x32xf32>
    %211 = tpu.concatenate %209, %210 in 1 : vector<4x7x32xf32>, vector<4x1x32xf32> -> vector<4x8x32xf32>
    %212 = vector.shape_cast %211 : vector<4x8x32xf32> to vector<32x32xf32>
    %213 = vector.extract_strided_slice %203 {offsets = [0, 0, 0], sizes = [4, 1, 32], strides = [1, 1, 1]} : vector<4x8x32xf32> to vector<4x1x32xf32>
    %214 = vector.shape_cast %213 : vector<4x1x32xf32> to vector<4x1x32xf32>
    %215 = vector.broadcast %214 : vector<4x1x32xf32> to vector<4x8x32xf32>
    %216 = vector.shape_cast %215 : vector<4x8x32xf32> to vector<32x32xf32>
    %217 = vector.extract_strided_slice %204 {offsets = [0, 0, 0], sizes = [4, 1, 32], strides = [1, 1, 1]} : vector<4x8x32xf32> to vector<4x1x32xf32>
    %218 = vector.shape_cast %217 : vector<4x1x32xf32> to vector<4x1x32xf32>
    %219 = vector.broadcast %218 : vector<4x1x32xf32> to vector<4x8x32xf32>
    %220 = vector.shape_cast %219 : vector<4x8x32xf32> to vector<32x32xf32>
    %221 = vector.shape_cast %198 : vector<4x32xf32> to vector<4x1x32xf32>
    %222 = vector.shape_cast %221 : vector<4x1x32xf32> to vector<4x1x32xf32>
    %223 = vector.broadcast %222 : vector<4x1x32xf32> to vector<4x8x32xf32>
    %224 = vector.shape_cast %223 : vector<4x8x32xf32> to vector<32x32xf32>
    %225 = vector.shape_cast %199 : vector<4x32xf32> to vector<4x1x32xf32>
    %226 = vector.shape_cast %225 : vector<4x1x32xf32> to vector<4x1x32xf32>
    %227 = vector.broadcast %226 : vector<4x1x32xf32> to vector<4x8x32xf32>
    %228 = vector.shape_cast %227 : vector<4x8x32xf32> to vector<32x32xf32>
    %229 = arith.mulf %191, %208 : vector<32x32xf32>
    %230 = arith.mulf %191, %192 : vector<32x32xf32>
    %231 = arith.mulf %191, %216 : vector<32x32xf32>
    %232 = arith.mulf %191, %23 : vector<32x32xf32>
    %233 = arith.mulf %191, %224 : vector<32x32xf32>
    %234 = tpu.concatenate %229, %230, %231, %232, %233 in 0 : vector<32x32xf32>, vector<32x32xf32>, vector<32x32xf32>, vector<32x32xf32>, vector<32x32xf32> -> vector<160x32xf32>
    %cst_66 = arith.constant dense<0.000000e+00> : vector<160x32xf32>
    %235 = tpu.matmul %234, %17, %cst_66 {dimension_numbers = #tpu.dot_dimension_numbers<[1], [0], [0], [1], [0, 0, 1, 1], [], []>} : vector<160x32xf32>, vector<32x32xf32>, vector<160x32xf32> -> vector<160x32xf32>
    %236 = vector.shape_cast %235 : vector<160x32xf32> to vector<5x32x32xf32>
    %cst_67 = arith.constant dense<0xFF800000> : vector<32x32xf32>
    %237 = vector.multi_reduction <maximumf>, %236, %cst_67 [0] : vector<5x32x32xf32> to vector<32x32xf32>
    %238 = vector.shape_cast %237 : vector<32x32xf32> to vector<1x32x32xf32>
    %239 = vector.broadcast %238 : vector<1x32x32xf32> to vector<5x32x32xf32>
    %240 = arith.subf %236, %239 : vector<5x32x32xf32>
    %241 = math.exp %240 : vector<5x32x32xf32>
    %cst_68 = arith.constant dense<0.000000e+00> : vector<32x32xf32>
    %242 = vector.multi_reduction <add>, %241, %cst_68 [0] : vector<5x32x32xf32> to vector<32x32xf32>
    %243 = tpu.reciprocal %242 {approx = true} : vector<32x32xf32> -> vector<32x32xf32>
    %244 = vector.shape_cast %243 : vector<32x32xf32> to vector<1x32x32xf32>
    %245 = vector.broadcast %244 : vector<1x32x32xf32> to vector<5x32x32xf32>
    %246 = arith.mulf %241, %245 : vector<5x32x32xf32>
    %247 = tpu.concatenate %212, %193, %220, %24, %228 in 0 : vector<32x32xf32>, vector<32x32xf32>, vector<32x32xf32>, vector<32x32xf32>, vector<32x32xf32> -> vector<160x32xf32>
    %248 = vector.shape_cast %247 : vector<160x32xf32> to vector<5x32x32xf32>
    %249 = arith.mulf %246, %248 : vector<5x32x32xf32>
    %cst_69 = arith.constant dense<0.000000e+00> : vector<32x32xf32>
    %250 = vector.multi_reduction <add>, %249, %cst_69 [0] : vector<5x32x32xf32> to vector<32x32xf32>
    %251 = arith.truncf %250 : vector<32x32xf32> to vector<32x32xbf16>
    %cst_70 = arith.constant dense<0.000000e+00> : vector<32x32xf32>
    %252 = tpu.matmul %251, %9, %cst_70 {dimension_numbers = #tpu.dot_dimension_numbers<[1], [0], [0], [1], [0, 0, 1, 1], [], []>} : vector<32x32xbf16>, vector<32x32xbf16>, vector<32x32xf32> -> vector<32x32xf32>
    %253 = vector.broadcast %10 : vector<1x32xf32> to vector<32x32xf32>
    %254 = arith.addf %252, %253 : vector<32x32xf32>
    %cst_71 = arith.constant 0.000000e+00 : f32
    %255 = vector.broadcast %cst_71 : f32 to vector<32x32xf32>
    %256 = arith.maximumf %254, %255 : vector<32x32xf32>
    %cst_72 = arith.constant dense<0.000000e+00> : vector<32xf32>
    %257 = vector.multi_reduction <add>, %256, %cst_72 [1] : vector<32x32xf32> to vector<32xf32>
    %258 = vector.shape_cast %257 : vector<32xf32> to vector<32x1xf32>
    %cst_73 = arith.constant 3.200000e+01 : f32
    %259 = vector.broadcast %cst_73 : f32 to vector<32x1xf32>
    %260 = arith.divf %258, %259 : vector<32x1xf32>
    %261 = vector.broadcast %260 : vector<32x1xf32> to vector<32x32xf32>
    %262 = arith.subf %256, %261 : vector<32x32xf32>
    %263 = arith.mulf %262, %262 : vector<32x32xf32>
    %cst_74 = arith.constant dense<0.000000e+00> : vector<32xf32>
    %264 = vector.multi_reduction <add>, %263, %cst_74 [1] : vector<32x32xf32> to vector<32xf32>
    %265 = vector.shape_cast %264 : vector<32xf32> to vector<32x1xf32>
    %cst_75 = arith.constant 3.200000e+01 : f32
    %266 = vector.broadcast %cst_75 : f32 to vector<32x1xf32>
    %267 = arith.divf %265, %266 : vector<32x1xf32>
    %268 = vector.extract_strided_slice %13 {offsets = [0, 0], sizes = [1, 32], strides = [1, 1]} : vector<2x32xf32> to vector<1x32xf32>
    %269 = vector.broadcast %260 : vector<32x1xf32> to vector<32x32xf32>
    %270 = arith.subf %256, %269 : vector<32x32xf32>
    %cst_76 = arith.constant 9.99999996E-13 : f32
    %271 = vector.broadcast %cst_76 : f32 to vector<32x1xf32>
    %272 = arith.addf %267, %271 : vector<32x1xf32>
    %273 = math.rsqrt %272 : vector<32x1xf32>
    %274 = vector.broadcast %273 : vector<32x1xf32> to vector<32x32xf32>
    %275 = arith.mulf %270, %274 : vector<32x32xf32>
    %276 = vector.broadcast %268 : vector<1x32xf32> to vector<32x32xf32>
    %277 = arith.mulf %276, %275 : vector<32x32xf32>
    %278 = vector.extract_strided_slice %13 {offsets = [1, 0], sizes = [1, 32], strides = [1, 1]} : vector<2x32xf32> to vector<1x32xf32>
    %279 = vector.broadcast %278 : vector<1x32xf32> to vector<32x32xf32>
    %280 = arith.addf %277, %279 : vector<32x32xf32>
    %281 = arith.truncf %280 : vector<32x32xf32> to vector<32x32xbf16>
    %cst_77 = arith.constant dense<0.000000e+00> : vector<32x64xf32>
    %282 = tpu.matmul %281, %7, %cst_77 {dimension_numbers = #tpu.dot_dimension_numbers<[1], [0], [0], [1], [0, 0, 1, 1], [], []>} : vector<32x32xbf16>, vector<32x64xbf16>, vector<32x64xf32> -> vector<32x64xf32>
    %283 = vector.broadcast %8 : vector<1x64xf32> to vector<32x64xf32>
    %284 = arith.addf %282, %283 : vector<32x64xf32>
    %285 = vector.extract_strided_slice %284 {offsets = [0, 0], sizes = [32, 32], strides = [1, 1]} : vector<32x64xf32> to vector<32x32xf32>
    %286 = vector.extract_strided_slice %284 {offsets = [0, 32], sizes = [32, 32], strides = [1, 1]} : vector<32x64xf32> to vector<32x32xf32>
    %287 = vector.shape_cast %200 : vector<4x32xf32> to vector<4x1x32xf32>
    %288 = vector.shape_cast %287 : vector<4x1x32xf32> to vector<4x1x32xf32>
    %289 = vector.broadcast %288 : vector<4x1x32xf32> to vector<4x8x32xf32>
    %290 = vector.shape_cast %289 : vector<4x8x32xf32> to vector<32x32xf32>
    %291 = arith.mulf %200, %201 : vector<4x32xf32>
    %cst_78 = arith.constant dense<0.000000e+00> : vector<4x32xf32>
    %292 = tpu.matmul %291, %17, %cst_78 {dimension_numbers = #tpu.dot_dimension_numbers<[1], [0], [0], [1], [0, 0, 1, 1], [], []>} : vector<4x32xf32>, vector<32x32xf32>, vector<4x32xf32> -> vector<4x32xf32>
    %293 = arith.mulf %290, %285 : vector<32x32xf32>
    %cst_79 = arith.constant dense<0.000000e+00> : vector<32x32xf32>
    %294 = tpu.matmul %293, %17, %cst_79 {dimension_numbers = #tpu.dot_dimension_numbers<[1], [0], [0], [1], [0, 0, 1, 1], [], []>} : vector<32x32xf32>, vector<32x32xf32>, vector<32x32xf32> -> vector<32x32xf32>
    %295 = vector.shape_cast %294 : vector<32x32xf32> to vector<4x8x32xf32>
    %cst_80 = arith.constant dense<0xFF800000> : vector<4x32xf32>
    %296 = vector.multi_reduction <maximumf>, %295, %cst_80 [1] : vector<4x8x32xf32> to vector<4x32xf32>
    %297 = arith.maximumf %292, %296 : vector<4x32xf32>
    %298 = arith.subf %292, %297 : vector<4x32xf32>
    %299 = math.exp %298 : vector<4x32xf32>
    %300 = vector.shape_cast %297 : vector<4x32xf32> to vector<4x1x32xf32>
    %301 = vector.broadcast %300 : vector<4x1x32xf32> to vector<4x8x32xf32>
    %302 = arith.subf %295, %301 : vector<4x8x32xf32>
    %303 = math.exp %302 : vector<4x8x32xf32>
    %cst_81 = arith.constant dense<0.000000e+00> : vector<4x32xf32>
    %304 = vector.multi_reduction <add>, %303, %cst_81 [1] : vector<4x8x32xf32> to vector<4x32xf32>
    %305 = arith.addf %299, %304 : vector<4x32xf32>
    %306 = tpu.reciprocal %305 {approx = true} : vector<4x32xf32> -> vector<4x32xf32>
    %307 = arith.mulf %299, %306 : vector<4x32xf32>
    %308 = arith.mulf %307, %202 : vector<4x32xf32>
    %309 = vector.shape_cast %306 : vector<4x32xf32> to vector<4x1x32xf32>
    %310 = vector.broadcast %309 : vector<4x1x32xf32> to vector<4x8x32xf32>
    %311 = arith.mulf %303, %310 : vector<4x8x32xf32>
    %312 = vector.shape_cast %286 : vector<32x32xf32> to vector<4x8x32xf32>
    %313 = arith.mulf %311, %312 : vector<4x8x32xf32>
    %cst_82 = arith.constant dense<0.000000e+00> : vector<4x32xf32>
    %314 = vector.multi_reduction <add>, %313, %cst_82 [1] : vector<4x8x32xf32> to vector<4x32xf32>
    %315 = arith.addf %308, %314 : vector<4x32xf32>
    %316 = arith.truncf %315 : vector<4x32xf32> to vector<4x32xbf16>
    %cst_83 = arith.constant dense<0.000000e+00> : vector<4x32xf32>
    %317 = tpu.matmul %316, %11, %cst_83 {dimension_numbers = #tpu.dot_dimension_numbers<[1], [0], [0], [1], [0, 0, 1, 1], [], []>} : vector<4x32xbf16>, vector<32x32xbf16>, vector<4x32xf32> -> vector<4x32xf32>
    %318 = vector.broadcast %12 : vector<1x32xf32> to vector<4x32xf32>
    %319 = arith.addf %317, %318 : vector<4x32xf32>
    %cst_84 = arith.constant 0.000000e+00 : f32
    %320 = vector.broadcast %cst_84 : f32 to vector<4x32xf32>
    %321 = arith.maximumf %319, %320 : vector<4x32xf32>
    %cst_85 = arith.constant dense<0.000000e+00> : vector<4xf32>
    %322 = vector.multi_reduction <add>, %321, %cst_85 [1] : vector<4x32xf32> to vector<4xf32>
    %323 = vector.shape_cast %322 : vector<4xf32> to vector<4x1xf32>
    %cst_86 = arith.constant 3.200000e+01 : f32
    %324 = vector.broadcast %cst_86 : f32 to vector<4x1xf32>
    %325 = arith.divf %323, %324 : vector<4x1xf32>
    %326 = vector.broadcast %325 : vector<4x1xf32> to vector<4x32xf32>
    %327 = arith.subf %321, %326 : vector<4x32xf32>
    %328 = arith.mulf %327, %327 : vector<4x32xf32>
    %cst_87 = arith.constant dense<0.000000e+00> : vector<4xf32>
    %329 = vector.multi_reduction <add>, %328, %cst_87 [1] : vector<4x32xf32> to vector<4xf32>
    %330 = vector.shape_cast %329 : vector<4xf32> to vector<4x1xf32>
    %cst_88 = arith.constant 3.200000e+01 : f32
    %331 = vector.broadcast %cst_88 : f32 to vector<4x1xf32>
    %332 = arith.divf %330, %331 : vector<4x1xf32>
    %333 = vector.extract_strided_slice %14 {offsets = [0, 0], sizes = [1, 32], strides = [1, 1]} : vector<2x32xf32> to vector<1x32xf32>
    %334 = vector.broadcast %325 : vector<4x1xf32> to vector<4x32xf32>
    %335 = arith.subf %321, %334 : vector<4x32xf32>
    %cst_89 = arith.constant 9.99999996E-13 : f32
    %336 = vector.broadcast %cst_89 : f32 to vector<4x1xf32>
    %337 = arith.addf %332, %336 : vector<4x1xf32>
    %338 = math.rsqrt %337 : vector<4x1xf32>
    %339 = vector.broadcast %338 : vector<4x1xf32> to vector<4x32xf32>
    %340 = arith.mulf %335, %339 : vector<4x32xf32>
    %341 = vector.broadcast %333 : vector<1x32xf32> to vector<4x32xf32>
    %342 = arith.mulf %341, %340 : vector<4x32xf32>
    %343 = vector.extract_strided_slice %14 {offsets = [1, 0], sizes = [1, 32], strides = [1, 1]} : vector<2x32xf32> to vector<1x32xf32>
    %344 = vector.broadcast %343 : vector<1x32xf32> to vector<4x32xf32>
    %345 = arith.addf %342, %344 : vector<4x32xf32>
    %346 = vector.shape_cast %280 : vector<32x32xf32> to vector<4x8x32xf32>
    %cst_90 = arith.constant dense<0.000000e+00> : vector<4x32xf32>
    %347 = vector.multi_reduction <add>, %346, %cst_90 [1] : vector<4x8x32xf32> to vector<4x32xf32>
    %cst_91 = arith.constant 8.000000e+00 : f32
    %348 = vector.broadcast %cst_91 : f32 to vector<4x32xf32>
    %349 = arith.divf %347, %348 : vector<4x32xf32>
    %350 = arith.addf %349, %345 : vector<4x32xf32>
    %351 = arith.truncf %350 : vector<4x32xf32> to vector<4x32xbf16>
    %cst_92 = arith.constant dense<0.000000e+00> : vector<4x128xf32>
    %352 = tpu.matmul %351, %15, %cst_92 {dimension_numbers = #tpu.dot_dimension_numbers<[1], [0], [0], [1], [0, 0, 1, 1], [], []>} : vector<4x32xbf16>, vector<32x128xbf16>, vector<4x128xf32> -> vector<4x128xf32>
    %353 = vector.broadcast %16 : vector<1x128xf32> to vector<4x128xf32>
    %354 = arith.addf %352, %353 : vector<4x128xf32>
    %c0_93 = arith.constant 0 : index
    %c0_94 = arith.constant 0 : index
    %c0_95 = arith.constant 0 : index
    %355 = vector.load %arg19[%c0_93, %c0_94, %c0_95] : memref<1x4x128xf32, #tpu.memory_space<vmem>>, vector<1x4x128xf32>
    %356 = vector.shape_cast %355 : vector<1x4x128xf32> to vector<4x128xf32>
    %357 = vector.shape_cast %354 : vector<4x128xf32> to vector<1x4x128xf32>
    tpu.vector_store %arg19[%c0_93, %c0_94, %c0_95], %357 {strides = array<i32>} : memref<1x4x128xf32, #tpu.memory_space<vmem>>, vector<1x4x128xf32>,
    return
  }
  func.func @transform_0(%arg0: i32) -> (i32, i32, i32) {
    %c0_i32 = arith.constant 0 : i32
    %c0_i32_0 = arith.constant 0 : i32
    %c0_i32_1 = arith.constant 0 : i32
    return %arg0, %c0_i32, %c0_i32_0 : i32, i32, i32
  }
  func.func @transform_1(%arg0: i32) -> (i32, i32) {
    %c0_i32 = arith.constant 0 : i32
    %c0_i32_0 = arith.constant 0 : i32
    %c0_i32_1 = arith.constant 0 : i32
    return %c0_i32, %c0_i32_0 : i32, i32
  }
  func.func @transform_2(%arg0: i32) -> (i32, i32) {
    %c0_i32 = arith.constant 0 : i32
    %c0_i32_0 = arith.constant 0 : i32
    %c0_i32_1 = arith.constant 0 : i32
    return %c0_i32, %c0_i32_0 : i32, i32
  }
  func.func @transform_3(%arg0: i32) -> (i32, i32) {
    %c0_i32 = arith.constant 0 : i32
    %c0_i32_0 = arith.constant 0 : i32
    %c0_i32_1 = arith.constant 0 : i32
    return %c0_i32, %c0_i32_0 : i32, i32
  }
  func.func @transform_4(%arg0: i32) -> (i32, i32) {
    %c0_i32 = arith.constant 0 : i32
    %c0_i32_0 = arith.constant 0 : i32
    %c0_i32_1 = arith.constant 0 : i32
    return %c0_i32, %c0_i32_0 : i32, i32
  }
  func.func @transform_5(%arg0: i32) -> (i32, i32) {
    %c0_i32 = arith.constant 0 : i32
    %c0_i32_0 = arith.constant 0 : i32
    %c0_i32_1 = arith.constant 0 : i32
    return %c0_i32, %c0_i32_0 : i32, i32
  }
  func.func @transform_6(%arg0: i32) -> (i32, i32) {
    %c0_i32 = arith.constant 0 : i32
    %c0_i32_0 = arith.constant 0 : i32
    %c0_i32_1 = arith.constant 0 : i32
    return %c0_i32, %c0_i32_0 : i32, i32
  }
  func.func @transform_7(%arg0: i32) -> (i32, i32) {
    %c0_i32 = arith.constant 0 : i32
    %c0_i32_0 = arith.constant 0 : i32
    %c0_i32_1 = arith.constant 0 : i32
    return %c0_i32, %c0_i32_0 : i32, i32
  }
  func.func @transform_8(%arg0: i32) -> (i32, i32) {
    %c0_i32 = arith.constant 0 : i32
    %c0_i32_0 = arith.constant 0 : i32
    %c0_i32_1 = arith.constant 0 : i32
    return %c0_i32, %c0_i32_0 : i32, i32
  }
  func.func @transform_9(%arg0: i32) -> (i32, i32) {
    %c0_i32 = arith.constant 0 : i32
    %c0_i32_0 = arith.constant 0 : i32
    %c0_i32_1 = arith.constant 0 : i32
    return %c0_i32, %c0_i32_0 : i32, i32
  }
  func.func @transform_10(%arg0: i32) -> (i32, i32) {
    %c0_i32 = arith.constant 0 : i32
    %c0_i32_0 = arith.constant 0 : i32
    %c0_i32_1 = arith.constant 0 : i32
    return %c0_i32, %c0_i32_0 : i32, i32
  }
  func.func @transform_11(%arg0: i32) -> (i32, i32) {
    %c0_i32 = arith.constant 0 : i32
    %c0_i32_0 = arith.constant 0 : i32
    %c0_i32_1 = arith.constant 0 : i32
    return %c0_i32, %c0_i32_0 : i32, i32
  }
  func.func @transform_12(%arg0: i32) -> (i32, i32) {
    %c0_i32 = arith.constant 0 : i32
    %c0_i32_0 = arith.constant 0 : i32
    %c0_i32_1 = arith.constant 0 : i32
    return %c0_i32, %c0_i32_0 : i32, i32
  }
  func.func @transform_13(%arg0: i32) -> (i32, i32) {
    %c0_i32 = arith.constant 0 : i32
    %c0_i32_0 = arith.constant 0 : i32
    %c0_i32_1 = arith.constant 0 : i32
    return %c0_i32, %c0_i32_0 : i32, i32
  }
  func.func @transform_14(%arg0: i32) -> (i32, i32) {
    %c0_i32 = arith.constant 0 : i32
    %c0_i32_0 = arith.constant 0 : i32
    %c0_i32_1 = arith.constant 0 : i32
    return %c0_i32, %c0_i32_0 : i32, i32
  }
  func.func @transform_15(%arg0: i32) -> (i32, i32) {
    %c0_i32 = arith.constant 0 : i32
    %c0_i32_0 = arith.constant 0 : i32
    %c0_i32_1 = arith.constant 0 : i32
    return %c0_i32, %c0_i32_0 : i32, i32
  }
  func.func @transform_16(%arg0: i32) -> (i32, i32) {
    %c0_i32 = arith.constant 0 : i32
    %c0_i32_0 = arith.constant 0 : i32
    %c0_i32_1 = arith.constant 0 : i32
    return %c0_i32, %c0_i32_0 : i32, i32
  }
  func.func @transform_17(%arg0: i32) -> (i32, i32) {
    %c0_i32 = arith.constant 0 : i32
    %c0_i32_0 = arith.constant 0 : i32
    %c0_i32_1 = arith.constant 0 : i32
    return %c0_i32, %c0_i32_0 : i32, i32
  }
  func.func @transform_18(%arg0: i32) -> (i32, i32, i32) {
    %c0_i32 = arith.constant 0 : i32
    %c0_i32_0 = arith.constant 0 : i32
    %c0_i32_1 = arith.constant 0 : i32
    return %arg0, %c0_i32, %c0_i32_0 : i32, i32, i32
  }
}

</mosaic_0001>

<bundles_post_ra>
// kernel: tpu_custom_call.1
= control target key start
LH: loop header
LB: loop body
LE: loop exit
PB: predicated region body
PF: predicated region fallthrough
CT: control target
= control target key end

     0   :  { %s6086_s0 = inlined_call_operand.hbm [shape: f32[4,8,32], index: 0, kind: input, shape index: {}]   ;;  %s6087_s1 = inlined_call_operand.hbm [shape: bf16[32,96], index: 1, kind: input, shape index: {}]   ;;  %s6088_s2 = inlined_call_operand.hbm [shape: f32[1,96], index: 2, kind: input, shape index: {}]   ;;  %s6089_s3 = inlined_call_operand.hbm [shape: bf16[32,160], index: 3, kind: input, shape index: {}]   ;;  %s6090_s4 = inlined_call_operand.hbm [shape: f32[1,160], index: 4, kind: input, shape index: {}]   ;;  %s6091_s5 = inlined_call_operand.vmem [shape: bf16[32,64], index: 5, kind: input, shape index: {}]   ;;  %s6092_s6 = inlined_call_operand.hbm [shape: f32[1,64], index: 6, kind: input, shape index: {}]   ;;  %s6093_s7 = inlined_call_operand.hbm [shape: bf16[32,64], index: 7, kind: input, shape index: {}]   ;;  %s6094_s8 = inlined_call_operand.hbm [shape: f32[1,64], index: 8, kind: input, shape index: {}]   ;;  %s6095_s9 = inlined_call_operand.vmem [shape: bf16[32,32], index: 9, kind: input, shape index: {}]   ;;  %s6096_s10 = inlined_call_operand.hbm [shape: f32[1,32], index: 10, kind: input, shape index: {}]   ;;  %s6097_s11 = inlined_call_operand.hbm [shape: bf16[32,32], index: 11, kind: input, shape index: {}]   ;;  %s6098_s12 = inlined_call_operand.hbm [shape: f32[1,32], index: 12, kind: input, shape index: {}]   ;;  %s6099_s13 = inlined_call_operand.hbm [shape: f32[2,32], index: 13, kind: input, shape index: {}]   ;;  %s6100_s14 = inlined_call_operand.hbm [shape: f32[2,32], index: 14, kind: input, shape index: {}]   ;;  %s6101_s15 = inlined_call_operand.hbm [shape: bf16[32,128], index: 15, kind: input, shape index: {}]   ;;  %s6102_s16 = inlined_call_operand.hbm [shape: f32[1,128], index: 16, kind: input, shape index: {}]   ;;  %s6103_s17 = inlined_call_operand.vmem [shape: f32[32,32], index: 17, kind: input, shape index: {}]   ;;  %s6104_s18 = inlined_call_operand.hbm [shape: f32[1,4,128], index: 18, kind: output, shape index: {}]  }
   0x1   :  { %6119 = sst [smem:[#allocation40_spill]] %s6086_s0 }
   0x2   :  { %6120 = sst [smem:[#allocation41_spill]] %s6087_s1 }
   0x3   :  { %6121 = sst [smem:[#allocation42_spill]] %s6088_s2 }
   0x4   :  { %6122 = sst [smem:[#allocation43_spill]] %s6095_s9 }
   0x5   :  { %6123 = sst [smem:[#allocation44_spill]] %s6104_s18 }
   0x6   :  { %23 = vsyncpa [#allocation3], 0 }
   0x7   :  { %24 = vsyncpa [#allocation6], 0 }
   0x8   :  { %25 = vsyncpa [#allocation9], 0 }
   0x9   :  { %26 = vsyncpa [#allocation12], 0 }
   0xa   :  { %27 = vsyncpa [#allocation15], 0 }
   0xb   :  { %28 = vsyncpa [#allocation18], 0 }
   0xc   :  { %29 = vsyncpa [#allocation21], 0 }
   0xd   :  { %30 = vsyncpa [#allocation24], 0 }
   0xe   :  { %31 = vsyncpa [#allocation4], 0  ;;  %s4567_s27 = smov [#allocation5]   ;;  %s6124_s0 = sld [smem:[#allocation41_spill]] }
   0xf   :  { %s49_s28 = sshll.u32 %s4567_s27, 4  ;;  %s50_s28 = int_to_ptr.vmem [resolvable:$true] %s49_s28 }
  0x14   :  { %s4197_s19 = scalar_lea.hbm %s6124_s0, 256 }
  0x15   :  { %p4198_p0 = scmp.ne.s32.totalorder %s6124_s0, %s4197_s19  ;;  %p4201_p1 = scmp.lt.u32.totalorder %s4197_s19, %s6124_s0 }
  0x17   :  { %p4203_p2 = pnand %p4201_p1, %p4198_p0 }
  0x19   :  { %4206 = shalt.err (!%p4203_p2)
}
  0x1a   :  { %s4207_s2 = scalar_lea.vmem %s50_s28, 256  ;;  %p4212_p4 = scmp.lt.s32.totalorder %s50_s28, %s50_s28 }
  0x1b   :  { %p4208_p3 = scmp.ne.s32.totalorder %s50_s28, %s4207_s2  ;;  %p4213_p5 = scmp.lt.s32.totalorder %s4207_s2, %s4207_s2 }
  0x1d   :  { %p4214_p6 = por %p4213_p5, %p4212_p4 }
  0x1f   :  { %p4215_p7 = pnand %p4214_p6, %p4208_p3 }
  0x21   :  { %4218 = shalt.err (!%p4215_p7)
}
  0x22   :  { %s4568_s23 = smov 64   ;;  %s4569_s24 = smov 4  }
  0x23   :  { %55 = dma.hbm_to_vmem [thread:$0]  %s6124_s0, 256, %s50_s28, [#allocation6], %s4568_s23, %s4568_s23, %s4569_s24  }
  0x24   :  { %s4570_s27 = smov [#allocation8]   ;;  %s4571_s30 = smov [#allocation11]  }
  0x25   :  { %s71_s29 = sshll.u32 %s4570_s27, 4  ;;  %s96_s19 = sshll.u32 %s4571_s30, 4  ;;  %s72_s29 = int_to_ptr.vmem [resolvable:$true] %s71_s29  ;;  %s97_s19 = int_to_ptr.vmem [resolvable:$true] %s96_s19 }
  0x26   :  { %s4219_s21 = scalar_lea.hbm %s6089_s3, 512 }
  0x27   :  { %p4220_p8 = scmp.ne.s32.totalorder %s6089_s3, %s4219_s21  ;;  %p4223_p9 = scmp.lt.u32.totalorder %s4219_s21, %s6089_s3 }
  0x29   :  { %p4225_p10 = pnand %p4223_p9, %p4220_p8 }
  0x2b   :  { %4228 = shalt.err (!%p4225_p10)
}
  0x2c   :  { %s4229_s28 = scalar_lea.vmem %s72_s29, 512  ;;  %p4234_p12 = scmp.lt.s32.totalorder %s72_s29, %s72_s29 }
  0x2d   :  { %p4230_p11 = scmp.ne.s32.totalorder %s72_s29, %s4229_s28  ;;  %p4235_p13 = scmp.lt.s32.totalorder %s4229_s28, %s4229_s28 }
  0x2f   :  { %p4236_p0 = por %p4235_p13, %p4234_p12 }
  0x31   :  { %p4237_p1 = pnand %p4236_p0, %p4230_p11 }
  0x33   :  { %4240 = shalt.err (!%p4237_p1)
}
  0x34   :  { %s4572_s0 = smov 128   ;;  %s4573_s25 = smov 8  }
  0x35   :  { %77 = dma.hbm_to_vmem [thread:$0]  %s6089_s3, 512, %s72_s29, [#allocation9], %s4572_s0, %s4572_s0, %s4573_s25  }
  0x36   :  { %s4241_s30 = scalar_lea.hbm %s6092_s6, 16 }
  0x37   :  { %p4242_p2 = scmp.ne.s32.totalorder %s6092_s6, %s4241_s30  ;;  %p4245_p3 = scmp.lt.u32.totalorder %s4241_s30, %s6092_s6 }
  0x39   :  { %p4247_p4 = pnand %p4245_p3, %p4242_p2 }
  0x3b   :  { %4250 = shalt.err (!%p4247_p4)
}
  0x3c   :  { %s4251_s2 = scalar_lea.vmem %s97_s19, 16  ;;  %s4255_s28 = scalar_lea.vmem %s97_s19, 32 }
  0x3d   :  { %p4252_p5 = scmp.ne.s32.totalorder %s97_s19, %s4251_s2  ;;  %p4256_p6 = scmp.lt.s32.totalorder %s97_s19, %s97_s19 }
  0x3e   :  { %p4257_p7 = scmp.lt.s32.totalorder %s4255_s28, %s4251_s2 }
  0x40   :  { %p4258_p8 = por %p4257_p7, %p4256_p6 }
  0x42   :  { %p4259_p9 = pnand %p4258_p8, %p4252_p5 }
  0x44   :  { %4262 = shalt.err (!%p4259_p9)
}
  0x45   :  { %99 = dma.hbm_to_vmem [thread:$0]  %s6092_s6, 16, %s97_s19, [#allocation12]  }
  0x46   :  { %s4574_s26 = smov [#allocation14]   ;;  %s4575_s9 = smov [#allocation17]  }
  0x47   :  { %s118_s27 = sshll.u32 %s4574_s26, 4  ;;  %s139_s18 = sshll.u32 %s4575_s9, 4  ;;  %s119_s27 = int_to_ptr.vmem [resolvable:$true] %s118_s27  ;;  %s140_s18 = int_to_ptr.vmem [resolvable:$true] %s139_s18 }
  0x48   :  { %s4263_s20 = scalar_lea.hbm %s6094_s8, 16 }
  0x49   :  { %p4264_p10 = scmp.ne.s32.totalorder %s6094_s8, %s4263_s20  ;;  %p4267_p11 = scmp.lt.u32.totalorder %s4263_s20, %s6094_s8 }
  0x4b   :  { %p4269_p12 = pnand %p4267_p11, %p4264_p10 }
  0x4d   :  { %4272 = shalt.err (!%p4269_p12)
}
  0x4e   :  { %s4273_s6 = scalar_lea.vmem %s119_s27, 16  ;;  %s4277_s19 = scalar_lea.vmem %s119_s27, 32 }
  0x4f   :  { %p4274_p13 = scmp.ne.s32.totalorder %s119_s27, %s4273_s6  ;;  %p4278_p0 = scmp.lt.s32.totalorder %s119_s27, %s119_s27 }
  0x50   :  { %p4279_p1 = scmp.lt.s32.totalorder %s4277_s19, %s4273_s6 }
  0x52   :  { %p4280_p2 = por %p4279_p1, %p4278_p0 }
  0x54   :  { %p4281_p3 = pnand %p4280_p2, %p4274_p13 }
  0x56   :  { %4284 = shalt.err (!%p4281_p3)
}
  0x57   :  { %121 = dma.hbm_to_vmem [thread:$0]  %s6094_s8, 16, %s119_s27, [#allocation15]  }
  0x58   :  { %s4285_s30 = scalar_lea.hbm %s6097_s11, 256 }
  0x59   :  { %p4286_p4 = scmp.ne.s32.totalorder %s6097_s11, %s4285_s30  ;;  %p4289_p5 = scmp.lt.u32.totalorder %s4285_s30, %s6097_s11 }
  0x5b   :  { %p4291_p6 = pnand %p4289_p5, %p4286_p4 }
  0x5d   :  { %4294 = shalt.err (!%p4291_p6)
}
  0x5e   :  { %s4295_s2 = scalar_lea.vmem %s140_s18, 256  ;;  %p4300_p8 = scmp.lt.s32.totalorder %s140_s18, %s140_s18 }
  0x5f   :  { %p4296_p7 = scmp.ne.s32.totalorder %s140_s18, %s4295_s2  ;;  %p4301_p9 = scmp.lt.s32.totalorder %s4295_s2, %s4295_s2 }
  0x61   :  { %p4302_p10 = por %p4301_p9, %p4300_p8 }
  0x63   :  { %p4303_p11 = pnand %p4302_p10, %p4296_p7 }
  0x65   :  { %4306 = shalt.err (!%p4303_p11)
}
  0x66   :  { %145 = dma.hbm_to_vmem [thread:$0]  %s6097_s11, 256, %s140_s18, [#allocation18], %s4568_s23, %s4568_s23, %s4569_s24  }
  0x67   :  { %s4576_s28 = smov [#allocation20]   ;;  %s4577_s19 = smov [#allocation23]  }
  0x68   :  { %s162_s6 = sshll.u32 %s4576_s28, 4  ;;  %s181_s3 = sshll.u32 %s4577_s19, 4  ;;  %s163_s6 = int_to_ptr.vmem [resolvable:$true] %s162_s6  ;;  %s182_s3 = int_to_ptr.vmem [resolvable:$true] %s181_s3 }
  0x69   :  { %s4307_s9 = scalar_lea.hbm %s6099_s13, 32 }
  0x6a   :  { %p4308_p12 = scmp.ne.s32.totalorder %s6099_s13, %s4307_s9  ;;  %p4311_p13 = scmp.lt.u32.totalorder %s4307_s9, %s6099_s13 }
  0x6c   :  { %p4313_p0 = pnand %p4311_p13, %p4308_p12 }
  0x6e   :  { %4316 = shalt.err (!%p4313_p0)
}
  0x6f   :  { %s4317_s11 = scalar_lea.vmem %s163_s6, 32  ;;  %p4322_p2 = scmp.lt.s32.totalorder %s163_s6, %s163_s6 }
  0x70   :  { %p4318_p1 = scmp.ne.s32.totalorder %s163_s6, %s4317_s11  ;;  %p4323_p3 = scmp.lt.s32.totalorder %s4317_s11, %s4317_s11 }
  0x72   :  { %p4324_p4 = por %p4323_p3, %p4322_p2 }
  0x74   :  { %p4325_p5 = pnand %p4324_p4, %p4318_p1 }
  0x76   :  { %4328 = shalt.err (!%p4325_p5)
}
  0x77   :  { %165 = dma.hbm_to_vmem [thread:$0]  %s6099_s13, 32, %s163_s6, [#allocation21]  }
  0x78   :  { %s4329_s27 = scalar_lea.hbm %s6101_s15, 256 }
  0x79   :  { %p4330_p6 = scmp.ne.s32.totalorder %s6101_s15, %s4329_s27  ;;  %p4333_p7 = scmp.lt.u32.totalorder %s4329_s27, %s6101_s15 }
  0x7b   :  { %p4335_p8 = pnand %p4333_p7, %p4330_p6 }
  0x7d   :  { %4338 = shalt.err (!%p4335_p8)
}
  0x7e   :  { %s4339_s9 = scalar_lea.vmem %s182_s3, 256  ;;  %p4344_p10 = scmp.lt.s32.totalorder %s182_s3, %s182_s3 }
  0x7f   :  { %p4340_p9 = scmp.ne.s32.totalorder %s182_s3, %s4339_s9  ;;  %p4345_p11 = scmp.lt.s32.totalorder %s4339_s9, %s4339_s9 }
  0x81   :  { %p4346_p12 = por %p4345_p11, %p4344_p10 }
  0x83   :  { %p4347_p13 = pnand %p4346_p12, %p4340_p9 }
  0x85   :  { %4350 = shalt.err (!%p4347_p13)
}
  0x86   :  { %187 = dma.hbm_to_vmem [thread:$0]  %s6101_s15, 256, %s182_s3, [#allocation24], %s4568_s23, %s4568_s23, %s4569_s24  }
  0x87   :  { %s4578_s30 = smov [#allocation2]   ;;  %s4579_s20 = smov [#allocation7]  }
  0x88   :  { %s37_s1 = sshll.u32 %s4578_s30, 4  ;;  %s62_s21 = sshll.u32 %s4579_s20, 4  ;;  %s38_s1 = int_to_ptr.vmem [resolvable:$true] %s37_s1  ;;  %s63_s21 = int_to_ptr.vmem [resolvable:$true] %s62_s21 }
  0x89   :  { %s6125_s22 = sld [smem:[#allocation40_spill]] }
  0x8f   :  { %s4351_s2 = scalar_lea.hbm %s6125_s22, 512 }
  0x90   :  { %p4352_p0 = scmp.ne.s32.totalorder %s6125_s22, %s4351_s2  ;;  %p4355_p1 = scmp.lt.u32.totalorder %s4351_s2, %s6125_s22 }
  0x92   :  { %p4357_p2 = pnand %p4355_p1, %p4352_p0 }
  0x94   :  { %4360 = shalt.err (!%p4357_p2)
}
  0x95   :  { %s4361_s15 = scalar_lea.vmem %s38_s1, 512  ;;  %p4366_p4 = scmp.lt.s32.totalorder %s38_s1, %s38_s1 }
  0x96   :  { %p4362_p3 = scmp.ne.s32.totalorder %s38_s1, %s4361_s15  ;;  %p4367_p5 = scmp.lt.s32.totalorder %s4361_s15, %s4361_s15 }
  0x98   :  { %p4368_p6 = por %p4367_p5, %p4366_p4 }
  0x9a   :  { %p4369_p7 = pnand %p4368_p6, %p4362_p3 }
  0x9c   :  { %4372 = shalt.err (!%p4369_p7)
}
  0x9d   :  { %43 = dma.hbm_to_vmem [thread:$0]  %s6125_s22, 512, %s38_s1, [#allocation3], %s4572_s0, %s4572_s0, %s4573_s25  }
  0x9e   :  { %s6126_s13 = sld [smem:[#allocation42_spill]] }
  0xa4   :  { %s4373_s6 = scalar_lea.hbm %s6126_s13, 16 }
  0xa5   :  { %p4374_p8 = scmp.ne.s32.totalorder %s6126_s13, %s4373_s6  ;;  %p4377_p9 = scmp.lt.u32.totalorder %s4373_s6, %s6126_s13 }
  0xa7   :  { %p4379_p10 = pnand %p4377_p9, %p4374_p8 }
  0xa9   :  { %4382 = shalt.err (!%p4379_p10)
}
  0xaa   :  { %s4383_s2 = scalar_lea.vmem %s63_s21, 16  ;;  %s4387_s8 = scalar_lea.vmem %s63_s21, 32 }
  0xab   :  { %p4384_p11 = scmp.ne.s32.totalorder %s63_s21, %s4383_s2  ;;  %p4388_p12 = scmp.lt.s32.totalorder %s63_s21, %s63_s21 }
  0xac   :  { %p4389_p13 = scmp.lt.s32.totalorder %s4387_s8, %s4383_s2 }
  0xae   :  { %p4390_p0 = por %p4389_p13, %p4388_p12 }
  0xb0   :  { %p4391_p1 = pnand %p4390_p0, %p4384_p11 }
  0xb2   :  { %4394 = shalt.err (!%p4391_p1)
}
  0xb3   :  { %65 = dma.hbm_to_vmem [thread:$0]  %s6126_s13, 16, %s63_s21, [#allocation6]  }
  0xb4   :  { %s4580_s1 = smov [#allocation10]   ;;  %s4581_s27 = smov [#allocation13]  }
  0xb5   :  { %s84_s22 = sshll.u32 %s4580_s1, 4  ;;  %s105_s28 = sshll.u32 %s4581_s27, 4  ;;  %s85_s22 = int_to_ptr.vmem [resolvable:$true] %s84_s22  ;;  %s106_s28 = int_to_ptr.vmem [resolvable:$true] %s105_s28 }
  0xb6   :  { %s4395_s3 = scalar_lea.hbm %s6090_s4, 32 }
  0xb7   :  { %p4396_p2 = scmp.ne.s32.totalorder %s6090_s4, %s4395_s3  ;;  %p4399_p3 = scmp.lt.u32.totalorder %s4395_s3, %s6090_s4 }
  0xb9   :  { %p4401_p4 = pnand %p4399_p3, %p4396_p2 }
  0xbb   :  { %4404 = shalt.err (!%p4401_p4)
}
  0xbc   :  { %s4405_s21 = scalar_lea.vmem %s85_s22, 32  ;;  %p4410_p6 = scmp.lt.s32.totalorder %s85_s22, %s85_s22 }
  0xbd   :  { %p4406_p5 = scmp.ne.s32.totalorder %s85_s22, %s4405_s21  ;;  %p4411_p7 = scmp.lt.s32.totalorder %s4405_s21, %s4405_s21 }
  0xbf   :  { %p4412_p8 = por %p4411_p7, %p4410_p6 }
  0xc1   :  { %p4413_p9 = pnand %p4412_p8, %p4406_p5 }
  0xc3   :  { %4416 = shalt.err (!%p4413_p9)
}
  0xc4   :  { %87 = dma.hbm_to_vmem [thread:$0]  %s6090_s4, 32, %s85_s22, [#allocation9]  }
  0xc5   :  { %s4417_s18 = scalar_lea.hbm %s6093_s7, 256 }
  0xc6   :  { %p4418_p10 = scmp.ne.s32.totalorder %s6093_s7, %s4417_s18  ;;  %p4421_p11 = scmp.lt.u32.totalorder %s4417_s18, %s6093_s7 }
  0xc8   :  { %p4423_p12 = pnand %p4421_p11, %p4418_p10 }
  0xca   :  { %4426 = shalt.err (!%p4423_p12)
}
  0xcb   :  { %s4427_s1 = scalar_lea.vmem %s106_s28, 256  ;;  %p4432_p0 = scmp.lt.s32.totalorder %s106_s28, %s106_s28 }
  0xcc   :  { %p4428_p13 = scmp.ne.s32.totalorder %s106_s28, %s4427_s1  ;;  %p4433_p1 = scmp.lt.s32.totalorder %s4427_s1, %s4427_s1 }
  0xce   :  { %p4434_p2 = por %p4433_p1, %p4432_p0 }
  0xd0   :  { %p4435_p3 = pnand %p4434_p2, %p4428_p13 }
  0xd2   :  { %4438 = shalt.err (!%p4435_p3)
}
  0xd3   :  { %111 = dma.hbm_to_vmem [thread:$0]  %s6093_s7, 256, %s106_s28, [#allocation12], %s4568_s23, %s4568_s23, %s4569_s24  }
  0xd4   :  { %s4582_s27 = smov [#allocation16]   ;;  %s4583_s15 = smov [#allocation19]  }
  0xd5   :  { %s130_s19 = sshll.u32 %s4582_s27, 4  ;;  %s152_s3 = sshll.u32 %s4583_s15, 4  ;;  %s131_s19 = int_to_ptr.vmem [resolvable:$true] %s130_s19  ;;  %s153_s3 = int_to_ptr.vmem [resolvable:$true] %s152_s3 }
  0xd6   :  { %s4439_s9 = scalar_lea.hbm %s6096_s10, 16 }
  0xd7   :  { %p4440_p4 = scmp.ne.s32.totalorder %s6096_s10, %s4439_s9  ;;  %p4443_p5 = scmp.lt.u32.totalorder %s4439_s9, %s6096_s10 }
  0xd9   :  { %p4445_p6 = pnand %p4443_p5, %p4440_p4 }
  0xdb   :  { %4448 = shalt.err (!%p4445_p6)
}
  0xdc   :  { %s4449_s7 = scalar_lea.vmem %s131_s19, 16  ;;  %s4453_s24 = scalar_lea.vmem %s131_s19, 32 }
  0xdd   :  { %p4450_p7 = scmp.ne.s32.totalorder %s131_s19, %s4449_s7  ;;  %p4454_p8 = scmp.lt.s32.totalorder %s131_s19, %s131_s19 }
  0xde   :  { %p4455_p9 = scmp.lt.s32.totalorder %s4453_s24, %s4449_s7 }
  0xe0   :  { %p4456_p10 = por %p4455_p9, %p4454_p8 }
  0xe2   :  { %p4457_p11 = pnand %p4456_p10, %p4450_p7 }
  0xe4   :  { %4460 = shalt.err (!%p4457_p11)
}
  0xe5   :  { %133 = dma.hbm_to_vmem [thread:$0]  %s6096_s10, 16, %s131_s19, [#allocation15]  }
  0xe6   :  { %s4461_s2 = scalar_lea.hbm %s6098_s12, 16 }
  0xe7   :  { %p4462_p12 = scmp.ne.s32.totalorder %s6098_s12, %s4461_s2  ;;  %p4465_p13 = scmp.lt.u32.totalorder %s4461_s2, %s6098_s12 }
  0xe9   :  { %p4467_p0 = pnand %p4465_p13, %p4462_p12 }
  0xeb   :  { %4470 = shalt.err (!%p4467_p0)
}
  0xec   :  { %s4471_s4 = scalar_lea.vmem %s153_s3, 16  ;;  %s4475_s22 = scalar_lea.vmem %s153_s3, 32 }
  0xed   :  { %p4472_p1 = scmp.ne.s32.totalorder %s153_s3, %s4471_s4  ;;  %p4476_p2 = scmp.lt.s32.totalorder %s153_s3, %s153_s3 }
  0xee   :  { %p4477_p3 = scmp.lt.s32.totalorder %s4475_s22, %s4471_s4 }
  0xf0   :  { %p4478_p4 = por %p4477_p3, %p4476_p2 }
  0xf2   :  { %p4479_p5 = pnand %p4478_p4, %p4472_p1 }
  0xf4   :  { %4482 = shalt.err (!%p4479_p5)
}
  0xf5   :  { %155 = dma.hbm_to_vmem [thread:$0]  %s6098_s12, 16, %s153_s3, [#allocation18]  }
  0xf6   :  { %s4584_s19 = smov [#allocation22]   ;;  %s4585_s29 = smov [#allocation25]  }
  0xf7   :  { %s172_s15 = sshll.u32 %s4584_s19, 4  ;;  %s194_s26 = sshll.u32 %s4585_s29, 4  ;;  %s173_s15 = int_to_ptr.vmem [resolvable:$true] %s172_s15  ;;  %s195_s26 = int_to_ptr.vmem [resolvable:$true] %s194_s26 }
  0xf8   :  { %s4483_s21 = scalar_lea.hbm %s6100_s14, 32 }
  0xf9   :  { %p4484_p6 = scmp.ne.s32.totalorder %s6100_s14, %s4483_s21  ;;  %p4487_p7 = scmp.lt.u32.totalorder %s4483_s21, %s6100_s14 }
  0xfb   :  { %p4489_p8 = pnand %p4487_p7, %p4484_p6 }
  0xfd   :  { %4492 = shalt.err (!%p4489_p8)
}
  0xfe   :  { %s4493_s12 = scalar_lea.vmem %s173_s15, 32  ;;  %p4498_p10 = scmp.lt.s32.totalorder %s173_s15, %s173_s15 }
  0xff   :  { %p4494_p9 = scmp.ne.s32.totalorder %s173_s15, %s4493_s12  ;;  %p4499_p11 = scmp.lt.s32.totalorder %s4493_s12, %s4493_s12 }
 0x101   :  { %p4500_p12 = por %p4499_p11, %p4498_p10 }
 0x103   :  { %p4501_p13 = pnand %p4500_p12, %p4494_p9 }
 0x105   :  { %4504 = shalt.err (!%p4501_p13)
}
 0x106   :  { %175 = dma.hbm_to_vmem [thread:$0]  %s6100_s14, 32, %s173_s15, [#allocation21]  }
 0x107   :  { %s4505_s18 = scalar_lea.hbm %s6102_s16, 16 }
 0x108   :  { %p4506_p0 = scmp.ne.s32.totalorder %s6102_s16, %s4505_s18  ;;  %p4509_p1 = scmp.lt.u32.totalorder %s4505_s18, %s6102_s16 }
 0x10a   :  { %p4511_p2 = pnand %p4509_p1, %p4506_p0 }
 0x10c   :  { %4514 = shalt.err (!%p4511_p2)
}
 0x10d   :  { %s4515_s1 = scalar_lea.vmem %s195_s26, 16  ;;  %s4519_s4 = scalar_lea.vmem %s195_s26, 32 }
 0x10e   :  { %p4516_p3 = scmp.ne.s32.totalorder %s195_s26, %s4515_s1  ;;  %p4520_p4 = scmp.lt.s32.totalorder %s195_s26, %s195_s26 }
 0x10f   :  { %p4521_p5 = scmp.lt.s32.totalorder %s4519_s4, %s4515_s1 }
 0x111   :  { %p4522_p6 = por %p4521_p5, %p4520_p4 }
 0x113   :  { %p4523_p7 = pnand %p4522_p6, %p4516_p3 }
 0x115   :  { %4526 = shalt.err (!%p4523_p7)
}
 0x116   :  { %197 = dma.hbm_to_vmem [thread:$0]  %s6102_s16, 16, %s195_s26, [#allocation24]  }
 0x117   :  { %4549 = dma.done.wait [#allocation3], 512  }
 0x118   :  { %4550 = vsyncadd [#allocation3], 4294966784 }
 0x119   :  { %4551 = dma.done.wait [#allocation6], 272  }
 0x11a   :  { %4552 = vsyncadd [#allocation6], 4294967024 }
 0x11b   :  { %4553 = dma.done.wait [#allocation9], 544  }
 0x11c   :  { %4554 = vsyncadd [#allocation9], 4294966752 }
 0x11d   :  { %4555 = dma.done.wait [#allocation12], 272  }
 0x11e   :  { %4556 = vsyncadd [#allocation12], 4294967024 }
 0x11f   :  { %4557 = dma.done.wait [#allocation15], 32  }
 0x120   :  { %4558 = vsyncadd [#allocation15], 4294967264 }
 0x121   :  { %4559 = dma.done.wait [#allocation18], 272  }
 0x122   :  { %4560 = vsyncadd [#allocation18], 4294967024 }
 0x123   :  { %4561 = dma.done.wait [#allocation21], 64  }
 0x124   :  { %4562 = vsyncadd [#allocation21], 4294967232 }
 0x125   :  { %4563 = dma.done.wait [#allocation24], 272  }
 0x126   :  { %4564 = vsyncadd [#allocation24], 4294967024  ;;  %v4024_v0 = vld [vmem:[%s6091_s5] sm:$0xff]   ;;  %v4026_v2 = vld [vmem:[%s6091_s5 + $0x8] sm:$0xff]   ;;  %vm311_vm0 = vcmask 261120   ;;  %v6110_v33 = vmov 0  }
 0x127   :  { %v4890_v1 = vld [vmem:[#allocation5] sm:$0xff]   ;;  %3747 = vmatprep.subr.bf16.mxu0 %v4024_v0  ;;  %v4896_v3 = vld [vmem:[#allocation5 + $0x8] sm:$0xff]   ;;  %v248_v6 = vld [vmem:[#allocation2 + $0x10] sm:$0xff]  ;;  %vm490_vm1 = vcmask 1041409   ;;  %vm492_vm2 = vcmask 1042434   ;;  %vm494_vm3 = vcmask 1043459  }
 0x128   :  { %3755 = vmatprep.subr.bf16.mxu1 %v4890_v1  ;;  %3748 = vmatpush3.bf16.msra.mxu0 %v4024_v0  ;;  %v246_v4 = vld [vmem:[#allocation2] sm:$0xff]  ;;  %v247_v5 = vld [vmem:[#allocation2 + $0x8] sm:$0xff]  ;;  %v249_v10 = vld [vmem:[#allocation2 + $0x18] sm:$0xff]  ;;  %v381_v11 = vsel %vm311_vm0, %v248_v6, 0.0  ;;  %vm581_vm4 = vcmask 1046528   ;;  %s4589_s30 = smov 32  }
 0x129   :  { %3756 = vmatpush3.bf16.msra.mxu1 %v4890_v1  ;;  %3749 = vmatprep.subr.bf16.mxu0 %v4026_v2  ;;  %v291_v7 = vpack.c.bf16 %v247_v5, %v246_v4  ;;  %v367_v8 = vsel %vm311_vm0, %v246_v4, 0.0  ;;  %v374_v9 = vsel %vm311_vm0, %v247_v5, 0.0  ;;  %v292_v14 = vpack.c.bf16 %v249_v10, %v248_v6  ;;  %v4028_v17 = vld [vmem:[#allocation8] ss:$8 sps:$4 sm:$0xff]   ;;  %v4030_v18 = vld [vmem:[#allocation8 + $0x4] ss:$8 sps:$4 sm:$0xff]  }
 0x12a   :  { %3757 = vmatprep.subr.bf16.mxu1 %v4896_v3  ;;  %v368_v12 = vrot.slane %v367_v8, 4  ;;  %v375_v13 = vrot.slane %v374_v9, 4  ;;  %v382_v15 = vrot.slane %v381_v11, 4  ;;  %v388_v16 = vsel %vm311_vm0, %v249_v10, 0.0  ;;  %v4033_v23 = vld [vmem:[#allocation8 + $0x14] ss:$8 sps:$4 sm:$0xff]  }
 0x12b   :  { %3751 = vmatprep.mubr.msk.bf16.mxu0 %vm311_vm0, %v291_v7  ;;  %3759 = vmatprep.mubr.msk.bf16.mxu1 %vm311_vm0, %v291_v7  ;;  %v389_v22 = vrot.slane %v388_v16, 4  ;;  %v4031_v24 = vld [vmem:[#allocation8 + $0x10] ss:$8 sps:$4 sm:$0xff]   ;;  %v289_v62 = vld [vmem:[%s6103_s17 + $0x10] sm:$0xff]  ;;  %v290_v63 = vld [vmem:[%s6103_s17 + $0x18] sm:$0xff]  ;;  %s6129_s12 = sld [smem:[#allocation43_spill]] }
 0x12c   :  { %3750 = vmatpush3.bf16.msra.mxu0 %v4026_v2  ;;  %v369_v19 = vadd.f32 %v368_v12, %v367_v8  ;;  %v376_v20 = vadd.f32 %v375_v13, %v374_v9  ;;  %v383_v21 = vadd.f32 %v382_v15, %v381_v11  ;;  %v287_v59 = vld [vmem:[%s6103_s17] sm:$0xff]  ;;  %v288_v60 = vld [vmem:[%s6103_s17 + $0x8] sm:$0xff]  ;;  %v4930_v0 = vpack.c.bf16 %v290_v63, %v289_v62  ;;  %v3550_v2 = vld [vmem:[#allocation7] ss:$0 sm:$0xff]  ;;  %s4587_s17 = smov 96  }
 0x12d   :  { %3758 = vmatpush3.bf16.msra.mxu1 %v4896_v3  ;;  %520 = vmatprep.subr.bf16.mxu0 %v4030_v18  ;;  %v390_v28 = vadd.f32 %v389_v22, %v388_v16  ;;  %v4920_v61 = vpack.c.bf16 %v288_v60, %v287_v59  ;;  %vm4591_vm5 = vmmov 0   ;;  %vm1957_vm6 = vcmask 257024  }
 0x12e   :  { %v370_v25 = vrot.slane %v369_v19, 2  ;;  %v377_v26 = vrot.slane %v376_v20, 2  ;;  %v384_v27 = vrot.slane %v383_v21, 2 }
 0x12f   :  { %3752 = vmatmul.mubr.msk.bf16.vlgmr.msra.gmra.mrb[0].mxu0 %vm311_vm0, %v292_v14  ;;  %v391_v32 = vrot.slane %v390_v28, 2  ;;  %3954 = vmatprep.subr.bf16.mxu1 %v4920_v61 }
 0x130   :  { %3760 = vmatmul.mubr.msk.bf16.vlgmr.msra.gmra.mrb[0].mxu1 %vm311_vm0, %v292_v14  ;;  %521 = vmatpush1.bf16.msra.mxu0 %v4028_v17  ;;  %v371_v29 = vadd.f32 %v370_v25, %v369_v19  ;;  %v378_v30 = vadd.f32 %v377_v26, %v376_v20  ;;  %v385_v31 = vadd.f32 %v384_v27, %v383_v21  ;;  %v472_v26 = vlaneseq }
 0x131   :  { %522 = vmatprep.subr.bf16.mxu0 %v4033_v23  ;;  %552 = vmatprep.mubr.bf16.mxu0 %v6110_v33  ;;  %v392_v37 = vadd.f32 %v391_v32, %v390_v28  ;;  %v259_v32 = vld [vmem:[#allocation10] sm:$0x3] }
 0x132   :  { %v372_v34 = vrot.slane %v371_v29, 1  ;;  %v379_v35 = vrot.slane %v378_v30, 1  ;;  %v386_v36 = vrot.slane %v385_v31, 1  ;;  %3956 = vmatpush3.bf16.msra.mxu1 %v4920_v61 }
 0x133   :  { %v393_v41 = vrot.slane %v392_v37, 1  ;;  %3958 = vmatprep.subr.bf16.mxu1 %v4930_v0 }
 0x134   :  { %523 = vmatpush1.bf16.msra.mxu0 %v4031_v24  ;;  %v373_v38 = vadd.f32 %v372_v34, %v371_v29  ;;  %v380_v39 = vadd.f32 %v379_v35, %v378_v30  ;;  %v387_v40 = vadd.f32 %v386_v36, %v385_v31  ;;  %v4963_v29 = vshrl.u32 %v472_v26, 7 }
 0x135   :  { %v394_v44 = vadd.f32 %v393_v41, %v392_v37  ;;  %v4588_v30 = vmov 1966171168  }
 0x136   :  { %v396_v42 = vmul.f32 0.125, %v373_v38  ;;  %v397_v43 = vmul.f32 0.125, %v380_v39  ;;  %v398_v45 = vmul.f32 0.125, %v387_v40  ;;  %3960 = vmatpush3.bf16.msra.mxu1 %v4930_v0  ;;  %v604_v31 = vunpack.c.l.s4 %v4588_v30 }
 0x137   :  { %v399_v48 = vmul.f32 0.125, %v394_v44  ;;  %3850 = vmatprep.subr.bf16.mxu1 %v4890_v1  ;;  %v4969_v34 = vsub.s32 0, %v4963_v29 }
 0x138   :  { %v467_v46 = vpack.c.bf16 %v396_v42, %v396_v42  ;;  %v468_v47 = vpack.c.bf16 %v397_v43, %v397_v43  ;;  %v469_v49 = vpack.c.bf16 %v398_v45, %v398_v45  ;;  %v605_v36 = vunpack.c.0.s8 %v604_v31 }
 0x139   :  { %v470_v52 = vpack.c.bf16 %v399_v48, %v399_v48  ;;  %v4974_v35 = vrot.slane %v259_v32, %v4969_v34  ;;  %v3545_v48 = vld [vmem:[#allocation11] ss:$0 sm:$0xff] }
 0x13a   :  { %v486_v50 = vunpack.c.l.b16 %v467_v46  ;;  %v487_v51 = vunpack.c.l.b16 %v468_v47  ;;  %v488_v53 = vunpack.c.l.b16 %v469_v49  ;;  %v4986_v40 = vsub.s32 %v605_v36, %v4963_v29 }
 0x13b   :  { %v489_v55 = vunpack.c.l.b16 %v470_v52  ;;  %6127 = vst [vmem:[#allocation36_spill] sm:$0xff] %v4974_v35 }
 0x13c   :  { %v491_v54 = vsel %vm490_vm1, %v487_v51, %v486_v50 }
 0x13d   :  { %v493_v56 = vsel %vm492_vm2, %v488_v53, %v491_v54 }
 0x13e   :  { %v495_v57 = vsel %vm494_vm3, %v489_v55, %v493_v56 }
 0x13f   :  { %v496_v58 = vpack.c.b16 %v495_v57, %v495_v57 }
 0x141   :  { %3559 = vmatmul.mubr.msk.bf16.vlgmr.msra.gmra.mrb[4].mxu0 %vm311_vm0, %v496_v58 }
 0x202   :  { %v4934_v4 = vpop.f32.mrb[0].mxu0 }
 0x203   :  { %v3761_v5 = vpop.f32.mrb[0].mxu1  ;;  %v352_v6 = vpop.f32.mrb[1].mxu0  ;;  %v5014_v54 = vadd.f32 %v4934_v4, %v3545_v48 }
 0x204   :  { %v4937_v7 = vadd.f32 %v3761_v5, %v3550_v2  ;;  %v452_v8 = vpop.f32.mrb[1].mxu1  ;;  %v3754_v9 = vpop.f32.mrb[2].mxu0  ;;  %v5004_v51 = vadd.f32 %v3545_v48, %v352_v6 }
 0x205   :  { %v4939_v10 = vadd.f32 %v3550_v2, %v452_v8  ;;  %v3762_v11 = vpop.f32.mrb[2].mxu1  ;;  %v355_v12 = vpop.f32.mrb[3].mxu0  ;;  %v5010_v52 = vadd.f32 %v3754_v9, %v3545_v48 }
 0x206   :  { %v4941_v13 = vadd.f32 %v3762_v11, %v3550_v2  ;;  %v455_v14 = vpop.f32.mrb[3].mxu1  ;;  %v567_v15 = vrot.slane %v4937_v7, 1  ;;  %v575_v16 = vrot.slane %v4937_v7, 2  ;;  %v597_v47 = vrot.slane %v4937_v7, %v4969_v34 }
 0x207   :  { %v4945_v17 = vadd.f32 %v3550_v2, %v455_v14  ;;  %v565_v18 = vrot.slane %v4939_v10, 1  ;;  %v573_v19 = vrot.slane %v4939_v10, 2  ;;  %v589_v43 = vrot.slane %v4939_v10, %v4969_v34  ;;  %6128 = vst [vmem:[#allocation37_spill] sm:$0xff] %v5010_v52 }
 0x208   :  { %v4950_v20 = vsel %vm581_vm4, %v567_v15, %v575_v16  ;;  %v568_v21 = vrot.slane %v4941_v13, 1  ;;  %v576_v22 = vrot.slane %v4941_v13, 2  ;;  %v601_v46 = vrot.slane %v4941_v13, %v4969_v34 }
 0x209   :  { %655 = vrot.lane.b32.xlu1 %v4950_v20, %s4587_s17  ;;  %v582_v23 = vsel %vm581_vm4, %v565_v18, %v573_v19  ;;  %v566_v24 = vrot.slane %v4945_v17, 1  ;;  %v574_v25 = vrot.slane %v4945_v17, 2  ;;  %v593_v41 = vrot.slane %v4945_v17, %v4969_v34 }
 0x20a   :  { %651 = vrot.lane.b32.xlu0 %v582_v23, %s4587_s17  ;;  %v585_v27 = vsel %vm581_vm4, %v568_v21, %v576_v22  ;;  %v5002_v49 = vadd.f32 %v3545_v48, %v355_v12  ;;  %v703_v31 = vmul.f32 %v4939_v10, %v5004_v51 }
 0x20b   :  { %v583_v28 = vsel %vm581_vm4, %v566_v24, %v574_v25 }
 0x20d   :  { %657 = vrot.lane.b32.xlu1 %v585_v27, %s4587_s17 }
 0x20e   :  { %653 = vrot.lane.b32.xlu0 %v583_v28, %s4587_s17 }
 0x211   :  { %669 = vrot.lane.b32.xlu1 %v4945_v17, %s4587_s17 }
 0x212   :  { %667 = vrot.lane.b32.xlu0 %v4939_v10, %s4587_s17 }
 0x214   :  { %v554_v37 = vpop.f32.mrb[4].mxu0 }
 0x215   :  { %673 = vrot.lane.b32.xlu1 %v4941_v13, %s4587_s17  ;;  %v4980_v38 = vpop.f32.mrb[5].mxu0  ;;  %v4983_v39 = vadd.f32 %v554_v37, %v4974_v35  ;;  %v704_v37 = vmul.f32 %v4945_v17, %v5002_v49 }
 0x216   :  { %671 = vrot.lane.b32.xlu0 %v4937_v7, %s4587_s17  ;;  %v558_v42 = vpop.f32.mrb[6].mxu0 }
 0x217   :  { %v559_v44 = vpop.f32.mrb[7].mxu0  ;;  %v609_v45 = vrot.slane %v4983_v39, %v4986_v40 }
 0x219   :  { %689 = vrot.lane.b32.xlu1 %v593_v41, %s4587_s17  ;;  %v610_v50 = vcombine.high %v609_v45, %v609_v45  ;;  %v617_v55 = vrot.slane %v609_v45, %v4986_v40 }
 0x21a   :  { %687 = vrot.lane.b32.xlu0 %v589_v43, %s4587_s17 }
 0x21b   :  { %v624_v53 = vrot.slane %v610_v50, %v4986_v40  ;;  %v5025_v58 = vrot.slane %v617_v55, %v4969_v34  ;;  %v625_v59 = vcombine.high %v617_v55, %v617_v55 }
 0x21d   :  { %693 = vrot.lane.b32.xlu1 %v601_v46, %s4587_s17  ;;  %v5022_v56 = vrot.slane %v624_v53, %v4969_v34  ;;  %v626_v57 = vcombine.high %v624_v53, %v624_v53  ;;  %v5035_v62 = vrot.slane %v625_v59, %v4969_v34  ;;  %v707_v45 = vmul.f32 %v5025_v58, %v4939_v10 }
 0x21e   :  { %691 = vrot.lane.b32.xlu0 %v597_v47, %s4587_s17 }
 0x21f   :  { %v5032_v60 = vrot.slane %v626_v57, %v4969_v34 }
 0x221   :  { %1098 = vrot.lane.b32.xlu1 %v5002_v49, %s4589_s30 }
 0x222   :  { %1096 = vrot.lane.b32.xlu0 %v5004_v51, %s4589_s30 }
 0x225   :  { %1102 = vrot.lane.b32.xlu1 %v5010_v52, %s4589_s30 }
 0x226   :  { %1100 = vrot.lane.b32.xlu0 %v5014_v54, %s4589_s30 }
 0x229   :  { %1106 = vrot.lane.b32.xlu1 %v5022_v56, %s4589_s30 }
 0x22a   :  { %1104 = vrot.lane.b32.xlu0 %v5025_v58, %s4589_s30 }
 0x22d   :  { %1110 = vrot.lane.b32.xlu1 %v5032_v60, %s4589_s30 }
 0x22e   :  { %1108 = vrot.lane.b32.xlu0 %v5035_v62, %s4589_s30 }
 0x231   :  { %1114 = vrot.lane.b32.xlu1 %v583_v28, %s4568_s23 }
 0x232   :  { %1112 = vrot.lane.b32.xlu0 %v582_v23, %s4568_s23 }
 0x235   :  { %1122 = vrot.lane.b32.xlu1 %v4945_v17, %s4568_s23 }
 0x236   :  { %1120 = vrot.lane.b32.xlu0 %v4939_v10, %s4568_s23 }
 0x239   :  { %1118 = vrot.lane.b32.xlu1 %v585_v27, %s4568_s23 }
 0x23a   :  { %1116 = vrot.lane.b32.xlu0 %v4950_v20, %s4568_s23 }
 0x23d   :  { %1126 = vrot.lane.b32.xlu1 %v4941_v13, %s4568_s23 }
 0x23e   :  { %1124 = vrot.lane.b32.xlu0 %v4937_v7, %s4568_s23 }
 0x241   :  { %1130 = vrot.lane.b32.xlu1 %v593_v41, %s4568_s23  ;;  %v705_v41 = vmul.f32 %v4937_v7, %v5014_v54 }
 0x242   :  { %1128 = vrot.lane.b32.xlu0 %v589_v43, %s4568_s23  ;;  %v706_v43 = vmul.f32 %v4941_v13, %v5010_v52 }
 0x245   :  { %1134 = vrot.lane.b32.xlu1 %v601_v46, %s4568_s23  ;;  %v708_v46 = vmul.f32 %v5022_v56, %v4945_v17 }
 0x246   :  { %1132 = vrot.lane.b32.xlu0 %v597_v47, %s4568_s23  ;;  %v709_v47 = vmul.f32 %v5035_v62, %v4937_v7 }
 0x27b   :  { %v656_v63 = vpop.permute.xlu1 %655 }
 0x27c   :  { %v652_v2 = vpop.permute.xlu0 %651  ;;  %v665_v9 = vmul.f32 %v656_v63, %v4937_v7 }
 0x27d   :  { %v663_v4 = vmul.f32 %v652_v2, %v4939_v10 }
 0x27f   :  { %v658_v5 = vpop.permute.xlu1 %657  ;;  %3771 = vmatprep.mubr.msk.f32.mxu1 %vm311_vm0, %v663_v4 }
 0x280   :  { %v654_v6 = vpop.permute.xlu0 %653  ;;  %v666_v14 = vmul.f32 %v658_v5, %v4941_v13 }
 0x281   :  { %v664_v8 = vmul.f32 %v654_v6, %v4945_v17 }
 0x283   :  { %v670_v11 = vpop.permute.xlu1 %669  ;;  %3772 = vmatmul.mubr.msk.f32.vlgmr.msra.gmra.mrb[4].mxu1 %vm311_vm0, %v664_v8 }
 0x284   :  { %3774 = vmatprep.mubr.msk.f32.mxu1 %vm311_vm0, %v665_v9  ;;  %v668_v12 = vpop.permute.xlu0 %667  ;;  %3851 = vmatpush3.bf16.msra.mxu1 %v4890_v1  ;;  %v680_v19 = vmul.f32 %v670_v11, %v4945_v17 }
 0x285   :  { %v679_v15 = vmul.f32 %v668_v12, %v4939_v10  ;;  %3852 = vmatprep.subr.bf16.mxu1 %v4896_v3 }
 0x287   :  { %v674_v16 = vpop.permute.xlu1 %673  ;;  %3775 = vmatmul.mubr.msk.f32.gmra.mrb[6].mxu1 %vm311_vm0, %v666_v14 }
 0x288   :  { %3777 = vmatprep.mubr.msk.f32.mxu1 %vm311_vm0, %v679_v15  ;;  %v672_v18 = vpop.permute.xlu0 %671  ;;  %3853 = vmatpush3.bf16.msra.mxu1 %v4896_v3  ;;  %v682_v22 = vmul.f32 %v674_v16, %v4941_v13 }
 0x289   :  { %v681_v20 = vmul.f32 %v672_v18, %v4937_v7  ;;  %3976 = vmatprep.subr.bf16.mxu1 %v4920_v61 }
 0x28b   :  { %v690_v1 = vpop.permute.xlu1 %689  ;;  %3778 = vmatmul.mubr.msk.f32.gmra.mrb[8].mxu1 %vm311_vm0, %v680_v19 }
 0x28c   :  { %3780 = vmatprep.mubr.msk.f32.mxu1 %vm311_vm0, %v681_v20  ;;  %v688_v21 = vpop.permute.xlu0 %687  ;;  %v700_v25 = vmul.f32 %v690_v1, %v4945_v17  ;;  %v4034_v17 = vld [vmem:[%s6129_s12] sm:$0xff]  }
 0x28d   :  { %v699_v23 = vmul.f32 %v688_v21, %v4939_v10  ;;  %v710_v10 = vmul.f32 %v5032_v60, %v4941_v13  ;;  %3801 = vmatprep.subr.bf16.mxu0 %v4034_v17 }
 0x28e   :  { %3802 = vmatpush3.bf16.msra.mxu0 %v4034_v17 }
 0x28f   :  { %v694_v24 = vpop.permute.xlu1 %693  ;;  %3781 = vmatmul.mubr.msk.f32.gmra.mrb[10].mxu1 %vm311_vm0, %v682_v22 }
 0x290   :  { %3783 = vmatprep.mubr.msk.f32.mxu1 %vm311_vm0, %v699_v23  ;;  %v692_v3 = vpop.permute.xlu0 %691  ;;  %v702_v30 = vmul.f32 %v694_v24, %v4941_v13 }
 0x291   :  { %v701_v26 = vmul.f32 %v692_v3, %v4937_v7  ;;  %v4035_v7 = vld [vmem:[%s6129_s12 + $0x8] sm:$0xff]  }
 0x292   :  { %3803 = vmatprep.subr.bf16.mxu0 %v4035_v7 }
 0x293   :  { %3784 = vmatmul.mubr.msk.f32.gmra.mrb[12].mxu1 %vm311_vm0, %v700_v25  ;;  %v1099_v27 = vpop.permute.xlu1 %1098  ;;  %3804 = vmatpush3.bf16.msra.mxu0 %v4035_v7 }
 0x294   :  { %3786 = vmatprep.mubr.msk.f32.mxu1 %vm311_vm0, %v701_v26  ;;  %v1097_v28 = vpop.permute.xlu0 %1096 }
 0x297   :  { %3787 = vmatmul.mubr.msk.f32.gmra.mrb[14].mxu1 %vm311_vm0, %v702_v30  ;;  %v1103_v32 = vpop.permute.xlu1 %1102 }
 0x298   :  { %v1101_v36 = vpop.permute.xlu0 %1100  ;;  %3789 = vmatprep.mubr.msk.f32.mxu1 %vm311_vm0, %v703_v31  ;;  %1142 = vrot.lane.b32.xlu1 %v1103_v32, %s4568_s23 }
 0x299   :  { %1140 = vrot.lane.b32.xlu0 %v1101_v36, %s4568_s23 }
 0x29b   :  { %3790 = vmatmul.mubr.msk.f32.gmra.mrb[16].mxu1 %vm311_vm0, %v704_v37  ;;  %v1107_v42 = vpop.permute.xlu1 %1106 }
 0x29c   :  { %3792 = vmatprep.mubr.msk.f32.mxu1 %vm311_vm0, %v705_v41  ;;  %1138 = vrot.lane.b32.xlu1 %v1099_v27, %s4568_s23  ;;  %v1105_v44 = vpop.permute.xlu0 %1104 }
 0x29d   :  { %1136 = vrot.lane.b32.xlu0 %v1097_v28, %s4568_s23 }
 0x29f   :  { %3793 = vmatmul.mubr.msk.f32.gmra.mrb[18].mxu1 %vm311_vm0, %v706_v43  ;;  %v1111_v48 = vpop.permute.xlu1 %1110 }
 0x2a0   :  { %3795 = vmatprep.mubr.msk.f32.mxu1 %vm311_vm0, %v707_v45  ;;  %1146 = vrot.lane.b32.xlu1 %v1107_v42, %s4568_s23  ;;  %v1109_v50 = vpop.permute.xlu0 %1108 }
 0x2a1   :  { %1144 = vrot.lane.b32.xlu0 %v1105_v44, %s4568_s23 }
 0x2a3   :  { %3796 = vmatmul.mubr.msk.f32.gmra.mrb[20].mxu1 %vm311_vm0, %v708_v46 }
 0x2a4   :  { %3798 = vmatprep.mubr.msk.f32.mxu1 %vm311_vm0, %v709_v47  ;;  %1150 = vrot.lane.b32.xlu1 %v1111_v48, %s4568_s23 }
 0x2a5   :  { %1148 = vrot.lane.b32.xlu0 %v1109_v50, %s4568_s23  ;;  %v5173_v50 = vpop.permute.xlu1 %1114 }
 0x2a7   :  { %3799 = vmatmul.mubr.msk.f32.gmra.mrb[22].mxu1 %vm311_vm0, %v710_v10 }
 0x356   :  { %v5124_v53 = vpop.f32.mrb[4].mxu1 }
 0x357   :  { %v5126_v55 = vpop.f32.mrb[5].mxu1  ;;  %v945_v63 = vsel %vm311_vm0, %v5124_v53, -inf }
 0x358   :  { %v936_v5 = vsel %vm311_vm0, %v5126_v55, -inf }
 0x35a   :  { %v5128_v13 = vpop.f32.mrb[6].mxu1 }
 0x35b   :  { %v5130_v57 = vpop.f32.mrb[7].mxu1  ;;  %v963_v12 = vsel %vm311_vm0, %v5128_v13, -inf }
 0x35c   :  { %v954_v16 = vsel %vm311_vm0, %v5130_v57, -inf }
 0x35e   :  { %v3779_v59 = vpop.f32.mrb[8].mxu1 }
 0x35f   :  { %v946_v2 = vsel %vm311_vm0, %v3779_v59, -inf  ;;  %v5135_v4 = vpop.f32.mrb[9].mxu1 }
 0x360   :  { %v947_v6 = vmax.f32 %v945_v63, %v946_v2  ;;  %v937_v8 = vsel %vm311_vm0, %v5135_v4, -inf }
 0x361   :  { %v938_v9 = vmax.f32 %v936_v5, %v937_v8  ;;  %v5177_v8 = vpop.permute.xlu0 %1112 }
 0x362   :  { %v5141_v11 = vpop.f32.mrb[10].mxu1 }
 0x363   :  { %v964_v14 = vsel %vm311_vm0, %v5141_v11, -inf  ;;  %v5147_v15 = vpop.f32.mrb[11].mxu1 }
 0x364   :  { %v965_v18 = vmax.f32 %v963_v12, %v964_v14  ;;  %v955_v19 = vsel %vm311_vm0, %v5147_v15, -inf }
 0x365   :  { %v956_v20 = vmax.f32 %v954_v16, %v955_v19  ;;  %v5180_v19 = vpop.permute.xlu1 %1122 }
 0x366   :  { %v3785_v1 = vpop.f32.mrb[12].mxu1 }
 0x367   :  { %v948_v21 = vsel %vm311_vm0, %v3785_v1, -inf  ;;  %v877_v22 = vpop.f32.mrb[13].mxu1 }
 0x368   :  { %v949_v23 = vmax.f32 %v947_v6, %v948_v21  ;;  %v939_v24 = vsel %vm311_vm0, %v877_v22, -inf }
 0x369   :  { %v940_v3 = vmax.f32 %v938_v9, %v939_v24 }
 0x36a   :  { %v5155_v25 = vpop.f32.mrb[14].mxu1 }
 0x36b   :  { %v966_v26 = vsel %vm311_vm0, %v5155_v25, -inf  ;;  %v5159_v27 = vpop.f32.mrb[15].mxu1 }
 0x36c   :  { %v967_v28 = vmax.f32 %v965_v18, %v966_v26  ;;  %v957_v30 = vsel %vm311_vm0, %v5159_v27, -inf }
 0x36d   :  { %v958_v31 = vmax.f32 %v956_v20, %v957_v30 }
 0x36e   :  { %v3791_v32 = vpop.f32.mrb[16].mxu1 }
 0x36f   :  { %v950_v36 = vsel %vm311_vm0, %v3791_v32, -inf  ;;  %v897_v37 = vpop.f32.mrb[17].mxu1 }
 0x370   :  { %v951_v41 = vmax.f32 %v949_v23, %v950_v36  ;;  %v941_v42 = vsel %vm311_vm0, %v897_v37, -inf }
 0x371   :  { %v942_v43 = vmax.f32 %v940_v3, %v941_v42 }
 0x372   :  { %v5165_v44 = vpop.f32.mrb[18].mxu1 }
 0x373   :  { %v968_v45 = vsel %vm311_vm0, %v5165_v44, -inf  ;;  %v5169_v46 = vpop.f32.mrb[19].mxu1 }
 0x374   :  { %v969_v47 = vmax.f32 %v967_v28, %v968_v45  ;;  %v959_v48 = vsel %vm311_vm0, %v5169_v46, -inf }
 0x375   :  { %v960_v10 = vmax.f32 %v958_v31, %v959_v48 }
 0x376   :  { %v3797_v17 = vpop.f32.mrb[20].mxu1 }
 0x377   :  { %v952_v7 = vsel %vm311_vm0, %v3797_v17, -inf  ;;  %v917_v63 = vpop.f32.mrb[21].mxu1 }
 0x378   :  { %v953_v2 = vmax.f32 %v951_v41, %v952_v7  ;;  %v943_v5 = vsel %vm311_vm0, %v917_v63, -inf  ;;  %v5189_v41 = vpop.permute.xlu0 %1120 }
 0x379   :  { %v944_v6 = vmax.f32 %v942_v43, %v943_v5  ;;  %v5191_v43 = vpop.permute.xlu1 %1118 }
 0x37a   :  { %v973_v9 = vsub.f32 %v5124_v53, %v953_v2  ;;  %v977_v12 = vsub.f32 %v3779_v59, %v953_v2  ;;  %v981_v14 = vsub.f32 %v3785_v1, %v953_v2  ;;  %v985_v16 = vsub.f32 %v3791_v32, %v953_v2  ;;  %v3800_v18 = vpop.f32.mrb[22].mxu1 }
 0x37b   :  { %v989_v20 = vsub.f32 %v3797_v17, %v953_v2  ;;  %v972_v21 = vsub.f32 %v5126_v55, %v944_v6  ;;  %v976_v23 = vsub.f32 %v5135_v4, %v944_v6  ;;  %v980_v24 = vsub.f32 %v877_v22, %v944_v6  ;;  %v5184_v3 = vpop.f32.mrb[23].mxu1 }
 0x37c   :  { %v994_v26 = vmul.f32 1.442695, %v973_v9  ;;  %v1002_v28 = vmul.f32 1.442695, %v977_v12  ;;  %v1010_v30 = vmul.f32 1.442695, %v981_v14  ;;  %v984_v31 = vsub.f32 %v897_v37, %v944_v6  ;;  %v5199_v14 = vpop.permute.xlu0 %1116 }
 0x37d   :  { %v1018_v36 = vmul.f32 1.442695, %v985_v16  ;;  %v988_v53 = vsub.f32 %v917_v63, %v944_v6  ;;  %v1026_v59 = vmul.f32 1.442695, %v989_v20  ;;  %v992_v1 = vmul.f32 1.442695, %v972_v21 }
 0x37e   :  { %4042 = vpow2.f32 %v994_v26  ;;  %v970_v32 = vsel %vm311_vm0, %v3800_v18, -inf  ;;  %v961_v55 = vsel %vm311_vm0, %v5184_v3, -inf  ;;  %v1000_v4 = vmul.f32 1.442695, %v976_v23 }
 0x37f   :  { %4044 = vpow2.f32 %v1002_v28  ;;  %v971_v22 = vmax.f32 %v969_v47, %v970_v32  ;;  %v962_v42 = vmax.f32 %v960_v10, %v961_v55  ;;  %v1008_v37 = vmul.f32 1.442695, %v980_v24 }
 0x380   :  { %4046 = vpow2.f32 %v1010_v30  ;;  %v1016_v45 = vmul.f32 1.442695, %v984_v31  ;;  %v1024_v48 = vmul.f32 1.442695, %v988_v53  ;;  %v5220_v30 = vpop.permute.xlu0 %1124 }
 0x381   :  { %4048 = vpow2.f32 %v1018_v36  ;;  %v975_v17 = vsub.f32 %v5128_v13, %v971_v22  ;;  %v979_v7 = vsub.f32 %v5141_v11, %v971_v22  ;;  %v983_v63 = vsub.f32 %v5155_v25, %v971_v22 }
 0x382   :  { %4050 = vpow2.f32 %v1026_v59  ;;  %v987_v2 = vsub.f32 %v5165_v44, %v971_v22  ;;  %v991_v5 = vsub.f32 %v3800_v18, %v971_v22  ;;  %v974_v47 = vsub.f32 %v5130_v57, %v962_v42  ;;  %v5204_v44 = vpop.permute.xlu1 %1126 }
 0x383   :  { %4052 = vpow2.f32 %v992_v1  ;;  %v998_v10 = vmul.f32 1.442695, %v975_v17  ;;  %v1006_v6 = vmul.f32 1.442695, %v979_v7  ;;  %v1014_v9 = vmul.f32 1.442695, %v983_v63 }
 0x384   :  { %4054 = vpow2.f32 %v1000_v4  ;;  %v978_v12 = vsub.f32 %v5147_v15, %v962_v42  ;;  %v982_v13 = vsub.f32 %v5159_v27, %v962_v42  ;;  %v986_v11 = vsub.f32 %v5169_v46, %v962_v42 }
 0x385   :  { %4056 = vpow2.f32 %v1008_v37  ;;  %v990_v25 = vsub.f32 %v5184_v3, %v962_v42  ;;  %v1022_v57 = vmul.f32 1.442695, %v987_v2  ;;  %v1030_v18 = vmul.f32 1.442695, %v991_v5 }
 0x386   :  { %4058 = vpow2.f32 %v1016_v45  ;;  %v996_v21 = vmul.f32 1.442695, %v974_v47  ;;  %v1004_v23 = vmul.f32 1.442695, %v978_v12  ;;  %v1012_v26 = vmul.f32 1.442695, %v982_v13  ;;  %v5226_v59 = vpop.permute.xlu1 %1130 }
 0x387   :  { %4060 = vpow2.f32 %v1024_v48  ;;  %v1020_v36 = vmul.f32 1.442695, %v986_v11  ;;  %v1028_v22 = vmul.f32 1.442695, %v990_v25 }
 0x388   :  { %v5206_v16 = vpop.eup %4042  ;;  %4062 = vpow2.f32 %v998_v10  ;;  %v5248_v10 = vpop.permute.xlu0 %1128 }
 0x389   :  { %v5208_v20 = vpop.eup %4044  ;;  %v1041_v15 = vsel %vm311_vm0, %v5206_v16, 0.0  ;;  %4064 = vpow2.f32 %v1006_v6 }
 0x38a   :  { %v5212_v27 = vpop.eup %4046  ;;  %v1042_v46 = vsel %vm311_vm0, %v5208_v20, 0.0  ;;  %4066 = vpow2.f32 %v1014_v9  ;;  %v5252_v12 = vpop.permute.xlu1 %1134 }
 0x38b   :  { %v5216_v24 = vpop.eup %4048  ;;  %v1043_v3 = vadd.f32 %v1042_v46, %v1041_v15  ;;  %4068 = vpow2.f32 %v1022_v57  ;;  %v1044_v31 = vsel %vm311_vm0, %v5212_v27, 0.0 }
 0x38c   :  { %v5218_v28 = vpop.eup %4050  ;;  %4070 = vpow2.f32 %v1030_v18  ;;  %v1046_v55 = vsel %vm311_vm0, %v5216_v24, 0.0 }
 0x38d   :  { %v5224_v53 = vpop.eup %4052  ;;  %v1045_v1 = vadd.f32 %v1044_v31, %v1043_v3  ;;  %4072 = vpow2.f32 %v996_v21  ;;  %v1048_v17 = vsel %vm311_vm0, %v5218_v28, 0.0 }
 0x38e   :  { %v5228_v32 = vpop.eup %4054  ;;  %v1032_v4 = vsel %vm311_vm0, %v5224_v53, 0.0  ;;  %4074 = vpow2.f32 %v1004_v23 }
 0x38f   :  { %v5234_v42 = vpop.eup %4056  ;;  %v1047_v37 = vadd.f32 %v1046_v55, %v1045_v1  ;;  %v1033_v45 = vsel %vm311_vm0, %v5228_v32, 0.0  ;;  %4076 = vpow2.f32 %v1012_v26 }
 0x390   :  { %v5238_v48 = vpop.eup %4058  ;;  %v1034_v7 = vadd.f32 %v1033_v45, %v1032_v4  ;;  %4078 = vpow2.f32 %v1020_v36  ;;  %v1035_v5 = vsel %vm311_vm0, %v5234_v42, 0.0  ;;  %v5272_v36 = vpop.permute.xlu1 %1142 }
 0x391   :  { %v5242_v63 = vpop.eup %4060  ;;  %v1049_v2 = vadd.f32 %v1048_v17, %v1047_v37  ;;  %4080 = vpow2.f32 %v1028_v22  ;;  %v1037_v13 = vsel %vm311_vm0, %v5238_v48, 0.0  ;;  %v5276_v4 = vpop.permute.xlu0 %1132 }
 0x392   :  { %v5246_v47 = vpop.eup %4062  ;;  %v1036_v6 = vadd.f32 %v1035_v5, %v1034_v7  ;;  %v1039_v21 = vsel %vm311_vm0, %v5242_v63, 0.0 }
 0x393   :  { %v5250_v9 = vpop.eup %4064  ;;  %4082 = vrcp.f32 %v1049_v2  ;;  %v1059_v11 = vsel %vm311_vm0, %v5246_v47, 0.0 }
 0x394   :  { %v5258_v25 = vpop.eup %4066  ;;  %v1038_v57 = vadd.f32 %v1037_v13, %v1036_v6  ;;  %v1060_v18 = vsel %vm311_vm0, %v5250_v9, 0.0 }
 0x395   :  { %v5262_v15 = vpop.eup %4068  ;;  %v1061_v46 = vadd.f32 %v1060_v18, %v1059_v11  ;;  %v1062_v26 = vsel %vm311_vm0, %v5258_v25, 0.0  ;;  %v5294_v18 = vpop.permute.xlu0 %1140 }
 0x396   :  { %v5266_v23 = vpop.eup %4070  ;;  %v1040_v3 = vadd.f32 %v1039_v21, %v1038_v57  ;;  %v1064_v22 = vsel %vm311_vm0, %v5262_v15, 0.0 }
 0x397   :  { %v5270_v31 = vpop.eup %4072  ;;  %v1063_v1 = vadd.f32 %v1062_v26, %v1061_v46  ;;  %v1066_v5 = vsel %vm311_vm0, %v5266_v23, 0.0 }
 0x398   :  { %v5274_v55 = vpop.eup %4074  ;;  %4084 = vrcp.f32 %v1040_v3  ;;  %v1050_v37 = vsel %vm311_vm0, %v5270_v31, 0.0  ;;  %v5296_v3 = vpop.permute.xlu1 %1138 }
 0x399   :  { %v5282_v45 = vpop.eup %4076  ;;  %v1065_v17 = vadd.f32 %v1064_v22, %v1063_v1  ;;  %v1051_v7 = vsel %vm311_vm0, %v5274_v55, 0.0 }
 0x39a   :  { %v5286_v2 = vpop.eup %4078  ;;  %v1052_v6 = vadd.f32 %v1051_v7, %v1050_v37  ;;  %v1053_v11 = vsel %vm311_vm0, %v5282_v45, 0.0 }
 0x39b   :  { %v1067_v13 = vadd.f32 %v1066_v5, %v1065_v17  ;;  %v5292_v57 = vpop.eup %4080  ;;  %v1055_v26 = vsel %vm311_vm0, %v5286_v2, 0.0 }
 0x39c   :  { %v1054_v21 = vadd.f32 %v1053_v11, %v1052_v6  ;;  %v1057_v7 = vsel %vm311_vm0, %v5292_v57, 0.0  ;;  %v1147_v35 = vpop.permute.xlu1 %1146 }
 0x39d   :  { %v4083_v46 = vpop.eup %4082  ;;  %4086 = vrcp.f32 %v1067_v13 }
 0x39e   :  { %v1056_v1 = vadd.f32 %v1055_v26, %v1054_v21  ;;  %v1073_v22 = vmul.f32 %v4083_v46, %v5206_v16  ;;  %v1077_v37 = vmul.f32 %v4083_v46, %v5208_v20  ;;  %v1081_v17 = vmul.f32 %v4083_v46, %v5212_v27  ;;  %v5311_v26 = vpop.permute.xlu0 %1136 }
 0x39f   :  { %v1085_v5 = vmul.f32 %v4083_v46, %v5216_v24  ;;  %v1089_v6 = vmul.f32 %v4083_v46, %v5218_v28 }
 0x3a0   :  { %v1058_v11 = vadd.f32 %v1057_v7, %v1056_v1  ;;  %v1173_v13 = vmul.f32 %v5173_v50, %v1073_v22  ;;  %v1177_v33 = vmul.f32 %v5180_v19, %v1077_v37  ;;  %v1181_v21 = vmul.f32 %v5226_v59, %v1081_v17 }
 0x3a1   :  { %v1185_v16 = vmul.f32 %v5296_v3, %v1085_v5  ;;  %v1189_v27 = vmul.f32 %v1147_v35, %v1089_v6 }
 0x3a2   :  { %v4085_v20 = vpop.eup %4084  ;;  %4088 = vrcp.f32 %v1058_v11  ;;  %v1201_v52 = vsel %vm311_vm0, %v1173_v13, 0.0  ;;  %v1202_v24 = vsel %vm311_vm0, %v1177_v33, 0.0  ;;  %v1204_v17 = vsel %vm311_vm0, %v1181_v21, 0.0  ;;  %v1145_v33 = vpop.permute.xlu0 %1144 }
 0x3a3   :  { %v1072_v28 = vmul.f32 %v4085_v20, %v5224_v53  ;;  %v1076_v50 = vmul.f32 %v4085_v20, %v5228_v32  ;;  %v1080_v19 = vmul.f32 %v4085_v20, %v5234_v42  ;;  %v1084_v46 = vmul.f32 %v4085_v20, %v5238_v48 }
 0x3a4   :  { %v1088_v59 = vmul.f32 %v4085_v20, %v5242_v63  ;;  %v1203_v1 = vadd.f32 %v1202_v24, %v1201_v52  ;;  %v1206_v53 = vsel %vm311_vm0, %v1185_v16, 0.0  ;;  %v1208_v32 = vsel %vm311_vm0, %v1189_v27, 0.0 }
 0x3a5   :  { %v1172_v22 = vmul.f32 %v5177_v8, %v1072_v28  ;;  %v1176_v37 = vmul.f32 %v5189_v41, %v1076_v50  ;;  %v1180_v35 = vmul.f32 %v5248_v10, %v1080_v19  ;;  %v1184_v48 = vmul.f32 %v5311_v26, %v1084_v46 }
 0x3a6   :  { %v1205_v7 = vadd.f32 %v1204_v17, %v1203_v1  ;;  %v1188_v5 = vmul.f32 %v1145_v33, %v1088_v59  ;;  %v1151_v17 = vpop.permute.xlu1 %1150 }
 0x3a7   :  { %v4087_v42 = vpop.eup %4086  ;;  %v1192_v52 = vsel %vm311_vm0, %v1172_v22, 0.0  ;;  %v1193_v8 = vsel %vm311_vm0, %v1176_v37, 0.0  ;;  %v1195_v41 = vsel %vm311_vm0, %v1180_v35, 0.0  ;;  %v1197_v28 = vsel %vm311_vm0, %v1184_v48, 0.0 }
 0x3a8   :  { %v1194_v63 = vadd.f32 %v1193_v8, %v1192_v52  ;;  %v1207_v10 = vadd.f32 %v1206_v53, %v1205_v7  ;;  %v1075_v6 = vmul.f32 %v4087_v42, %v5246_v47  ;;  %v1079_v11 = vmul.f32 %v4087_v42, %v5250_v9 }
 0x3a9   :  { %v1083_v13 = vmul.f32 %v4087_v42, %v5258_v25  ;;  %v1087_v21 = vmul.f32 %v4087_v42, %v5262_v15  ;;  %v1091_v16 = vmul.f32 %v4087_v42, %v5266_v23  ;;  %v1199_v47 = vsel %vm311_vm0, %v1188_v5, 0.0 }
 0x3aa   :  { %v1196_v20 = vadd.f32 %v1195_v41, %v1194_v63  ;;  %v1209_v27 = vadd.f32 %v1208_v32, %v1207_v10  ;;  %v1175_v24 = vmul.f32 %v5191_v43, %v1075_v6  ;;  %v1179_v50 = vmul.f32 %v5204_v44, %v1079_v11  ;;  %v1149_v32 = vpop.permute.xlu0 %1148 }
 0x3ab   :  { %v1183_v9 = vmul.f32 %v5252_v12, %v1083_v13 }
 0x3ac   :  { %v4089_v19 = vpop.eup %4088  ;;  %v1198_v46 = vadd.f32 %v1197_v28, %v1196_v20  ;;  %v1219_v25 = vsel %vm311_vm0, %v1175_v24, 0.0  ;;  %v1220_v44 = vsel %vm311_vm0, %v1179_v50, 0.0 }
 0x3ad   :  { %v1074_v15 = vmul.f32 %v4089_v19, %v5270_v31  ;;  %v1078_v23 = vmul.f32 %v4089_v19, %v5274_v55  ;;  %v1082_v59 = vmul.f32 %v4089_v19, %v5282_v45  ;;  %v1086_v43 = vmul.f32 %v4089_v19, %v5286_v2 }
 0x3ae   :  { %v1200_v1 = vadd.f32 %v1199_v47, %v1198_v46  ;;  %v1090_v22 = vmul.f32 %v4089_v19, %v5292_v57  ;;  %v1187_v31 = vmul.f32 %v5272_v36, %v1087_v21  ;;  %v1191_v55 = vmul.f32 %v1151_v17, %v1091_v16  ;;  %v3580_v21 = vld [vmem:[#allocation16] ss:$0 sm:$0xff] }
 0x3af   :  { %v1174_v37 = vmul.f32 %v5199_v14, %v1074_v15  ;;  %v1178_v35 = vmul.f32 %v5220_v30, %v1078_v23  ;;  %v1182_v12 = vmul.f32 %v5276_v4, %v1082_v59  ;;  %v1221_v7 = vadd.f32 %v1220_v44, %v1219_v25 }
 0x3b0   :  { %v1228_v33 = vpack.c.bf16 %v1209_v27, %v1200_v1  ;;  %v1186_v45 = vmul.f32 %v5294_v18, %v1086_v43  ;;  %v1222_v53 = vsel %vm311_vm0, %v1183_v9, 0.0  ;;  %v1190_v30 = vmul.f32 %v1149_v32, %v1090_v22 }
 0x3b1   :  { %v1210_v2 = vsel %vm311_vm0, %v1174_v37, 0.0  ;;  %v1211_v57 = vsel %vm311_vm0, %v1178_v35, 0.0  ;;  %v1223_v42 = vadd.f32 %v1222_v53, %v1221_v7  ;;  %v1213_v4 = vsel %vm311_vm0, %v1182_v12, 0.0 }
 0x3b2   :  { %v1212_v14 = vadd.f32 %v1211_v57, %v1210_v2  ;;  %3805 = vmatprep.mubr.msk.bf16.mxu0 %vm311_vm0, %v1228_v33  ;;  %v1224_v48 = vsel %vm311_vm0, %v1187_v31, 0.0  ;;  %v1215_v8 = vsel %vm311_vm0, %v1186_v45, 0.0  ;;  %v1226_v63 = vsel %vm311_vm0, %v1191_v55, 0.0 }
 0x3b3   :  { %v1225_v52 = vadd.f32 %v1224_v48, %v1223_v42  ;;  %v1217_v6 = vsel %vm311_vm0, %v1190_v30, 0.0 }
 0x3b4   :  { %v1214_v5 = vadd.f32 %v1213_v4, %v1212_v14 }
 0x3b5   :  { %v1227_v10 = vadd.f32 %v1226_v63, %v1225_v52  ;;  %v4037_v52 = vld [vmem:[#allocation13 + $0x8] sm:$0xff]  }
 0x3b6   :  { %v1216_v41 = vadd.f32 %v1215_v8, %v1214_v5  ;;  %v5372_v5 = vld [vmem:[#allocation13] sm:$0xff]  }
 0x3b7   :  { %3809 = vmatprep.subr.bf16.mxu0 %v5372_v5 }
 0x3b8   :  { %v1218_v11 = vadd.f32 %v1217_v6, %v1216_v41 }
 0x3ba   :  { %v1229_v13 = vpack.c.bf16 %v1227_v10, %v1218_v11 }
 0x3bc   :  { %3806 = vmatmul.mubr.msk.bf16.vlgmr.msra.gmra.mrb[8].mxu0 %vm311_vm0, %v1229_v13 }
 0x3bd   :  { %3810 = vmatpush3.bf16.msra.mxu0 %v5372_v5 }
 0x3be   :  { %3811 = vmatprep.subr.bf16.mxu0 %v4037_v52 }
 0x3c1   :  { %3812 = vmatpush3.bf16.msra.mxu0 %v4037_v52 }
 0x48f   :  { %v3807_v16 = vpop.f32.mrb[8].mxu0 }
 0x490   :  { %v1288_v20 = vpop.f32.mrb[9].mxu0  ;;  %v1297_v27 = vadd.f32 %v3807_v16, %v3580_v21 }
 0x491   :  { %v1289_v24 = vadd.f32 %v3580_v21, %v1288_v20  ;;  %v3808_v28 = vpop.f32.mrb[10].mxu0 }
 0x492   :  { %v1291_v50 = vpop.f32.mrb[11].mxu0  ;;  %v1305_v47 = vmax.f32 %v1297_v27, 0.0  ;;  %v1300_v9 = vadd.f32 %v3808_v28, %v3580_v21 }
 0x493   :  { %v1303_v19 = vmax.f32 %v1289_v24, 0.0  ;;  %v1292_v46 = vadd.f32 %v3580_v21, %v1291_v50  ;;  %v280_v24 = vld [vmem:[#allocation20] sm:$0x3] }
 0x494   :  { %v1306_v59 = vmax.f32 %v1300_v9, 0.0  ;;  %v1313_v43 = vsel %vm311_vm0, %v1305_v47, 0.0  ;;  %v5377_v50 = vrot.slane %v280_v24, %v4969_v34 }
 0x495   :  { %v1304_v25 = vmax.f32 %v1292_v46, 0.0  ;;  %v1307_v15 = vsel %vm311_vm0, %v1303_v19, 0.0  ;;  %v5380_v46 = vsub.s32 1, %v4963_v29 }
 0x496   :  { %1308 = vadd.xlane.f32.xlu0 %v1307_v15  ;;  %v1316_v1 = vsel %vm311_vm0, %v1306_v59, 0.0 }
 0x497   :  { %v1310_v23 = vsel %vm311_vm0, %v1304_v25, 0.0 }
 0x498   :  { %1311 = vadd.xlane.f32.xlu1 %v1310_v23 }
 0x49a   :  { %1314 = vadd.xlane.f32.xlu0 %v1313_v43 }
 0x49e   :  { %1317 = vadd.xlane.f32.xlu0 %v1316_v1 }
 0x523   :  { %v1309_v22 = vpop.xlane.xlu0 %1308 }
 0x524   :  { %v1320_v44 = vmul.f32 0.03125, %v1309_v22 }
 0x525   :  { %v1312_v37 = vpop.xlane.xlu1 %1311 }
 0x526   :  { %v1324_v35 = vsub.f32 %v1303_v19, %v1320_v44  ;;  %v1321_v12 = vmul.f32 0.03125, %v1312_v37 }
 0x527   :  { %v1315_v17 = vpop.xlane.xlu0 %1314 }
 0x528   :  { %v1325_v31 = vsub.f32 %v1304_v25, %v1321_v12  ;;  %v1322_v33 = vmul.f32 0.03125, %v1315_v17  ;;  %v1328_v55 = vmul.f32 %v1324_v35, %v1324_v35  ;;  %v5383_v25 = vrot.slane %v280_v24, %v5380_v46 }
 0x52a   :  { %v1326_v7 = vsub.f32 %v1305_v47, %v1322_v33  ;;  %v1332_v45 = vsel %vm311_vm0, %v1328_v55, 0.0  ;;  %v1329_v2 = vmul.f32 %v1325_v31, %v1325_v31 }
 0x52b   :  { %1333 = vadd.xlane.f32.xlu1 %v1332_v45  ;;  %v1318_v57 = vpop.xlane.xlu0 %1317  ;;  %v3585_v45 = vld [vmem:[#allocation14] ss:$0 sm:$0xff] }
 0x52c   :  { %v1323_v53 = vmul.f32 0.03125, %v1318_v57  ;;  %v1335_v32 = vsel %vm311_vm0, %v1329_v2, 0.0  ;;  %v1330_v14 = vmul.f32 %v1326_v7, %v1326_v7 }
 0x52d   :  { %1336 = vadd.xlane.f32.xlu0 %v1335_v32 }
 0x52e   :  { %v1327_v42 = vsub.f32 %v1306_v59, %v1323_v53  ;;  %v1338_v30 = vsel %vm311_vm0, %v1330_v14, 0.0  ;;  %v6113_v53 = vmov 0.0  }
 0x52f   :  { %1339 = vadd.xlane.f32.xlu1 %v1338_v30 }
 0x530   :  { %v1331_v4 = vmul.f32 %v1327_v42, %v1327_v42 }
 0x532   :  { %v1341_v48 = vsel %vm311_vm0, %v1331_v4, 0.0 }
 0x533   :  { %1342 = vadd.xlane.f32.xlu0 %v1341_v48 }
 0x540   :  { %1451 = vrot.lane.b32.xlu1 %v4983_v39, %s4587_s17 }
 0x5b8   :  { %v1334_v8 = vpop.xlane.xlu1 %1333 }
 0x5b9   :  { %v1344_v63 = vmul.f32 0.03125, %v1334_v8 }
 0x5ba   :  { %v1337_v41 = vpop.xlane.xlu0 %1336 }
 0x5bb   :  { %v1348_v10 = vadd.f32 1e-12, %v1344_v63  ;;  %v1345_v6 = vmul.f32 0.03125, %v1337_v41 }
 0x5bc   :  { %v1340_v11 = vpop.xlane.xlu1 %1339 }
 0x5bd   :  { %4090 = vrsqrt.f32 %v1348_v10  ;;  %v1349_v13 = vadd.f32 1e-12, %v1345_v6  ;;  %v1346_v21 = vmul.f32 0.03125, %v1340_v11 }
 0x5bf   :  { %4092 = vrsqrt.f32 %v1349_v13  ;;  %v1350_v16 = vadd.f32 1e-12, %v1346_v21 }
 0x5c0   :  { %v1343_v20 = vpop.xlane.xlu0 %1342  ;;  %v1452_v10 = vpop.permute.xlu1 %1451 }
 0x5c1   :  { %4094 = vrsqrt.f32 %v1350_v16  ;;  %v1347_v27 = vmul.f32 0.03125, %v1343_v20  ;;  %v1454_v6 = vmul.f32 %v1452_v10, %v4983_v39 }
 0x5c3   :  { %v1351_v28 = vadd.f32 1e-12, %v1347_v27 }
 0x5c5   :  { %4096 = vrsqrt.f32 %v1351_v28 }
 0x5c7   :  { %v4091_v19 = vpop.eup %4090 }
 0x5c8   :  { %v1356_v47 = vmul.f32 %v4091_v19, %v1324_v35 }
 0x5c9   :  { %v4093_v9 = vpop.eup %4092 }
 0x5ca   :  { %v1357_v15 = vmul.f32 %v4093_v9, %v1325_v31  ;;  %v1364_v23 = vmul.f32 %v5377_v50, %v1356_v47  ;;  %v4038_v9 = vld [vmem:[#allocation17] sm:$0xff]  }
 0x5cb   :  { %v4095_v59 = vpop.eup %4094 }
 0x5cc   :  { %v1358_v43 = vmul.f32 %v4095_v59, %v1326_v7  ;;  %v1365_v1 = vmul.f32 %v5377_v50, %v1357_v15  ;;  %v1372_v22 = vadd.f32 %v5383_v25, %v1364_v23  ;;  %v6115_v7 = vmov 0.0|0.0   ;;  %v4039_v15 = vld [vmem:[#allocation17 + $0x8] sm:$0xff]  }
 0x5cd   :  { %3961 = vmatprep.subr.bf16.mxu0 %v6115_v7  ;;  %v4182_v23 = vld [vmem:[#allocation8 + $0x4] ss:$8 sps:$4 sm:$0xff]  }
 0x5ce   :  { %v1373_v44 = vadd.f32 %v5383_v25, %v1365_v1  ;;  %v1366_v29 = vmul.f32 %v5377_v50, %v1358_v43 }
 0x5cf   :  { %v4097_v37 = vpop.eup %4096 }
 0x5d0   :  { %v1359_v12 = vmul.f32 %v4097_v37, %v1327_v42  ;;  %v1376_v35 = vpack.c.bf16 %v1373_v44, %v1372_v22  ;;  %v1374_v31 = vadd.f32 %v5383_v25, %v1366_v29 }
 0x5d2   :  { %v1367_v17 = vmul.f32 %v5377_v50, %v1359_v12  ;;  %3813 = vmatprep.mubr.msk.bf16.mxu0 %vm311_vm0, %v1376_v35  ;;  %3854 = vmatprep.mubr.msk.bf16.mxu1 %vm311_vm0, %v1376_v35 }
 0x5d4   :  { %v1375_v33 = vadd.f32 %v5383_v25, %v1367_v17 }
 0x5d6   :  { %v1377_v55 = vpack.c.bf16 %v1375_v33, %v1374_v31 }
 0x5d8   :  { %3814 = vmatmul.mubr.msk.bf16.vlgmr.msra.gmra.mrb[12].mxu0 %vm311_vm0, %v1377_v55  ;;  %3855 = vmatmul.mubr.msk.bf16.vlgmr.msra.gmra.mrb[24].mxu1 %vm311_vm0, %v1377_v55 }
 0x5d9   :  { %3978 = vmatpush3.bf16.msra.mxu1 %v4920_v61  ;;  %3963 = vmatpush3.bf16.msra.mxu0 %v4920_v61 }
 0x5da   :  { %3980 = vmatprep.subr.bf16.mxu1 %v4930_v0  ;;  %3964 = vmatprep.subr.bf16.mxu0 %v6115_v7 }
 0x5db   :  { %3825 = vmatprep.mubr.msk.f32.mxu0 %vm4591_vm5, %v6113_v53 }
 0x5dd   :  { %3982 = vmatpush3.bf16.msra.mxu1 %v4930_v0  ;;  %3966 = vmatpush3.bf16.msra.mxu0 %v4930_v0 }
 0x5de   :  { %3968 = vmatprep.subr.bf16.mxu0 %v4920_v61  ;;  %3945 = vmatprep.subr.bf16.mxu1 %v6113_v53 }
 0x6ab   :  { %v3815_v2 = vpop.f32.mrb[12].mxu0  ;;  %v5404_v57 = vpop.f32.mrb[24].mxu1 }
 0x6ac   :  { %v1436_v32 = vpop.f32.mrb[13].mxu0  ;;  %v5409_v14 = vpop.f32.mrb[25].mxu1  ;;  %v1445_v41 = vadd.f32 %v3815_v2, %v3585_v45 }
 0x6ad   :  { %v1437_v42 = vadd.f32 %v3585_v45, %v1436_v32  ;;  %v3816_v30 = vpop.f32.mrb[14].mxu0  ;;  %v5412_v4 = vpop.f32.mrb[26].mxu1 }
 0x6ae   :  { %v1439_v48 = vpop.f32.mrb[15].mxu0  ;;  %v5414_v52 = vpop.f32.mrb[27].mxu1  ;;  %v1448_v63 = vadd.f32 %v3816_v30, %v3585_v45 }
 0x6af   :  { %v1440_v8 = vadd.f32 %v3585_v45, %v1439_v48  ;;  %1534 = vrot.lane.b32.xlu0 %v1437_v42, %s4568_s23 }
 0x6b1   :  { %1536 = vrot.lane.b32.xlu1 %v1440_v8, %s4568_s23 }
 0x6b3   :  { %1540 = vrot.lane.b32.xlu0 %v1448_v63, %s4568_s23 }
 0x6b5   :  { %1538 = vrot.lane.b32.xlu1 %v1445_v41, %s4568_s23 }
 0x6b9   :  { %1456 = vrot.lane.b32.xlu1 %v1454_v6, %s4568_s23 }
 0x721   :  { %v1535_v11 = vpop.permute.xlu0 %1534 }
 0x722   :  { %v1546_v13 = vmul.f32 %v1535_v11, %v5025_v58 }
 0x723   :  { %v1537_v21 = vpop.permute.xlu1 %1536 }
 0x724   :  { %v1547_v16 = vmul.f32 %v1537_v21, %v5022_v56  ;;  %1554 = vrot.lane.b32.xlu0 %v1546_v13, %s4568_s23 }
 0x725   :  { %v1541_v20 = vpop.permute.xlu0 %1540 }
 0x726   :  { %1556 = vrot.lane.b32.xlu1 %v1547_v16, %s4568_s23  ;;  %v1549_v24 = vmul.f32 %v1541_v20, %v5032_v60 }
 0x727   :  { %v1539_v27 = vpop.permute.xlu1 %1538 }
 0x728   :  { %v1548_v28 = vmul.f32 %v1539_v27, %v5035_v62 }
 0x72a   :  { %1558 = vrot.lane.b32.xlu0 %v1548_v28, %s4568_s23  ;;  %1560 = vrot.lane.b32.xlu1 %v1549_v24, %s4568_s23 }
 0x72b   :  { %v1457_v39 = vpop.permute.xlu1 %1456 }
 0x72c   :  { %3826 = vmatmul.mubr.msk.f32.vlgmr.msra.gmra.mrb[16].mxu0 %vm311_vm0, %v1457_v39 }
 0x72d   :  { %3970 = vmatpush3.bf16.msra.mxu0 %v4920_v61 }
 0x72e   :  { %1841 = vrot.lane.b32.xlu0 %v1437_v42, %s4587_s17  ;;  %1843 = vrot.lane.b32.xlu1 %v1440_v8, %s4587_s17 }
 0x72f   :  { %3972 = vmatprep.subr.bf16.mxu0 %v4930_v0 }
 0x731   :  { %3974 = vmatpush3.bf16.msra.mxu0 %v4930_v0 }
 0x732   :  { %1845 = vrot.lane.b32.xlu0 %v1445_v41, %s4587_s17  ;;  %1847 = vrot.lane.b32.xlu1 %v1448_v63, %s4587_s17 }
 0x733   :  { %3842 = vmatprep.subr.bf16.mxu0 %v6113_v53 }
 0x796   :  { %v1555_v56 = vpop.permute.xlu0 %1554 }
 0x797   :  { %3836 = vmatprep.mubr.msk.f32.mxu0 %vm311_vm0, %v1555_v56 }
 0x798   :  { %v1557_v58 = vpop.permute.xlu1 %1556 }
 0x799   :  { %3837 = vmatmul.mubr.msk.f32.vlgmr.msra.gmra.mrb[18].mxu0 %vm311_vm0, %v1557_v58 }
 0x79a   :  { %3843 = vmatpush3.bf16.msra.mxu0 %v4038_v9 }
 0x79b   :  { %3844 = vmatprep.subr.bf16.mxu0 %v6113_v53 }
 0x79c   :  { %v1561_v60 = vpop.permute.xlu1 %1560  ;;  %v1559_v62 = vpop.permute.xlu0 %1558 }
 0x79d   :  { %3839 = vmatprep.mubr.msk.f32.mxu0 %vm311_vm0, %v1559_v62 }
 0x79e   :  { %3840 = vmatmul.mubr.msk.f32.gmra.mrb[20].mxu0 %vm311_vm0, %v1561_v60 }
 0x79f   :  { %3846 = vmatprep.mubr.msk.bf16.mxu0 %vm4591_vm5, %v6113_v53  ;;  %3845 = vmatpush3.bf16.msra.mxu0 %v4039_v15 }
 0x7a0   :  { %2034 = vmatprep.subr.bf16.mxu0 %v4182_v23 }
 0x7ff   :  { %v5445_v19 = vpop.f32.mrb[16].mxu0 }
 0x800   :  { %v3827_v47 = vpop.f32.mrb[17].mxu0 }
 0x86c   :  { %v3838_v59 = vpop.f32.mrb[18].mxu0 }
 0x86d   :  { %v1662_v43 = vsel %vm311_vm0, %v3838_v59, -inf  ;;  %v1636_v1 = vpop.f32.mrb[19].mxu0 }
 0x86e   :  { %v1663_v22 = vrot.slane %v1662_v43, 4  ;;  %v1655_v44 = vsel %vm311_vm0, %v1636_v1, -inf }
 0x86f   :  { %v1656_v37 = vrot.slane %v1655_v44, 4 }
 0x870   :  { %v1664_v29 = vmax.f32 %v1662_v43, %v1663_v22 }
 0x871   :  { %v1657_v12 = vmax.f32 %v1655_v44, %v1656_v37  ;;  %v3841_v35 = vpop.f32.mrb[20].mxu0 }
 0x872   :  { %v1665_v17 = vrot.slane %v1664_v29, 2  ;;  %v1676_v31 = vsel %vm311_vm0, %v3841_v35, -inf  ;;  %v1646_v33 = vpop.f32.mrb[21].mxu0 }
 0x873   :  { %v1658_v55 = vrot.slane %v1657_v12, 2  ;;  %v1677_v45 = vrot.slane %v1676_v31, 4  ;;  %v1669_v2 = vsel %vm311_vm0, %v1646_v33, -inf }
 0x874   :  { %v1666_v32 = vmax.f32 %v1664_v29, %v1665_v17  ;;  %v1670_v42 = vrot.slane %v1669_v2, 4 }
 0x875   :  { %v1659_v30 = vmax.f32 %v1657_v12, %v1658_v55  ;;  %v1678_v48 = vmax.f32 %v1676_v31, %v1677_v45 }
 0x876   :  { %v1667_v8 = vrot.slane %v1666_v32, 1  ;;  %v1671_v63 = vmax.f32 %v1669_v2, %v1670_v42 }
 0x877   :  { %v1660_v41 = vrot.slane %v1659_v30, 1  ;;  %v1679_v10 = vrot.slane %v1678_v48, 2 }
 0x878   :  { %v1668_v6 = vmax.f32 %v1666_v32, %v1667_v8  ;;  %v1672_v11 = vrot.slane %v1671_v63, 2 }
 0x879   :  { %v1661_v13 = vmax.f32 %v1659_v30, %v1660_v41  ;;  %v1680_v21 = vmax.f32 %v1678_v48, %v1679_v10 }
 0x87a   :  { %v1673_v16 = vmax.f32 %v1671_v63, %v1672_v11 }
 0x87b   :  { %v1687_v20 = vsel %vm490_vm1, %v1668_v6, %v1661_v13  ;;  %v1681_v27 = vrot.slane %v1680_v21, 1 }
 0x87c   :  { %v1674_v24 = vrot.slane %v1673_v16, 1 }
 0x87d   :  { %v1682_v39 = vmax.f32 %v1680_v21, %v1681_v27 }
 0x87e   :  { %v1675_v28 = vmax.f32 %v1673_v16, %v1674_v24 }
 0x880   :  { %v1688_v56 = vsel %vm492_vm2, %v1675_v28, %v1687_v20 }
 0x881   :  { %v1689_v58 = vsel %vm494_vm3, %v1682_v39, %v1688_v56 }
 0x882   :  { %v1691_v60 = vmax.f32 %v5445_v19, %v1689_v58 }
 0x884   :  { %v1692_v62 = vsub.f32 %v5445_v19, %v1691_v60  ;;  %v1702_v47 = vrot.slane %v1691_v60, %v4986_v40 }
 0x886   :  { %v1703_v9 = vcombine.high %v1702_v47, %v1702_v47  ;;  %v1710_v15 = vrot.slane %v1702_v47, %v4986_v40 }
 0x888   :  { %v1717_v23 = vrot.slane %v1703_v9, %v4986_v40  ;;  %v1718_v43 = vcombine.high %v1710_v15, %v1710_v15  ;;  %v1723_v22 = vrot.slane %v1710_v15, %v4969_v34 }
 0x88a   :  { %v1719_v44 = vcombine.high %v1717_v23, %v1717_v23  ;;  %v1727_v37 = vrot.slane %v1717_v23, %v4969_v34  ;;  %v1731_v29 = vrot.slane %v1718_v43, %v4969_v34  ;;  %v1740_v12 = vsub.f32 %v1636_v1, %v1723_v22 }
 0x88c   :  { %v1735_v17 = vrot.slane %v1719_v44, %v4969_v34  ;;  %v1741_v31 = vsub.f32 %v3838_v59, %v1727_v37  ;;  %v1742_v19 = vsub.f32 %v1646_v33, %v1731_v29  ;;  %v1744_v55 = vmul.f32 1.442695, %v1740_v12 }
 0x88d   :  { %v1693_v59 = vmul.f32 1.442695, %v1692_v62 }
 0x88e   :  { %v1743_v45 = vsub.f32 %v3841_v35, %v1735_v17  ;;  %4098 = vpow2.f32 %v1744_v55  ;;  %v1746_v2 = vmul.f32 1.442695, %v1741_v31  ;;  %v1748_v32 = vmul.f32 1.442695, %v1742_v19 }
 0x890   :  { %4100 = vpow2.f32 %v1746_v2  ;;  %v1750_v42 = vmul.f32 1.442695, %v1743_v45  ;;  %v4183_v45 = vld [vmem:[#allocation10] sm:$0x3] }
 0x891   :  { %4102 = vpow2.f32 %v1748_v32  ;;  %v5472_v2 = vrot.slane %v4183_v45, %v5380_v46 }
 0x892   :  { %4104 = vpow2.f32 %v1750_v42 }
 0x893   :  { %4106 = vpow2.f32 %v1693_v59  ;;  %v557_v42 = vadd.f32 %v4980_v38, %v5472_v2 }
 0x898   :  { %v4099_v30 = vpop.eup %4098 }
 0x899   :  { %v1752_v48 = vsel %vm311_vm0, %v4099_v30, 0.0 }
 0x89a   :  { %v4101_v8 = vpop.eup %4100  ;;  %v1753_v63 = vrot.slane %v1752_v48, 4 }
 0x89b   :  { %v4103_v41 = vpop.eup %4102  ;;  %v1759_v1 = vsel %vm311_vm0, %v4101_v8, 0.0 }
 0x89c   :  { %v4105_v10 = vpop.eup %4104  ;;  %v1754_v33 = vadd.f32 %v1753_v63, %v1752_v48  ;;  %v1760_v6 = vrot.slane %v1759_v1, 4  ;;  %v1766_v35 = vsel %vm311_vm0, %v4103_v41, 0.0 }
 0x89d   :  { %v1767_v11 = vrot.slane %v1766_v35, 4  ;;  %v1773_v13 = vsel %vm311_vm0, %v4105_v10, 0.0  ;;  %v4107_v31 = vpop.eup %4106 }
 0x89e   :  { %v1755_v21 = vrot.slane %v1754_v33, 2  ;;  %v1761_v16 = vadd.f32 %v1760_v6, %v1759_v1  ;;  %v1774_v20 = vrot.slane %v1773_v13, 4  ;;  %v1842_v6 = vpop.permute.xlu0 %1841 }
 0x89f   :  { %v1768_v27 = vadd.f32 %v1767_v11, %v1766_v35 }
 0x8a0   :  { %v1756_v24 = vadd.f32 %v1755_v21, %v1754_v33  ;;  %v1762_v28 = vrot.slane %v1761_v16, 2  ;;  %v1775_v39 = vadd.f32 %v1774_v20, %v1773_v13  ;;  %v1844_v21 = vpop.permute.xlu1 %1843 }
 0x8a1   :  { %v1769_v56 = vrot.slane %v1768_v27, 2 }
 0x8a2   :  { %v1757_v58 = vrot.slane %v1756_v24, 1  ;;  %v1763_v60 = vadd.f32 %v1762_v28, %v1761_v16  ;;  %v1776_v47 = vrot.slane %v1775_v39, 2 }
 0x8a3   :  { %v1770_v62 = vadd.f32 %v1769_v56, %v1768_v27 }
 0x8a4   :  { %v1764_v9 = vrot.slane %v1763_v60, 1  ;;  %v1777_v15 = vadd.f32 %v1776_v47, %v1775_v39  ;;  %v1758_v43 = vadd.f32 %v1757_v58, %v1756_v24  ;;  %v1846_v58 = vpop.permute.xlu0 %1845 }
 0x8a5   :  { %v1771_v23 = vrot.slane %v1770_v62, 1 }
 0x8a6   :  { %v1765_v22 = vadd.f32 %v1764_v9, %v1763_v60  ;;  %v1778_v44 = vrot.slane %v1777_v15, 1 }
 0x8a7   :  { %v1772_v37 = vadd.f32 %v1771_v23, %v1770_v62 }
 0x8a8   :  { %v1779_v29 = vadd.f32 %v1778_v44, %v1777_v15  ;;  %v1784_v12 = vsel %vm490_vm1, %v1765_v22, %v1758_v43  ;;  %v1848_v15 = vpop.permute.xlu1 %1847 }
 0x8a9   :  { %v1785_v17 = vsel %vm492_vm2, %v1772_v37, %v1784_v12 }
 0x8aa   :  { %v1786_v19 = vsel %vm494_vm3, %v1779_v29, %v1785_v17 }
 0x8ab   :  { %v1788_v55 = vadd.f32 %v4107_v31, %v1786_v19 }
 0x8ad   :  { %4108 = vrcp.f32 %v1788_v55 }
 0x8b7   :  { %v4109_v32 = vpop.eup %4108 }
 0x8b8   :  { %v1799_v48 = vrot.slane %v4109_v32, %v4986_v40  ;;  %v1790_v63 = vmul.f32 %v4109_v32, %v4107_v31 }
 0x8ba   :  { %v1800_v1 = vcombine.high %v1799_v48, %v1799_v48  ;;  %v1807_v59 = vrot.slane %v1799_v48, %v4986_v40  ;;  %v1791_v33 = vmul.f32 %v1790_v63, %v557_v42 }
 0x8bc   :  { %v1814_v35 = vrot.slane %v1800_v1, %v4986_v40  ;;  %v1815_v11 = vcombine.high %v1807_v59, %v1807_v59  ;;  %v1820_v13 = vrot.slane %v1807_v59, %v4969_v34 }
 0x8be   :  { %v1816_v16 = vcombine.high %v1814_v35, %v1814_v35  ;;  %v1824_v20 = vrot.slane %v1814_v35, %v4969_v34  ;;  %v1828_v27 = vrot.slane %v1815_v11, %v4969_v34  ;;  %v1837_v38 = vmul.f32 %v4099_v30, %v1820_v13 }
 0x8c0   :  { %v1832_v24 = vrot.slane %v1816_v16, %v4969_v34  ;;  %v1838_v28 = vmul.f32 %v4101_v8, %v1824_v20  ;;  %v1839_v39 = vmul.f32 %v4103_v41, %v1828_v27  ;;  %v1853_v56 = vmul.f32 %v1842_v6, %v1837_v38 }
 0x8c2   :  { %v1840_v60 = vmul.f32 %v4105_v10, %v1832_v24  ;;  %v1854_v47 = vmul.f32 %v1844_v21, %v1838_v28  ;;  %v1855_v62 = vmul.f32 %v1846_v58, %v1839_v39  ;;  %v1857_v9 = vsel %vm311_vm0, %v1853_v56, 0.0  ;;  %v4184_v39 = vld [vmem:[#allocation8] ss:$8 sps:$4 sm:$0xff]   ;;  %v4185_v58 = vld [vmem:[#allocation8 + $0x14] ss:$8 sps:$4 sm:$0xff]  }
 0x8c3   :  { %v1858_v23 = vrot.slane %v1857_v9, 4  ;;  %v6130_v56 = vmov 0  }
 0x8c4   :  { %v1871_v43 = vsel %vm311_vm0, %v1855_v62, 0.0  ;;  %v1856_v22 = vmul.f32 %v1848_v15, %v1840_v60  ;;  %v1864_v44 = vsel %vm311_vm0, %v1854_v47, 0.0  ;;  %v4186_v60 = vld [vmem:[#allocation8 + $0x10] ss:$8 sps:$4 sm:$0xff]   ;;  %v3595_v62 = vld [vmem:[#allocation19] ss:$0 sm:$0xff] }
 0x8c5   :  { %v1859_v37 = vadd.f32 %v1858_v23, %v1857_v9  ;;  %v1872_v30 = vrot.slane %v1871_v43, 4  ;;  %v1865_v29 = vrot.slane %v1864_v44, 4  ;;  %v5495_v47 = vld [vmem:[%s6129_s12] sm:$0xff]  }
 0x8c6   :  { %v1878_v8 = vsel %vm311_vm0, %v1856_v22, 0.0 }
 0x8c7   :  { %v1860_v41 = vrot.slane %v1859_v37, 2  ;;  %v1873_v12 = vadd.f32 %v1872_v30, %v1871_v43  ;;  %v1866_v17 = vadd.f32 %v1865_v29, %v1864_v44  ;;  %v1879_v10 = vrot.slane %v1878_v8, 4 }
 0x8c9   :  { %v1874_v31 = vrot.slane %v1873_v12, 2  ;;  %v1861_v19 = vadd.f32 %v1860_v41, %v1859_v37  ;;  %v1867_v55 = vrot.slane %v1866_v17, 2  ;;  %v1880_v45 = vadd.f32 %v1879_v10, %v1878_v8  ;;  %v4188_v37 = vld [vmem:[#allocation7] ss:$0 sm:$0xff] }
 0x8ca   :  { %v5500_v30 = vadd.f32 %v4188_v37, %v5409_v14  ;;  %v5503_v29 = vadd.f32 %v4188_v37, %v5404_v57 }
 0x8cb   :  { %v1875_v32 = vadd.f32 %v1874_v31, %v1873_v12  ;;  %v1862_v42 = vrot.slane %v1861_v19, 1  ;;  %v1868_v48 = vadd.f32 %v1867_v55, %v1866_v17  ;;  %v1881_v63 = vrot.slane %v1880_v45, 2 }
 0x8cc   :  { %v2079_v8 = vrot.slane %v5500_v30, 1  ;;  %v2087_v41 = vrot.slane %v5500_v30, 2  ;;  %v2081_v17 = vrot.slane %v5503_v29, 1  ;;  %v2089_v10 = vrot.slane %v5503_v29, 2 }
 0x8cd   :  { %v1876_v1 = vrot.slane %v1875_v32, 1  ;;  %v1869_v59 = vrot.slane %v1868_v48, 1  ;;  %v1882_v6 = vadd.f32 %v1881_v63, %v1880_v45  ;;  %v1863_v11 = vadd.f32 %v1862_v42, %v1861_v19 }
 0x8ce   :  { %v5508_v12 = vsel %vm581_vm4, %v2079_v8, %v2087_v41  ;;  %v5515_v14 = vsel %vm581_vm4, %v2081_v17, %v2089_v10  ;;  %v5525_v57 = vrot.slane %v5500_v30, %v4969_v34  ;;  %v5531_v31 = vrot.slane %v5503_v29, %v4969_v34 }
 0x8cf   :  { %v1877_v35 = vadd.f32 %v1876_v1, %v1875_v32  ;;  %v1870_v13 = vadd.f32 %v1869_v59, %v1868_v48  ;;  %v1883_v21 = vrot.slane %v1882_v6, 1  ;;  %v5539_v1 = vadd.f32 %v4188_v37, %v5414_v52 }
 0x8d0   :  { %v5542_v59 = vadd.f32 %v4188_v37, %v5412_v4 }
 0x8d1   :  { %v1884_v16 = vadd.f32 %v1883_v21, %v1882_v6  ;;  %v1889_v20 = vsel %vm490_vm1, %v1870_v13, %v1863_v11  ;;  %v2080_v6 = vrot.slane %v5539_v1, 1  ;;  %v5564_v4 = vrot.slane %v5539_v1, %v4969_v34 }
 0x8d2   :  { %v1890_v27 = vsel %vm492_vm2, %v1877_v35, %v1889_v20  ;;  %v2088_v35 = vrot.slane %v5539_v1, 2  ;;  %v2082_v13 = vrot.slane %v5542_v59, 1  ;;  %v2090_v21 = vrot.slane %v5542_v59, 2 }
 0x8d3   :  { %v1891_v38 = vsel %vm494_vm3, %v1884_v16, %v1890_v27  ;;  %v5570_v16 = vrot.slane %v5542_v59, %v4969_v34 }
 0x8d4   :  { %v1893_v24 = vadd.f32 %v1891_v38, %v1791_v33  ;;  %v5547_v11 = vsel %vm581_vm4, %v2080_v6, %v2088_v35  ;;  %v5554_v52 = vsel %vm581_vm4, %v2082_v13, %v2090_v21  ;;  %v2216_v21 = vmul.f32 %v5500_v30, %v5004_v51  ;;  %v6133_v51 = vld [vmem:[#allocation37_spill] sm:$0xff] }
 0x8d6   :  { %v1894_v28 = vpack.c.bf16 %v1893_v24, %v1893_v24 }
 0x8d8   :  { %3847 = vmatmul.mubr.msk.bf16.vlgmr.msra.gmra.mrb[24].mxu0 %vm311_vm0, %v1894_v28 }
 0x8d9   :  { %2035 = vmatpush1.bf16.msra.mxu0 %v4184_v39  ;;  %2066 = vmatprep.mubr.bf16.mxu0 %v6130_v56 }
 0x8da   :  { %2036 = vmatprep.subr.bf16.mxu0 %v4185_v58 }
 0x8dd   :  { %2037 = vmatpush1.bf16.msra.mxu0 %v4186_v60 }
 0x8de   :  { %3896 = vmatprep.subr.bf16.mxu0 %v5495_v47 }
 0x9ab   :  { %v1950_v33 = vpop.f32.mrb[24].mxu0 }
 0x9ac   :  { %v1951_v9 = vadd.f32 %v3595_v62, %v1950_v33  ;;  %v3848_v15 = vpop.f32.mrb[25].mxu0 }
 0x9ad   :  { %v1953_v23 = vpop.f32.mrb[26].mxu0  ;;  %v281_v15 = vld [vmem:[#allocation22] sm:$0x3] }
 0x9ae   :  { %v1956_v43 = vmax.f32 %v1951_v9, 0.0  ;;  %v3849_v22 = vpop.f32.mrb[27].mxu0  ;;  %v5589_v41 = vrot.slane %v281_v15, %v5380_v46 }
 0x9b0   :  { %v1958_v44 = vsel %vm1957_vm6, %v1956_v43, 0.0  ;;  %6132 = vst [vmem:[#allocation39_spill] sm:$0xff] %v5589_v41 }
 0x9b1   :  { %1959 = vadd.xlane.f32.xlu0 %v1958_v44  ;;  %v5584_v44 = vrot.slane %v281_v15, %v4969_v34 }
 0x9b3   :  { %6131 = vst [vmem:[#allocation38_spill] sm:$0xff] %v5584_v44 }
 0x9c7   :  { %2164 = vrot.lane.b32.xlu0 %v5508_v12, %s4587_s17 }
 0x9cb   :  { %2168 = vrot.lane.b32.xlu0 %v5515_v14, %s4587_s17 }
 0x9cf   :  { %2180 = vrot.lane.b32.xlu0 %v5500_v30, %s4587_s17 }
 0x9d3   :  { %2184 = vrot.lane.b32.xlu0 %v5503_v29, %s4587_s17 }
 0x9d7   :  { %2200 = vrot.lane.b32.xlu0 %v5525_v57, %s4587_s17 }
 0x9db   :  { %2204 = vrot.lane.b32.xlu0 %v5531_v31, %s4587_s17 }
 0xa3e   :  { %v1960_v19 = vpop.xlane.xlu0 %1959 }
 0xa3f   :  { %v1961_v55 = vmul.f32 0.03125, %v1960_v19 }
 0xa41   :  { %v1962_v45 = vsub.f32 %v1956_v43, %v1961_v55 }
 0xa42   :  { %v2165_v32 = vpop.permute.xlu0 %2164 }
 0xa43   :  { %v2176_v42 = vmul.f32 %v2165_v32, %v5500_v30  ;;  %v1963_v48 = vmul.f32 %v1962_v45, %v1962_v45 }
 0xa45   :  { %3866 = vmatprep.mubr.msk.f32.mxu1 %vm311_vm0, %v2176_v42  ;;  %v1964_v63 = vsel %vm1957_vm6, %v1963_v48, 0.0 }
 0xa46   :  { %1965 = vadd.xlane.f32.xlu1 %v1964_v63  ;;  %v2169_v20 = vpop.permute.xlu0 %2168 }
 0xa47   :  { %v2178_v58 = vmul.f32 %v2169_v20, %v5503_v29  ;;  %v4189_v20 = vld [vmem:[%s6129_s12 + $0x8] sm:$0xff]  }
 0xa4a   :  { %v2181_v38 = vpop.permute.xlu0 %2180 }
 0xa4b   :  { %v2192_v9 = vmul.f32 %v2181_v38, %v5500_v30  ;;  %v2218_v38 = vmul.f32 %v5503_v29, %v5014_v54 }
 0xa4e   :  { %v2185_v60 = vpop.permute.xlu0 %2184 }
 0xa4f   :  { %v2194_v37 = vmul.f32 %v2185_v60, %v5503_v29 }
 0xa52   :  { %v2201_v43 = vpop.permute.xlu0 %2200 }
 0xa53   :  { %v2212_v55 = vmul.f32 %v2201_v43, %v5500_v30 }
 0xa56   :  { %v2205_v42 = vpop.permute.xlu0 %2204 }
 0xa57   :  { %2166 = vrot.lane.b32.xlu1 %v5547_v11, %s4587_s17 }
 0xa5b   :  { %2170 = vrot.lane.b32.xlu1 %v5554_v52, %s4587_s17 }
 0xa5f   :  { %2182 = vrot.lane.b32.xlu1 %v5539_v1, %s4587_s17 }
 0xa63   :  { %2186 = vrot.lane.b32.xlu1 %v5542_v59, %s4587_s17 }
 0xa67   :  { %2202 = vrot.lane.b32.xlu1 %v5564_v4, %s4587_s17 }
 0xa6b   :  { %2206 = vrot.lane.b32.xlu1 %v5570_v16, %s4587_s17 }
 0xad3   :  { %v1966_v27 = vpop.xlane.xlu1 %1965 }
 0xad4   :  { %v1967_v24 = vmul.f32 0.03125, %v1966_v27  ;;  %v2217_v27 = vmul.f32 %v5539_v1, %v5002_v49 }
 0xad6   :  { %v1968_v28 = vadd.f32 1e-12, %v1967_v24 }
 0xad7   :  { %v2167_v39 = vpop.permute.xlu1 %2166 }
 0xad8   :  { %4110 = vrsqrt.f32 %v1968_v28  ;;  %v2177_v56 = vmul.f32 %v2167_v39, %v5539_v1 }
 0xada   :  { %3867 = vmatmul.mubr.msk.f32.vlgmr.msra.gmra.mrb[28].mxu1 %vm311_vm0, %v2177_v56 }
 0xadb   :  { %v2171_v62 = vpop.permute.xlu1 %2170  ;;  %3869 = vmatprep.mubr.msk.f32.mxu1 %vm311_vm0, %v2178_v58 }
 0xadc   :  { %v2179_v33 = vmul.f32 %v2171_v62, %v5542_v59 }
 0xade   :  { %3870 = vmatmul.mubr.msk.f32.gmra.mrb[30].mxu1 %vm311_vm0, %v2179_v33 }
 0xadf   :  { %v2183_v23 = vpop.permute.xlu1 %2182  ;;  %3872 = vmatprep.mubr.msk.f32.mxu1 %vm311_vm0, %v2192_v9 }
 0xae0   :  { %v2193_v22 = vmul.f32 %v2183_v23, %v5539_v1 }
 0xae2   :  { %v4111_v8 = vpop.eup %4110  ;;  %3873 = vmatmul.mubr.msk.f32.gmra.mrb[32].mxu1 %vm311_vm0, %v2193_v22 }
 0xae3   :  { %v1970_v17 = vmul.f32 %v4111_v8, %v1962_v45  ;;  %v2187_v10 = vpop.permute.xlu1 %2186  ;;  %3875 = vmatprep.mubr.msk.f32.mxu1 %vm311_vm0, %v2194_v37  ;;  %v2214_v45 = vmul.f32 %v2205_v42, %v5503_v29 }
 0xae4   :  { %v2195_v19 = vmul.f32 %v2187_v10, %v5542_v59 }
 0xae5   :  { %v1975_v32 = vmul.f32 %v5584_v44, %v1970_v17 }
 0xae6   :  { %3876 = vmatmul.mubr.msk.f32.gmra.mrb[34].mxu1 %vm311_vm0, %v2195_v19 }
 0xae7   :  { %v2203_v48 = vpop.permute.xlu1 %2202  ;;  %3878 = vmatprep.mubr.msk.f32.mxu1 %vm311_vm0, %v2212_v55  ;;  %v1980_v63 = vadd.f32 %v5589_v41, %v1975_v32 }
 0xae8   :  { %v2213_v46 = vmul.f32 %v2203_v48, %v5539_v1 }
 0xae9   :  { %v2030_v6 = vpack.c.bf16 %v1980_v63, %v1980_v63  ;;  %v6134_v63 = vld [vmem:[#allocation36_spill] sm:$0xff] }
 0xaea   :  { %3879 = vmatmul.mubr.msk.f32.gmra.mrb[36].mxu1 %vm311_vm0, %v2213_v46 }
 0xaeb   :  { %3601 = vmatmul.mubr.msk.bf16.vlgmr.msra.gmra.mrb[28].mxu0 %vm311_vm0, %v2030_v6  ;;  %v2207_v35 = vpop.permute.xlu1 %2206  ;;  %3881 = vmatprep.mubr.msk.f32.mxu1 %vm311_vm0, %v2214_v45 }
 0xaec   :  { %v2215_v13 = vmul.f32 %v2207_v35, %v5542_v59  ;;  %3897 = vmatpush3.bf16.msra.mxu0 %v5495_v47  ;;  %v2219_v47 = vmul.f32 %v5542_v59, %v6133_v51 }
 0xaed   :  { %3898 = vmatprep.subr.bf16.mxu0 %v4189_v20 }
 0xaee   :  { %3882 = vmatmul.mubr.msk.f32.gmra.mrb[38].mxu1 %vm311_vm0, %v2215_v13 }
 0xaef   :  { %3884 = vmatprep.mubr.msk.f32.mxu1 %vm311_vm0, %v2216_v21 }
 0xaf0   :  { %3899 = vmatpush3.bf16.msra.mxu0 %v4189_v20 }
 0xaf1   :  { %3904 = vmatprep.subr.bf16.mxu0 %v5372_v5 }
 0xaf2   :  { %3885 = vmatmul.mubr.msk.f32.gmra.mrb[40].mxu1 %vm311_vm0, %v2217_v27 }
 0xaf3   :  { %3887 = vmatprep.mubr.msk.f32.mxu1 %vm311_vm0, %v2218_v38 }
 0xaf6   :  { %3888 = vmatmul.mubr.msk.f32.gmra.mrb[42].mxu1 %vm311_vm0, %v2219_v47 }
 0xbad   :  { %v5622_v24 = vpop.f32.mrb[28].mxu1 }
 0xbae   :  { %v5624_v28 = vpop.f32.mrb[29].mxu1  ;;  %v2458_v5 = vsel %vm311_vm0, %v5622_v24, -inf }
 0xbaf   :  { %v2449_v60 = vsel %vm311_vm0, %v5624_v28, -inf }
 0xbb1   :  { %v5626_v49 = vpop.f32.mrb[30].mxu1 }
 0xbb2   :  { %v5628_v39 = vpop.f32.mrb[31].mxu1  ;;  %v2476_v23 = vsel %vm311_vm0, %v5626_v49, -inf }
 0xbb3   :  { %v2467_v37 = vsel %vm311_vm0, %v5628_v39, -inf }
 0xbb5   :  { %v5630_v54 = vpop.f32.mrb[32].mxu1 }
 0xbb6   :  { %v2459_v56 = vsel %vm311_vm0, %v5630_v54, -inf  ;;  %v5636_v58 = vpop.f32.mrb[33].mxu1 }
 0xbb7   :  { %v2460_v62 = vmax.f32 %v2458_v5, %v2459_v56  ;;  %v2450_v33 = vsel %vm311_vm0, %v5636_v58, -inf }
 0xbb8   :  { %v2451_v9 = vmax.f32 %v2449_v60, %v2450_v33 }
 0xbb9   :  { %v5642_v15 = vpop.f32.mrb[34].mxu1 }
 0xbba   :  { %v2477_v43 = vsel %vm311_vm0, %v5642_v15, -inf  ;;  %v5648_v22 = vpop.f32.mrb[35].mxu1 }
 0xbbb   :  { %v2478_v8 = vmax.f32 %v2476_v23, %v2477_v43  ;;  %v2468_v17 = vsel %vm311_vm0, %v5648_v22, -inf }
 0xbbc   :  { %v2469_v10 = vmax.f32 %v2467_v37, %v2468_v17 }
 0xbbd   :  { %v5654_v19 = vpop.f32.mrb[36].mxu1 }
 0xbbe   :  { %v2461_v55 = vsel %vm311_vm0, %v5654_v19, -inf  ;;  %v2068_v32 = vpop.f32.mrb[28].mxu0  ;;  %v5658_v42 = vpop.f32.mrb[37].mxu1 }
 0xbbf   :  { %v5660_v48 = vmax.f32 %v2460_v62, %v2461_v55  ;;  %v5663_v46 = vadd.f32 %v2068_v32, %v6134_v63  ;;  %v2452_v45 = vsel %vm311_vm0, %v5658_v42, -inf  ;;  %v5667_v6 = vpop.f32.mrb[29].mxu0 }
 0xbc0   :  { %v5669_v35 = vmax.f32 %v2451_v9, %v2452_v45  ;;  %v2072_v13 = vpop.f32.mrb[30].mxu0 }
 0xbc1   :  { %v2122_v21 = vrot.slane %v5663_v46, %v4986_v40  ;;  %v2073_v20 = vpop.f32.mrb[31].mxu0  ;;  %v5673_v27 = vpop.f32.mrb[38].mxu1 }
 0xbc2   :  { %v2479_v38 = vsel %vm311_vm0, %v5673_v27, -inf  ;;  %v5677_v51 = vpop.f32.mrb[39].mxu1 }
 0xbc3   :  { %v2123_v47 = vcombine.high %v2122_v21, %v2122_v21  ;;  %v5679_v5 = vmax.f32 %v2478_v8, %v2479_v38  ;;  %v2470_v56 = vsel %vm311_vm0, %v5677_v51, -inf  ;;  %v2130_v60 = vrot.slane %v2122_v21, %v4986_v40 }
 0xbc4   :  { %v5684_v62 = vmax.f32 %v2469_v10, %v2470_v56 }
 0xbc5   :  { %v5686_v33 = vpop.f32.mrb[40].mxu1  ;;  %v5689_v9 = vrot.slane %v2130_v60, %v4969_v34  ;;  %v2137_v23 = vrot.slane %v2123_v47, %v4986_v40  ;;  %v2138_v43 = vcombine.high %v2130_v60, %v2130_v60 }
 0xbc6   :  { %v2463_v37 = vsel %vm311_vm0, %v5686_v33, -inf  ;;  %v5694_v8 = vpop.f32.mrb[41].mxu1 }
 0xbc7   :  { %v2464_v17 = vmax.f32 %v5660_v48, %v2463_v37  ;;  %v2454_v55 = vsel %vm311_vm0, %v5694_v8, -inf  ;;  %2605 = vrot.lane.b32.xlu0 %v5689_v9, %s4589_s30  ;;  %v2220_v10 = vmul.f32 %v5689_v9, %v5500_v30  ;;  %v5704_v32 = vrot.slane %v2137_v23, %v4969_v34 }
 0xbc8   :  { %v2455_v63 = vmax.f32 %v5669_v35, %v2454_v55  ;;  %v5708_v45 = vrot.slane %v2138_v43, %v4969_v34  ;;  %v2139_v13 = vcombine.high %v2137_v23, %v2137_v23 }
 0xbc9   :  { %v5710_v21 = vpop.f32.mrb[42].mxu1  ;;  %3890 = vmatprep.mubr.msk.f32.mxu1 %vm311_vm0, %v2220_v10  ;;  %2607 = vrot.lane.b32.xlu1 %v5704_v32, %s4589_s30  ;;  %v2221_v48 = vmul.f32 %v5704_v32, %v5539_v1 }
 0xbca   :  { %v5719_v20 = vsel %vm311_vm0, %v5710_v21, -inf  ;;  %v5721_v38 = vpop.f32.mrb[43].mxu1  ;;  %v2222_v35 = vmul.f32 %v5708_v45, %v5503_v29  ;;  %v5726_v47 = vrot.slane %v2139_v13, %v4969_v34 }
 0xbcb   :  { %v2482_v56 = vmax.f32 %v5679_v5, %v5719_v20  ;;  %v2472_v60 = vsel %vm311_vm0, %v5721_v38, -inf  ;;  %2609 = vrot.lane.b32.xlu0 %v5708_v45, %s4589_s30  ;;  %3891 = vmatmul.mubr.msk.f32.gmra.mrb[44].mxu1 %vm311_vm0, %v2221_v48 }
 0xbcc   :  { %v2473_v23 = vmax.f32 %v5684_v62, %v2472_v60  ;;  %3893 = vmatprep.mubr.msk.f32.mxu1 %vm311_vm0, %v2222_v35  ;;  %v2223_v43 = vmul.f32 %v5726_v47, %v5542_v59 }
 0xbcd   :  { %2611 = vrot.lane.b32.xlu1 %v5726_v47, %s4589_s30 }
 0xbcf   :  { %2613 = vrot.lane.b32.xlu0 %v5508_v12, %s4568_s23  ;;  %3894 = vmatmul.mubr.msk.f32.gmra.mrb[46].mxu1 %vm311_vm0, %v2223_v43 }
 0xbd0   :  { %3949 = vmatprep.mubr.msk.bf16.mxu1 %vm4591_vm5, %v6113_v53 }
 0xbd1   :  { %2615 = vrot.lane.b32.xlu1 %v5547_v11, %s4568_s23 }
 0xbd3   :  { %2621 = vrot.lane.b32.xlu0 %v5500_v30, %s4568_s23 }
 0xbd5   :  { %2623 = vrot.lane.b32.xlu1 %v5539_v1, %s4568_s23 }
 0xbd7   :  { %2617 = vrot.lane.b32.xlu0 %v5515_v14, %s4568_s23 }
 0xbd9   :  { %2619 = vrot.lane.b32.xlu1 %v5554_v52, %s4568_s23 }
 0xbdb   :  { %2625 = vrot.lane.b32.xlu0 %v5503_v29, %s4568_s23 }
 0xbdd   :  { %2627 = vrot.lane.b32.xlu1 %v5542_v59, %s4568_s23 }
 0xbdf   :  { %2629 = vrot.lane.b32.xlu0 %v5525_v57, %s4568_s23 }
 0xbe1   :  { %2631 = vrot.lane.b32.xlu1 %v5564_v4, %s4568_s23 }
 0xbe3   :  { %2633 = vrot.lane.b32.xlu0 %v5531_v31, %s4568_s23 }
 0xbe5   :  { %2635 = vrot.lane.b32.xlu1 %v5570_v16, %s4568_s23 }
 0xc39   :  { %v2606_v30 = vpop.permute.xlu0 %2605 }
 0xc3a   :  { %2637 = vrot.lane.b32.xlu0 %v2606_v30, %s4568_s23 }
 0xc3b   :  { %v2608_v12 = vpop.permute.xlu1 %2607 }
 0xc3c   :  { %2639 = vrot.lane.b32.xlu1 %v2608_v12, %s4568_s23 }
 0xc3d   :  { %v2610_v29 = vpop.permute.xlu0 %2609 }
 0xc3e   :  { %2641 = vrot.lane.b32.xlu0 %v2610_v29, %s4568_s23 }
 0xc3f   :  { %v2612_v14 = vpop.permute.xlu1 %2611 }
 0xc40   :  { %2643 = vrot.lane.b32.xlu1 %v2612_v14, %s4568_s23 }
 0xc9e   :  { %v3892_v57 = vpop.f32.mrb[44].mxu1 }
 0xc9f   :  { %v2465_v1 = vsel %vm311_vm0, %v3892_v57, -inf  ;;  %v2430_v59 = vpop.f32.mrb[45].mxu1 }
 0xca0   :  { %v2466_v31 = vmax.f32 %v2464_v17, %v2465_v1  ;;  %v2456_v11 = vsel %vm311_vm0, %v2430_v59, -inf }
 0xca1   :  { %v2457_v52 = vmax.f32 %v2455_v63, %v2456_v11 }
 0xca2   :  { %v2486_v4 = vsub.f32 %v5622_v24, %v2466_v31  ;;  %v2490_v16 = vsub.f32 %v5630_v54, %v2466_v31  ;;  %v2494_v5 = vsub.f32 %v5654_v19, %v2466_v31  ;;  %v2498_v62 = vsub.f32 %v5686_v33, %v2466_v31  ;;  %v3895_v37 = vpop.f32.mrb[46].mxu1  ;;  %v5784_v33 = vpop.permute.xlu1 %2615 }
 0xca3   :  { %v2502_v55 = vsub.f32 %v3892_v57, %v2466_v31  ;;  %v2485_v10 = vsub.f32 %v5624_v28, %v2457_v52  ;;  %v2489_v13 = vsub.f32 %v5636_v58, %v2457_v52  ;;  %v2493_v48 = vsub.f32 %v5658_v42, %v2457_v52  ;;  %v5781_v17 = vpop.f32.mrb[47].mxu1 }
 0xca4   :  { %v2507_v20 = vmul.f32 1.442695, %v2486_v4  ;;  %v2515_v63 = vmul.f32 1.442695, %v2490_v16  ;;  %v2523_v35 = vmul.f32 1.442695, %v2494_v5  ;;  %v2497_v24 = vsub.f32 %v5694_v8, %v2457_v52  ;;  %v5794_v4 = vpop.permute.xlu0 %2613 }
 0xca5   :  { %v2531_v54 = vmul.f32 1.442695, %v2498_v62  ;;  %v2501_v60 = vsub.f32 %v2430_v59, %v2457_v52  ;;  %v2539_v19 = vmul.f32 1.442695, %v2502_v55  ;;  %v2505_v43 = vmul.f32 1.442695, %v2485_v10 }
 0xca6   :  { %4112 = vpow2.f32 %v2507_v20  ;;  %v2483_v28 = vsel %vm311_vm0, %v3895_v37, -inf  ;;  %v2474_v58 = vsel %vm311_vm0, %v5781_v17, -inf  ;;  %v2513_v42 = vmul.f32 1.442695, %v2489_v13 }
 0xca7   :  { %4114 = vpow2.f32 %v2515_v63  ;;  %v2484_v30 = vmax.f32 %v2482_v56, %v2483_v28  ;;  %v2475_v12 = vmax.f32 %v2473_v23, %v2474_v58  ;;  %v2521_v29 = vmul.f32 1.442695, %v2493_v48  ;;  %v5796_v23 = vpop.permute.xlu1 %2623 }
 0xca8   :  { %4116 = vpow2.f32 %v2523_v35  ;;  %v2529_v8 = vmul.f32 1.442695, %v2497_v24  ;;  %v2537_v14 = vmul.f32 1.442695, %v2501_v60 }
 0xca9   :  { %4118 = vpow2.f32 %v2531_v54  ;;  %v2488_v57 = vsub.f32 %v5626_v49, %v2484_v30  ;;  %v2492_v1 = vsub.f32 %v5642_v15, %v2484_v30  ;;  %v2496_v59 = vsub.f32 %v5673_v27, %v2484_v30 }
 0xcaa   :  { %4120 = vpow2.f32 %v2539_v19  ;;  %v2500_v31 = vsub.f32 %v5710_v21, %v2484_v30  ;;  %v2504_v11 = vsub.f32 %v3895_v37, %v2484_v30  ;;  %v2487_v52 = vsub.f32 %v5628_v39, %v2475_v12 }
 0xcab   :  { %4122 = vpow2.f32 %v2505_v43  ;;  %v2511_v56 = vmul.f32 1.442695, %v2488_v57  ;;  %v2519_v16 = vmul.f32 1.442695, %v2492_v1  ;;  %v2527_v5 = vmul.f32 1.442695, %v2496_v59  ;;  %v5816_v20 = vpop.permute.xlu1 %2619 }
 0xcac   :  { %4124 = vpow2.f32 %v2513_v42  ;;  %v2491_v49 = vsub.f32 %v5648_v22, %v2475_v12  ;;  %v2495_v15 = vsub.f32 %v5677_v51, %v2475_v12  ;;  %v2499_v27 = vsub.f32 %v5721_v38, %v2475_v12  ;;  %v5810_v51 = vpop.permute.xlu0 %2621 }
 0xcad   :  { %4126 = vpow2.f32 %v2521_v29  ;;  %v2503_v21 = vsub.f32 %v5781_v17, %v2475_v12  ;;  %v2535_v39 = vmul.f32 1.442695, %v2500_v31  ;;  %v2543_v37 = vmul.f32 1.442695, %v2504_v11 }
 0xcae   :  { %4128 = vpow2.f32 %v2529_v8  ;;  %v2509_v22 = vmul.f32 1.442695, %v2487_v52  ;;  %v2517_v48 = vmul.f32 1.442695, %v2491_v49  ;;  %v2525_v35 = vmul.f32 1.442695, %v2495_v15 }
 0xcaf   :  { %4130 = vpow2.f32 %v2537_v14  ;;  %v2533_v60 = vmul.f32 1.442695, %v2499_v27  ;;  %v2541_v30 = vmul.f32 1.442695, %v2503_v21  ;;  %v5842_v11 = vpop.permute.xlu1 %2627 }
 0xcb0   :  { %v5802_v62 = vpop.eup %4112  ;;  %4132 = vpow2.f32 %v2511_v56  ;;  %v5836_v57 = vpop.permute.xlu0 %2617 }
 0xcb1   :  { %v5804_v55 = vpop.eup %4114  ;;  %v2554_v10 = vsel %vm311_vm0, %v5802_v62, 0.0  ;;  %4134 = vpow2.f32 %v2519_v16 }
 0xcb2   :  { %v5808_v13 = vpop.eup %4116  ;;  %v2555_v38 = vsel %vm311_vm0, %v5804_v55, 0.0  ;;  %4136 = vpow2.f32 %v2527_v5 }
 0xcb3   :  { %v5814_v17 = vpop.eup %4118  ;;  %v2556_v63 = vadd.f32 %v2555_v38, %v2554_v10  ;;  %4138 = vpow2.f32 %v2535_v39  ;;  %v2557_v54 = vsel %vm311_vm0, %v5808_v13, 0.0 }
 0xcb4   :  { %v5818_v24 = vpop.eup %4120  ;;  %4140 = vpow2.f32 %v2543_v37  ;;  %v2559_v58 = vsel %vm311_vm0, %v5814_v17, 0.0 }
 0xcb5   :  { %v5822_v19 = vpop.eup %4122  ;;  %v2558_v43 = vadd.f32 %v2557_v54, %v2556_v63  ;;  %4142 = vpow2.f32 %v2509_v22  ;;  %v2561_v1 = vsel %vm311_vm0, %v5818_v24, 0.0  ;;  %v5864_v63 = vpop.permute.xlu0 %2625 }
 0xcb6   :  { %v5824_v28 = vpop.eup %4124  ;;  %v2545_v42 = vsel %vm311_vm0, %v5822_v19, 0.0  ;;  %4144 = vpow2.f32 %v2517_v48 }
 0xcb7   :  { %v5830_v12 = vpop.eup %4126  ;;  %v2560_v29 = vadd.f32 %v2559_v58, %v2558_v43  ;;  %v2546_v8 = vsel %vm311_vm0, %v5824_v28, 0.0  ;;  %4146 = vpow2.f32 %v2525_v35  ;;  %v2632_v43 = vpop.permute.xlu1 %2631 }
 0xcb8   :  { %v5834_v14 = vpop.eup %4128  ;;  %v2547_v59 = vadd.f32 %v2546_v8, %v2545_v42  ;;  %4148 = vpow2.f32 %v2533_v60  ;;  %v2548_v56 = vsel %vm311_vm0, %v5830_v12, 0.0 }
 0xcb9   :  { %v5840_v31 = vpop.eup %4130  ;;  %v2562_v52 = vadd.f32 %v2561_v1, %v2560_v29  ;;  %4150 = vpow2.f32 %v2541_v30  ;;  %v2550_v15 = vsel %vm311_vm0, %v5834_v14, 0.0 }
 0xcba   :  { %v5846_v16 = vpop.eup %4132  ;;  %v2549_v5 = vadd.f32 %v2548_v56, %v2547_v59  ;;  %v2552_v22 = vsel %vm311_vm0, %v5840_v31, 0.0 }
 0xcbb   :  { %v5848_v49 = vpop.eup %4134  ;;  %4152 = vrcp.f32 %v2562_v52  ;;  %v2572_v27 = vsel %vm311_vm0, %v5846_v16, 0.0 }
 0xcbc   :  { %v5854_v21 = vpop.eup %4136  ;;  %v2551_v39 = vadd.f32 %v2550_v15, %v2549_v5  ;;  %v2573_v37 = vsel %vm311_vm0, %v5848_v49, 0.0 }
 0xcbd   :  { %v5858_v10 = vpop.eup %4138  ;;  %v2574_v38 = vadd.f32 %v2573_v37, %v2572_v27  ;;  %v2575_v54 = vsel %vm311_vm0, %v5854_v21, 0.0  ;;  %v2630_v37 = vpop.permute.xlu0 %2629 }
 0xcbe   :  { %v5862_v48 = vpop.eup %4140  ;;  %v2553_v35 = vadd.f32 %v2552_v22, %v2551_v39  ;;  %v2577_v30 = vsel %vm311_vm0, %v5858_v10, 0.0 }
 0xcbf   :  { %v5868_v60 = vpop.eup %4142  ;;  %v2576_v58 = vadd.f32 %v2575_v54, %v2574_v38  ;;  %v2579_v56 = vsel %vm311_vm0, %v5862_v48, 0.0 }
 0xcc0   :  { %v5870_v42 = vpop.eup %4144  ;;  %4154 = vrcp.f32 %v2553_v35  ;;  %v2563_v29 = vsel %vm311_vm0, %v5868_v60, 0.0  ;;  %v2636_v35 = vpop.permute.xlu1 %2635 }
 0xcc1   :  { %v5876_v8 = vpop.eup %4146  ;;  %v2578_v1 = vadd.f32 %v2577_v30, %v2576_v58  ;;  %v2564_v59 = vsel %vm311_vm0, %v5870_v42, 0.0 }
 0xcc2   :  { %v5880_v52 = vpop.eup %4148  ;;  %v2565_v5 = vadd.f32 %v2564_v59, %v2563_v29  ;;  %v2566_v27 = vsel %vm311_vm0, %v5876_v8, 0.0 }
 0xcc3   :  { %v2580_v15 = vadd.f32 %v2579_v56, %v2578_v1  ;;  %v5886_v39 = vpop.eup %4150  ;;  %v2568_v54 = vsel %vm311_vm0, %v5880_v52, 0.0 }
 0xcc4   :  { %v2567_v22 = vadd.f32 %v2566_v27, %v2565_v5  ;;  %v2570_v1 = vsel %vm311_vm0, %v5886_v39, 0.0 }
 0xcc5   :  { %v4153_v38 = vpop.eup %4152  ;;  %4156 = vrcp.f32 %v2580_v15 }
 0xcc6   :  { %v2569_v58 = vadd.f32 %v2568_v54, %v2567_v22  ;;  %v2586_v30 = vmul.f32 %v4153_v38, %v5802_v62  ;;  %v2590_v53 = vmul.f32 %v4153_v38, %v5804_v55  ;;  %v2594_v29 = vmul.f32 %v4153_v38, %v5808_v13  ;;  %v2640_v62 = vpop.permute.xlu1 %2639  ;;  %v2634_v55 = vpop.permute.xlu0 %2633 }
 0xcc7   :  { %v2598_v59 = vmul.f32 %v4153_v38, %v5814_v17  ;;  %v2602_v56 = vmul.f32 %v4153_v38, %v5818_v24 }
 0xcc8   :  { %v2571_v5 = vadd.f32 %v2570_v1, %v2569_v58  ;;  %v2662_v15 = vmul.f32 %v5784_v33, %v2586_v30  ;;  %v2666_v27 = vmul.f32 %v5796_v23, %v2590_v53  ;;  %v2670_v7 = vmul.f32 %v2632_v43, %v2594_v29 }
 0xcc9   :  { %v2674_v22 = vmul.f32 %v2598_v59, %v5296_v3  ;;  %v2678_v44 = vmul.f32 %v2640_v62, %v2602_v56 }
 0xcca   :  { %v4155_v54 = vpop.eup %4154  ;;  %4158 = vrcp.f32 %v2571_v5  ;;  %v2690_v13 = vsel %vm311_vm0, %v2662_v15, 0.0  ;;  %v2691_v41 = vsel %vm311_vm0, %v2666_v27, 0.0  ;;  %v2693_v30 = vsel %vm311_vm0, %v2670_v7, 0.0  ;;  %v2638_v29 = vpop.permute.xlu0 %2637 }
 0xccb   :  { %v2585_v17 = vmul.f32 %v4155_v54, %v5822_v19  ;;  %v2589_v24 = vmul.f32 %v4155_v54, %v5824_v28  ;;  %v2593_v33 = vmul.f32 %v4155_v54, %v5830_v12  ;;  %v2597_v53 = vmul.f32 %v4155_v54, %v5834_v14 }
 0xccc   :  { %v2601_v23 = vmul.f32 %v4155_v54, %v5840_v31  ;;  %v2692_v3 = vadd.f32 %v2691_v41, %v2690_v13  ;;  %v2695_v19 = vsel %vm311_vm0, %v2674_v22, 0.0  ;;  %v2697_v28 = vsel %vm311_vm0, %v2678_v44, 0.0 }
 0xccd   :  { %v2661_v43 = vmul.f32 %v5794_v4, %v2585_v17  ;;  %v2665_v38 = vmul.f32 %v5810_v51, %v2589_v24  ;;  %v2669_v58 = vmul.f32 %v2630_v37, %v2593_v33  ;;  %v2673_v12 = vmul.f32 %v2597_v53, %v5311_v26 }
 0xcce   :  { %v2694_v1 = vadd.f32 %v2693_v30, %v2692_v3  ;;  %v2677_v14 = vmul.f32 %v2638_v29, %v2601_v23  ;;  %v2642_v29 = vpop.permute.xlu0 %2641 }
 0xccf   :  { %v4157_v59 = vpop.eup %4156  ;;  %v2681_v31 = vsel %vm311_vm0, %v2661_v43, 0.0  ;;  %v2682_v41 = vsel %vm311_vm0, %v2665_v38, 0.0  ;;  %v2684_v51 = vsel %vm311_vm0, %v2669_v58, 0.0  ;;  %v2686_v62 = vsel %vm311_vm0, %v2673_v12, 0.0  ;;  %v2644_v43 = vpop.permute.xlu1 %2643 }
 0xcd0   :  { %v2683_v4 = vadd.f32 %v2682_v41, %v2681_v31  ;;  %v2696_v37 = vadd.f32 %v2695_v19, %v2694_v1  ;;  %v2588_v7 = vmul.f32 %v4157_v59, %v5846_v16  ;;  %v2592_v56 = vmul.f32 %v4157_v59, %v5848_v49 }
 0xcd1   :  { %v2596_v5 = vmul.f32 %v4157_v59, %v5854_v21  ;;  %v2600_v44 = vmul.f32 %v4157_v59, %v5858_v10  ;;  %v2604_v15 = vmul.f32 %v4157_v59, %v5862_v48  ;;  %v2688_v16 = vsel %vm311_vm0, %v2677_v14, 0.0 }
 0xcd2   :  { %v2685_v26 = vadd.f32 %v2684_v51, %v2683_v4  ;;  %v2698_v27 = vadd.f32 %v2697_v28, %v2696_v37  ;;  %v2664_v22 = vmul.f32 %v5816_v20, %v2588_v7  ;;  %v2668_v54 = vmul.f32 %v5842_v11, %v2592_v56  ;;  %v4190_v51 = vld [vmem:[#allocation13] sm:$0xff]   ;;  %v4191_v37 = vld [vmem:[#allocation13 + $0x8] sm:$0xff]  }
 0xcd3   :  { %v2672_v24 = vmul.f32 %v2636_v35, %v2596_v5  ;;  %v2676_v38 = vmul.f32 %v2600_v44, %v5272_v36  ;;  %v2680_v58 = vmul.f32 %v2644_v43, %v2604_v15  ;;  %v6135_v7 = vmov 0.0|0.0   ;;  %v4192_v44 = vld [vmem:[#allocation16] ss:$0 sm:$0xff] }
 0xcd4   :  { %v4159_v13 = vpop.eup %4158  ;;  %v2687_v17 = vadd.f32 %v2686_v62, %v2685_v26  ;;  %v2708_v49 = vsel %vm311_vm0, %v2664_v22, 0.0  ;;  %v2709_v11 = vsel %vm311_vm0, %v2668_v54, 0.0 }
 0xcd5   :  { %v2587_v21 = vmul.f32 %v4159_v13, %v5868_v60  ;;  %v2591_v10 = vmul.f32 %v4159_v13, %v5870_v42  ;;  %v2595_v48 = vmul.f32 %v4159_v13, %v5876_v8  ;;  %v2599_v33 = vmul.f32 %v4159_v13, %v5880_v52 }
 0xcd6   :  { %v2689_v20 = vadd.f32 %v2688_v16, %v2687_v17  ;;  %v2603_v53 = vmul.f32 %v4159_v13, %v5886_v39  ;;  %v2710_v42 = vadd.f32 %v2709_v11, %v2708_v49  ;;  %v2711_v39 = vsel %vm311_vm0, %v2672_v24, 0.0 }
 0xcd7   :  { %v2663_v23 = vmul.f32 %v5836_v57, %v2587_v21  ;;  %v2667_v3 = vmul.f32 %v5864_v63, %v2591_v10  ;;  %v2671_v35 = vmul.f32 %v2634_v55, %v2595_v48  ;;  %v2675_v8 = vmul.f32 %v2599_v33, %v5294_v18 }
 0xcd8   :  { %v2717_v60 = vpack.c.bf16 %v2698_v27, %v2689_v20  ;;  %v2712_v57 = vadd.f32 %v2711_v39, %v2710_v42  ;;  %v2679_v63 = vmul.f32 %v2642_v29, %v2603_v53  ;;  %v2713_v36 = vsel %vm311_vm0, %v2676_v38, 0.0 }
 0xcd9   :  { %v2699_v52 = vsel %vm311_vm0, %v2663_v23, 0.0  ;;  %v2700_v30 = vsel %vm311_vm0, %v2667_v3, 0.0  ;;  %v2702_v55 = vsel %vm311_vm0, %v2671_v35, 0.0  ;;  %v2704_v18 = vsel %vm311_vm0, %v2675_v8, 0.0 }
 0xcda   :  { %v2701_v1 = vadd.f32 %v2700_v30, %v2699_v52  ;;  %3900 = vmatprep.mubr.msk.bf16.mxu0 %vm311_vm0, %v2717_v60  ;;  %v2714_v28 = vadd.f32 %v2713_v36, %v2712_v57  ;;  %v2715_v59 = vsel %vm311_vm0, %v2680_v58, 0.0  ;;  %v2706_v31 = vsel %vm311_vm0, %v2679_v63, 0.0 }
 0xcdc   :  { %v2703_v19 = vadd.f32 %v2702_v55, %v2701_v1  ;;  %v2716_v14 = vadd.f32 %v2715_v59, %v2714_v28 }
 0xcde   :  { %v2705_v12 = vadd.f32 %v2704_v18, %v2703_v19 }
 0xce0   :  { %v2707_v41 = vadd.f32 %v2706_v31, %v2705_v12 }
 0xce2   :  { %v2718_v4 = vpack.c.bf16 %v2716_v14, %v2707_v41 }
 0xce4   :  { %3901 = vmatmul.mubr.msk.bf16.vlgmr.msra.gmra.mrb[32].mxu0 %vm311_vm0, %v2718_v4 }
 0xce5   :  { %3905 = vmatpush3.bf16.msra.mxu0 %v4190_v51 }
 0xce6   :  { %3906 = vmatprep.subr.bf16.mxu0 %v4191_v37 }
 0xce9   :  { %3907 = vmatpush3.bf16.msra.mxu0 %v4191_v37 }
 0xcea   :  { %3983 = vmatprep.subr.bf16.mxu0 %v6135_v7 }
 0xdb7   :  { %v3902_v56 = vpop.f32.mrb[32].mxu0 }
 0xdb8   :  { %v2759_v5 = vpop.f32.mrb[33].mxu0  ;;  %v2768_v15 = vadd.f32 %v4192_v44, %v3902_v56 }
 0xdb9   :  { %v2760_v26 = vadd.f32 %v4192_v44, %v2759_v5  ;;  %v3903_v27 = vpop.f32.mrb[34].mxu0 }
 0xdba   :  { %v2762_v22 = vpop.f32.mrb[35].mxu0  ;;  %v2776_v13 = vmax.f32 %v2768_v15, 0.0  ;;  %v2771_v17 = vadd.f32 %v4192_v44, %v3903_v27 }
 0xdbb   :  { %v2774_v62 = vmax.f32 %v2760_v26, 0.0  ;;  %v2763_v54 = vadd.f32 %v4192_v44, %v2762_v22 }
 0xdbc   :  { %v2777_v21 = vmax.f32 %v2771_v17, 0.0  ;;  %v2784_v10 = vsel %vm311_vm0, %v2776_v13, 0.0 }
 0xdbd   :  { %v2775_v16 = vmax.f32 %v2763_v54, 0.0  ;;  %v2778_v24 = vsel %vm311_vm0, %v2774_v62, 0.0 }
 0xdbe   :  { %2779 = vadd.xlane.f32.xlu0 %v2778_v24  ;;  %v2787_v48 = vsel %vm311_vm0, %v2777_v21, 0.0 }
 0xdbf   :  { %v2781_v49 = vsel %vm311_vm0, %v2775_v16, 0.0 }
 0xdc0   :  { %2782 = vadd.xlane.f32.xlu1 %v2781_v49 }
 0xdc2   :  { %2785 = vadd.xlane.f32.xlu0 %v2784_v10 }
 0xdc6   :  { %2788 = vadd.xlane.f32.xlu0 %v2787_v48 }
 0xe4b   :  { %v2780_v33 = vpop.xlane.xlu0 %2779 }
 0xe4c   :  { %v2790_v20 = vmul.f32 0.03125, %v2780_v33  ;;  %v6136_v33 = vmov 0.0  }
 0xe4d   :  { %v2783_v53 = vpop.xlane.xlu1 %2782 }
 0xe4e   :  { %v2794_v11 = vsub.f32 %v2774_v62, %v2790_v20  ;;  %v2791_v23 = vmul.f32 0.03125, %v2783_v53 }
 0xe4f   :  { %v2786_v3 = vpop.xlane.xlu0 %2785 }
 0xe50   :  { %v2795_v35 = vsub.f32 %v2775_v16, %v2791_v23  ;;  %v2792_v43 = vmul.f32 0.03125, %v2786_v3  ;;  %v2798_v38 = vmul.f32 %v2794_v11, %v2794_v11 }
 0xe52   :  { %v2796_v60 = vsub.f32 %v2776_v13, %v2792_v43  ;;  %v2802_v58 = vsel %vm311_vm0, %v2798_v38, 0.0  ;;  %v2799_v42 = vmul.f32 %v2795_v35, %v2795_v35 }
 0xe53   :  { %2803 = vadd.xlane.f32.xlu1 %v2802_v58  ;;  %v2789_v8 = vpop.xlane.xlu0 %2788 }
 0xe54   :  { %v2793_v52 = vmul.f32 0.03125, %v2789_v8  ;;  %v2805_v30 = vsel %vm311_vm0, %v2799_v42, 0.0  ;;  %v2800_v39 = vmul.f32 %v2796_v60, %v2796_v60 }
 0xe55   :  { %2806 = vadd.xlane.f32.xlu0 %v2805_v30 }
 0xe56   :  { %v2797_v29 = vsub.f32 %v2777_v21, %v2793_v52  ;;  %v2808_v1 = vsel %vm311_vm0, %v2800_v39, 0.0 }
 0xe57   :  { %2809 = vadd.xlane.f32.xlu1 %v2808_v1 }
 0xe58   :  { %v2801_v57 = vmul.f32 %v2797_v29, %v2797_v29 }
 0xe5a   :  { %v2811_v63 = vsel %vm311_vm0, %v2801_v57, 0.0 }
 0xe5b   :  { %2812 = vadd.xlane.f32.xlu0 %v2811_v63 }
 0xe68   :  { %2895 = vrot.lane.b32.xlu1 %v5663_v46, %s4587_s17 }
 0xee0   :  { %v2804_v55 = vpop.xlane.xlu1 %2803 }
 0xee1   :  { %v2814_v36 = vmul.f32 0.03125, %v2804_v55 }
 0xee2   :  { %v2807_v19 = vpop.xlane.xlu0 %2806 }
 0xee3   :  { %v2818_v28 = vadd.f32 1e-12, %v2814_v36  ;;  %v2815_v18 = vmul.f32 0.03125, %v2807_v19 }
 0xee4   :  { %v2810_v59 = vpop.xlane.xlu1 %2809 }
 0xee5   :  { %4160 = vrsqrt.f32 %v2818_v28  ;;  %v2819_v12 = vadd.f32 1e-12, %v2815_v18  ;;  %v2816_v14 = vmul.f32 0.03125, %v2810_v59 }
 0xee7   :  { %4162 = vrsqrt.f32 %v2819_v12  ;;  %v2820_v31 = vadd.f32 1e-12, %v2816_v14 }
 0xee8   :  { %v2813_v41 = vpop.xlane.xlu0 %2812 }
 0xee9   :  { %4164 = vrsqrt.f32 %v2820_v31  ;;  %v2817_v4 = vmul.f32 0.03125, %v2813_v41 }
 0xeeb   :  { %v2821_v51 = vadd.f32 1e-12, %v2817_v4 }
 0xeed   :  { %4166 = vrsqrt.f32 %v2821_v51 }
 0xeef   :  { %v4161_v37 = vpop.eup %4160 }
 0xef0   :  { %v2826_v56 = vmul.f32 %v4161_v37, %v2794_v11 }
 0xef1   :  { %v4163_v5 = vpop.eup %4162 }
 0xef2   :  { %v2827_v44 = vmul.f32 %v4163_v5, %v2795_v35  ;;  %v2830_v15 = vmul.f32 %v2826_v56, %v5377_v50 }
 0xef3   :  { %v4165_v26 = vpop.eup %4164 }
 0xef4   :  { %v2828_v27 = vmul.f32 %v4165_v26, %v2796_v60  ;;  %v2831_v22 = vmul.f32 %v2827_v44, %v5377_v50  ;;  %v5960_v62 = vadd.f32 %v2830_v15, %v5383_v25 }
 0xef6   :  { %v5963_v54 = vadd.f32 %v2831_v22, %v5383_v25  ;;  %v2832_v17 = vmul.f32 %v2828_v27, %v5377_v50 }
 0xef7   :  { %v4167_v13 = vpop.eup %4166 }
 0xef8   :  { %v2829_v16 = vmul.f32 %v4167_v13, %v2797_v29  ;;  %v2838_v24 = vpack.c.bf16 %v5963_v54, %v5960_v62  ;;  %v5971_v21 = vadd.f32 %v2832_v17, %v5383_v25 }
 0xefa   :  { %v2833_v49 = vmul.f32 %v2829_v16, %v5377_v50  ;;  %3908 = vmatprep.mubr.msk.bf16.mxu0 %vm311_vm0, %v2838_v24 }
 0xefc   :  { %v5974_v10 = vadd.f32 %v2833_v49, %v5383_v25  ;;  %v4193_v25 = vld [vmem:[#allocation14] ss:$0 sm:$0xff] }
 0xefe   :  { %v2839_v48 = vpack.c.bf16 %v5974_v10, %v5971_v21 }
 0xf00   :  { %3909 = vmatmul.mubr.msk.bf16.vlgmr.msra.gmra.mrb[36].mxu0 %vm311_vm0, %v2839_v48 }
 0xf01   :  { %3985 = vmatpush3.bf16.msra.mxu0 %v4920_v61  ;;  %3920 = vmatprep.mubr.msk.f32.mxu0 %vm4591_vm5, %v6136_v33 }
 0xf02   :  { %3986 = vmatprep.subr.bf16.mxu0 %v6135_v7  ;;  %v2896_v7 = vpop.permute.xlu1 %2895 }
 0xf03   :  { %v2898_v38 = vmul.f32 %v2896_v7, %v5663_v46 }
 0xf05   :  { %3988 = vmatpush3.bf16.msra.mxu0 %v4930_v0 }
 0xf06   :  { %3990 = vmatprep.subr.bf16.mxu0 %v4920_v61 }
 0xfd3   :  { %v3910_v50 = vpop.f32.mrb[36].mxu0 }
 0xfd4   :  { %v2880_v20 = vpop.f32.mrb[37].mxu0  ;;  %v2889_v43 = vadd.f32 %v4193_v25, %v3910_v50 }
 0xfd5   :  { %v2881_v53 = vadd.f32 %v4193_v25, %v2880_v20  ;;  %v3911_v11 = vpop.f32.mrb[38].mxu0 }
 0xfd6   :  { %v2883_v23 = vpop.f32.mrb[39].mxu0  ;;  %v2892_v35 = vadd.f32 %v4193_v25, %v3911_v11 }
 0xfd7   :  { %v2884_v3 = vadd.f32 %v4193_v25, %v2883_v23  ;;  %2978 = vrot.lane.b32.xlu0 %v2881_v53, %s4568_s23 }
 0xfd9   :  { %2980 = vrot.lane.b32.xlu1 %v2884_v3, %s4568_s23 }
 0xfdb   :  { %2984 = vrot.lane.b32.xlu0 %v2892_v35, %s4568_s23 }
 0xfdd   :  { %2982 = vrot.lane.b32.xlu1 %v2889_v43, %s4568_s23 }
 0xfe1   :  { %2900 = vrot.lane.b32.xlu1 %v2898_v38, %s4568_s23 }
0x1049   :  { %v2979_v60 = vpop.permute.xlu0 %2978 }
0x104a   :  { %v2990_v58 = vmul.f32 %v2979_v60, %v5689_v9 }
0x104b   :  { %v2981_v42 = vpop.permute.xlu1 %2980 }
0x104c   :  { %v2991_v8 = vmul.f32 %v2981_v42, %v5704_v32  ;;  %2998 = vrot.lane.b32.xlu0 %v2990_v58, %s4568_s23 }
0x104d   :  { %v2985_v52 = vpop.permute.xlu0 %2984 }
0x104e   :  { %3000 = vrot.lane.b32.xlu1 %v2991_v8, %s4568_s23  ;;  %v2993_v39 = vmul.f32 %v2985_v52, %v5726_v47 }
0x104f   :  { %v2983_v30 = vpop.permute.xlu1 %2982 }
0x1050   :  { %v2992_v29 = vmul.f32 %v2983_v30, %v5708_v45 }
0x1052   :  { %3002 = vrot.lane.b32.xlu0 %v2992_v29, %s4568_s23  ;;  %3004 = vrot.lane.b32.xlu1 %v2993_v39, %s4568_s23  ;;  %s4593_s23 = smov [#allocation26]  }
0x1053   :  { %v2901_v46 = vpop.permute.xlu1 %2900  ;;  %s3529_s8 = sshll.u32 %s4593_s23, 4  ;;  %s3530_s8 = int_to_ptr.vmem [resolvable:$true] %s3529_s8 }
0x1054   :  { %3921 = vmatmul.mubr.msk.f32.vlgmr.msra.gmra.mrb[22].mxu0 %vm311_vm0, %v2901_v46  ;;  %s4527_s0 = scalar_lea.vmem %s3530_s8, 64  ;;  %p4532_p9 = scmp.lt.s32.totalorder %s3530_s8, %s3530_s8 }
0x1055   :  { %3992 = vmatpush3.bf16.msra.mxu0 %v4920_v61  ;;  %v4194_v61 = vld [vmem:[#allocation17] sm:$0xff]   ;;  %p4528_p8 = scmp.ne.s32.totalorder %s3530_s8, %s4527_s0  ;;  %p4533_p10 = scmp.lt.s32.totalorder %s4527_s0, %s4527_s0 }
0x1056   :  { %3285 = vrot.lane.b32.xlu0 %v2881_v53, %s4587_s17  ;;  %3287 = vrot.lane.b32.xlu1 %v2884_v3, %s4587_s17 }
0x1057   :  { %3994 = vmatprep.subr.bf16.mxu0 %v4930_v0  ;;  %p4534_p11 = por %p4533_p10, %p4532_p9 }
0x1059   :  { %3996 = vmatpush3.bf16.msra.mxu0 %v4930_v0  ;;  %v4195_v0 = vld [vmem:[#allocation17 + $0x8] sm:$0xff]   ;;  %p4535_p12 = pnand %p4534_p11, %p4528_p8 }
0x105a   :  { %3289 = vrot.lane.b32.xlu0 %v2889_v43, %s4587_s17  ;;  %3291 = vrot.lane.b32.xlu1 %v2892_v35, %s4587_s17 }
0x105b   :  { %3937 = vmatprep.subr.bf16.mxu0 %v6136_v33 }
0x10be   :  { %v2999_v9 = vpop.permute.xlu0 %2998 }
0x10bf   :  { %3931 = vmatprep.mubr.msk.f32.mxu0 %vm311_vm0, %v2999_v9 }
0x10c0   :  { %v3001_v32 = vpop.permute.xlu1 %3000 }
0x10c1   :  { %3932 = vmatmul.mubr.msk.f32.vlgmr.msra.gmra.mrb[40].mxu0 %vm311_vm0, %v3001_v32 }
0x10c2   :  { %3938 = vmatpush3.bf16.msra.mxu0 %v4194_v61 }
0x10c3   :  { %3939 = vmatprep.subr.bf16.mxu0 %v6136_v33 }
0x10c4   :  { %v3005_v45 = vpop.permute.xlu1 %3004  ;;  %v3003_v47 = vpop.permute.xlu0 %3002 }
0x10c5   :  { %3934 = vmatprep.mubr.msk.f32.mxu0 %vm311_vm0, %v3003_v47 }
0x10c6   :  { %3935 = vmatmul.mubr.msk.f32.gmra.mrb[42].mxu0 %vm311_vm0, %v3005_v45 }
0x10c7   :  { %3940 = vmatpush3.bf16.msra.mxu0 %v4195_v0  ;;  %3941 = vmatprep.mubr.msk.bf16.mxu0 %vm4591_vm5, %v6136_v33 }
0x1127   :  { %v6015_v1 = vpop.f32.mrb[22].mxu0 }
0x1128   :  { %v3922_v57 = vpop.f32.mrb[23].mxu0 }
0x1194   :  { %v3933_v63 = vpop.f32.mrb[40].mxu0 }
0x1195   :  { %v3106_v55 = vsel %vm311_vm0, %v3933_v63, -inf  ;;  %v3080_v36 = vpop.f32.mrb[41].mxu0 }
0x1196   :  { %v3107_v19 = vrot.slane %v3106_v55, 4  ;;  %v3099_v28 = vsel %vm311_vm0, %v3080_v36, -inf }
0x1197   :  { %v3100_v18 = vrot.slane %v3099_v28, 4 }
0x1198   :  { %v3108_v59 = vmax.f32 %v3106_v55, %v3107_v19 }
0x1199   :  { %v3101_v12 = vmax.f32 %v3099_v28, %v3100_v18  ;;  %v3936_v14 = vpop.f32.mrb[42].mxu0 }
0x119a   :  { %v3109_v31 = vrot.slane %v3108_v59, 2  ;;  %v3120_v41 = vsel %vm311_vm0, %v3936_v14, -inf  ;;  %v3090_v4 = vpop.f32.mrb[43].mxu0 }
0x119b   :  { %v3102_v51 = vrot.slane %v3101_v12, 2  ;;  %v3121_v37 = vrot.slane %v3120_v41, 4  ;;  %v3113_v56 = vsel %vm311_vm0, %v3090_v4, -inf }
0x119c   :  { %v3110_v5 = vmax.f32 %v3108_v59, %v3109_v31  ;;  %v3114_v44 = vrot.slane %v3113_v56, 4 }
0x119d   :  { %v3103_v15 = vmax.f32 %v3101_v12, %v3102_v51  ;;  %v3122_v26 = vmax.f32 %v3120_v41, %v3121_v37 }
0x119e   :  { %v3111_v27 = vrot.slane %v3110_v5, 1  ;;  %v3115_v22 = vmax.f32 %v3113_v56, %v3114_v44 }
0x119f   :  { %v3104_v13 = vrot.slane %v3103_v15, 1  ;;  %v3123_v17 = vrot.slane %v3122_v26, 2 }
0x11a0   :  { %v3112_v16 = vmax.f32 %v3110_v5, %v3111_v27  ;;  %v3116_v24 = vrot.slane %v3115_v22, 2 }
0x11a1   :  { %v3105_v49 = vmax.f32 %v3103_v15, %v3104_v13  ;;  %v3124_v48 = vmax.f32 %v3122_v26, %v3123_v17 }
0x11a2   :  { %v3117_v50 = vmax.f32 %v3115_v22, %v3116_v24 }
0x11a3   :  { %v3131_v20 = vsel %vm490_vm1, %v3112_v16, %v3105_v49  ;;  %v3125_v25 = vrot.slane %v3124_v48, 1 }
0x11a4   :  { %v3118_v53 = vrot.slane %v3117_v50, 1 }
0x11a5   :  { %v3126_v23 = vmax.f32 %v3124_v48, %v3125_v25 }
0x11a6   :  { %v3119_v11 = vmax.f32 %v3117_v50, %v3118_v53 }
0x11a8   :  { %v3132_v3 = vsel %vm492_vm2, %v3119_v11, %v3131_v20 }
0x11a9   :  { %v3133_v35 = vsel %vm494_vm3, %v3126_v23, %v3132_v3 }
0x11aa   :  { %v3135_v43 = vmax.f32 %v6015_v1, %v3133_v35 }
0x11ac   :  { %v3136_v7 = vsub.f32 %v6015_v1, %v3135_v43  ;;  %v3146_v38 = vrot.slane %v3135_v43, %v4986_v40 }
0x11ae   :  { %v3147_v60 = vcombine.high %v3146_v38, %v3146_v38  ;;  %v3154_v58 = vrot.slane %v3146_v38, %v4986_v40 }
0x11b0   :  { %v3161_v42 = vrot.slane %v3147_v60, %v4986_v40  ;;  %v3162_v8 = vcombine.high %v3154_v58, %v3154_v58  ;;  %v3167_v52 = vrot.slane %v3154_v58, %v4969_v34  ;;  %v2071_v58 = vadd.f32 %v5667_v6, %v5472_v2 }
0x11b2   :  { %v3163_v30 = vcombine.high %v3161_v42, %v3161_v42  ;;  %v3171_v39 = vrot.slane %v3161_v42, %v4969_v34  ;;  %v3175_v29 = vrot.slane %v3162_v8, %v4969_v34  ;;  %v3184_v46 = vsub.f32 %v3080_v36, %v3167_v52 }
0x11b4   :  { %v3179_v9 = vrot.slane %v3163_v30, %v4969_v34  ;;  %v3185_v32 = vsub.f32 %v3933_v63, %v3171_v39  ;;  %v3186_v61 = vsub.f32 %v3090_v4, %v3175_v29  ;;  %v3188_v45 = vmul.f32 1.442695, %v3184_v46  ;;  %v3286_v29 = vpop.permute.xlu0 %3285 }
0x11b5   :  { %v3137_v63 = vmul.f32 1.442695, %v3136_v7 }
0x11b6   :  { %v3187_v47 = vsub.f32 %v3936_v14, %v3179_v9  ;;  %4168 = vpow2.f32 %v3188_v45  ;;  %v3190_v0 = vmul.f32 1.442695, %v3185_v32  ;;  %v3192_v1 = vmul.f32 1.442695, %v3186_v61  ;;  %v3288_v61 = vpop.permute.xlu1 %3287 }
0x11b8   :  { %4170 = vpow2.f32 %v3190_v0  ;;  %v3194_v57 = vmul.f32 1.442695, %v3187_v47 }
0x11b9   :  { %4172 = vpow2.f32 %v3192_v1 }
0x11ba   :  { %4174 = vpow2.f32 %v3194_v57 }
0x11bb   :  { %4176 = vpow2.f32 %v3137_v63 }
0x11c0   :  { %v4169_v55 = vpop.eup %4168 }
0x11c1   :  { %v3196_v19 = vsel %vm311_vm0, %v4169_v55, 0.0 }
0x11c2   :  { %v4171_v28 = vpop.eup %4170  ;;  %v3197_v18 = vrot.slane %v3196_v19, 4 }
0x11c3   :  { %v4173_v59 = vpop.eup %4172  ;;  %v3203_v36 = vsel %vm311_vm0, %v4171_v28, 0.0 }
0x11c4   :  { %v4175_v12 = vpop.eup %4174  ;;  %v3198_v31 = vadd.f32 %v3197_v18, %v3196_v19  ;;  %v3204_v41 = vrot.slane %v3203_v36, 4  ;;  %v3210_v14 = vsel %vm311_vm0, %v4173_v59, 0.0  ;;  %v3290_v18 = vpop.permute.xlu0 %3289 }
0x11c5   :  { %v3211_v4 = vrot.slane %v3210_v14, 4  ;;  %v3217_v51 = vsel %vm311_vm0, %v4175_v12, 0.0  ;;  %v4177_v43 = vpop.eup %4176 }
0x11c6   :  { %v3199_v37 = vrot.slane %v3198_v31, 2  ;;  %v3205_v56 = vadd.f32 %v3204_v41, %v3203_v36  ;;  %v3218_v5 = vrot.slane %v3217_v51, 4  ;;  %v3292_v41 = vpop.permute.xlu1 %3291 }
0x11c7   :  { %v3212_v44 = vadd.f32 %v3211_v4, %v3210_v14 }
0x11c8   :  { %v3200_v15 = vadd.f32 %v3199_v37, %v3198_v31  ;;  %v3206_v26 = vrot.slane %v3205_v56, 2  ;;  %v3219_v27 = vadd.f32 %v3218_v5, %v3217_v51 }
0x11c9   :  { %v3213_v22 = vrot.slane %v3212_v44, 2 }
0x11ca   :  { %v3201_v13 = vrot.slane %v3200_v15, 1  ;;  %v3207_v17 = vadd.f32 %v3206_v26, %v3205_v56  ;;  %v3220_v16 = vrot.slane %v3219_v27, 2 }
0x11cb   :  { %v3214_v24 = vadd.f32 %v3213_v22, %v3212_v44 }
0x11cc   :  { %v3208_v49 = vrot.slane %v3207_v17, 1  ;;  %v3221_v48 = vadd.f32 %v3220_v16, %v3219_v27  ;;  %v3202_v20 = vadd.f32 %v3201_v13, %v3200_v15 }
0x11cd   :  { %v3215_v50 = vrot.slane %v3214_v24, 1 }
0x11ce   :  { %v3209_v25 = vadd.f32 %v3208_v49, %v3207_v17  ;;  %v3222_v53 = vrot.slane %v3221_v48, 1 }
0x11cf   :  { %v3216_v11 = vadd.f32 %v3215_v50, %v3214_v24 }
0x11d0   :  { %v3223_v23 = vadd.f32 %v3222_v53, %v3221_v48  ;;  %v3228_v3 = vsel %vm490_vm1, %v3209_v25, %v3202_v20 }
0x11d1   :  { %v3229_v35 = vsel %vm492_vm2, %v3216_v11, %v3228_v3 }
0x11d2   :  { %v3230_v7 = vsel %vm494_vm3, %v3223_v23, %v3229_v35 }
0x11d3   :  { %v3232_v38 = vadd.f32 %v4177_v43, %v3230_v7 }
0x11d5   :  { %4178 = vrcp.f32 %v3232_v38 }
0x11df   :  { %v4179_v60 = vpop.eup %4178 }
0x11e0   :  { %v3243_v42 = vrot.slane %v4179_v60, %v4986_v40  ;;  %v3234_v8 = vmul.f32 %v4179_v60, %v4177_v43 }
0x11e2   :  { %v3244_v52 = vcombine.high %v3243_v42, %v3243_v42  ;;  %v3251_v30 = vrot.slane %v3243_v42, %v4986_v40  ;;  %v3235_v39 = vmul.f32 %v3234_v8, %v2071_v58  ;;  %v4196_v58 = vld [vmem:[#allocation19] ss:$0 sm:$0xff] }
0x11e4   :  { %v3258_v46 = vrot.slane %v3244_v52, %v4986_v40  ;;  %v3259_v9 = vcombine.high %v3251_v30, %v3251_v30  ;;  %v3264_v32 = vrot.slane %v3251_v30, %v4969_v34 }
0x11e6   :  { %v3260_v45 = vcombine.high %v3258_v46, %v3258_v46  ;;  %v3268_v47 = vrot.slane %v3258_v46, %v4969_v34  ;;  %v3272_v0 = vrot.slane %v3259_v9, %v4969_v34  ;;  %v3281_v2 = vmul.f32 %v4169_v55, %v3264_v32  ;;  %v4040_v9 = vld [vmem:[#allocation23] sm:$0xff]  }
0x11e7   :  { %3946 = vmatpush3.bf16.msra.mxu1 %v4040_v9 }
0x11e8   :  { %v3276_v6 = vrot.slane %v3260_v45, %v4969_v34  ;;  %v3282_v1 = vmul.f32 %v4171_v28, %v3268_v47  ;;  %v3283_v57 = vmul.f32 %v4173_v59, %v3272_v0  ;;  %v3297_v19 = vmul.f32 %v3286_v29, %v3281_v2  ;;  %3947 = vmatprep.subr.bf16.mxu1 %v6136_v33  ;;  %v4041_v0 = vld [vmem:[#allocation23 + $0x8] sm:$0xff]  }
0x11e9   :  { %v3398_v2 = vsel %vm311_vm0, %v5960_v62, 0.0  ;;  %v3419_v33 = vsel %vm311_vm0, %v5974_v10, 0.0 }
0x11ea   :  { %v3284_v36 = vmul.f32 %v4175_v12, %v3276_v6  ;;  %v3298_v63 = vmul.f32 %v3288_v61, %v3282_v1  ;;  %v3299_v31 = vmul.f32 %v3290_v18, %v3283_v57  ;;  %v3301_v40 = vsel %vm311_vm0, %v3297_v19, 0.0 }
0x11eb   :  { %v3302_v14 = vrot.slane %v3301_v40, 4  ;;  %3948 = vmatpush3.bf16.msra.mxu1 %v4041_v0  ;;  %v3405_v6 = vsel %vm311_vm0, %v5963_v54, 0.0  ;;  %v3412_v1 = vsel %vm311_vm0, %v5971_v21, 0.0  ;;  %v3399_v57 = vrot.slane %v3398_v2, 4  ;;  %v3632_v0 = vld [vmem:[#allocation25] ss:$0 sm:$0xff] }
0x11ec   :  { %v3315_v4 = vsel %vm311_vm0, %v3299_v31, 0.0  ;;  %v3300_v51 = vmul.f32 %v3292_v41, %v3284_v36  ;;  %v3308_v37 = vsel %vm311_vm0, %v3298_v63, 0.0  ;;  %v3406_v19 = vrot.slane %v3405_v6, 4 }
0x11ed   :  { %v3303_v56 = vadd.f32 %v3302_v14, %v3301_v40  ;;  %v3316_v55 = vrot.slane %v3315_v4, 4  ;;  %v3309_v5 = vrot.slane %v3308_v37, 4  ;;  %v3413_v18 = vrot.slane %v3412_v1, 4 }
0x11ee   :  { %v3322_v34 = vsel %vm311_vm0, %v3300_v51, 0.0  ;;  %v3420_v36 = vrot.slane %v3419_v33, 4  ;;  %v3400_v63 = vadd.f32 %v3399_v57, %v3398_v2  ;;  %v3407_v40 = vadd.f32 %v3406_v19, %v3405_v6 }
0x11ef   :  { %v3304_v28 = vrot.slane %v3303_v56, 2  ;;  %v3317_v59 = vadd.f32 %v3316_v55, %v3315_v4  ;;  %v3310_v44 = vadd.f32 %v3309_v5, %v3308_v37  ;;  %v3323_v12 = vrot.slane %v3322_v34, 4 }
0x11f0   :  { %v3414_v41 = vadd.f32 %v3413_v18, %v3412_v1  ;;  %v3421_v14 = vadd.f32 %v3420_v36, %v3419_v33  ;;  %v3401_v51 = vrot.slane %v3400_v63, 2  ;;  %v3408_v37 = vrot.slane %v3407_v40, 2 }
0x11f1   :  { %v3318_v15 = vrot.slane %v3317_v59, 2  ;;  %v3305_v26 = vadd.f32 %v3304_v28, %v3303_v56  ;;  %v3311_v27 = vrot.slane %v3310_v44, 2  ;;  %v3324_v22 = vadd.f32 %v3323_v12, %v3322_v34 }
0x11f2   :  { %v3415_v54 = vrot.slane %v3414_v41, 2  ;;  %v3422_v56 = vrot.slane %v3421_v14, 2  ;;  %v3402_v21 = vadd.f32 %v3401_v51, %v3400_v63  ;;  %v3409_v55 = vadd.f32 %v3408_v37, %v3407_v40 }
0x11f3   :  { %v3319_v13 = vadd.f32 %v3318_v15, %v3317_v59  ;;  %v3306_v17 = vrot.slane %v3305_v26, 1  ;;  %v3312_v16 = vadd.f32 %v3311_v27, %v3310_v44  ;;  %v3325_v24 = vrot.slane %v3324_v22, 2 }
0x11f4   :  { %v3416_v5 = vadd.f32 %v3415_v54, %v3414_v41  ;;  %v3423_v10 = vadd.f32 %v3422_v56, %v3421_v14  ;;  %v3403_v34 = vrot.slane %v3402_v21, 1  ;;  %v3410_v28 = vrot.slane %v3409_v55, 1 }
0x11f5   :  { %v3320_v49 = vrot.slane %v3319_v13, 1  ;;  %v3313_v48 = vrot.slane %v3312_v16, 1  ;;  %v3326_v50 = vadd.f32 %v3325_v24, %v3324_v22  ;;  %v3307_v25 = vadd.f32 %v3306_v17, %v3305_v26  ;;  %v6137_v17 = vld [vmem:[#allocation38_spill] sm:$0xff] }
0x11f6   :  { %v3417_v59 = vrot.slane %v3416_v5, 1  ;;  %v3424_v44 = vrot.slane %v3423_v10, 1  ;;  %v3404_v15 = vadd.f32 %v3403_v34, %v3402_v21  ;;  %v3411_v27 = vadd.f32 %v3410_v28, %v3409_v55 }
0x11f7   :  { %v3321_v20 = vadd.f32 %v3320_v49, %v3319_v13  ;;  %v3314_v53 = vadd.f32 %v3313_v48, %v3312_v16  ;;  %v3327_v11 = vrot.slane %v3326_v50, 1  ;;  %v6138_v49 = vld [vmem:[#allocation39_spill] sm:$0xff] }
0x11f8   :  { %v3418_v22 = vadd.f32 %v3417_v59, %v3416_v5  ;;  %v3425_v13 = vadd.f32 %v3424_v44, %v3423_v10  ;;  %v3426_v24 = vmul.f32 0.125, %v3404_v15 }
0x11f9   :  { %v3328_v23 = vadd.f32 %v3327_v11, %v3326_v50  ;;  %v3333_v3 = vsel %vm490_vm1, %v3314_v53, %v3307_v25  ;;  %v3427_v50 = vmul.f32 0.125, %v3411_v27 }
0x11fa   :  { %v3334_v35 = vsel %vm492_vm2, %v3321_v20, %v3333_v3  ;;  %v3428_v20 = vmul.f32 0.125, %v3418_v22  ;;  %v3429_v25 = vmul.f32 0.125, %v3425_v13 }
0x11fb   :  { %v3335_v43 = vsel %vm494_vm3, %v3328_v23, %v3334_v35 }
0x11fc   :  { %v3337_v7 = vadd.f32 %v3335_v43, %v3235_v39 }
0x11fe   :  { %v3338_v38 = vpack.c.bf16 %v3337_v7, %v3337_v7 }
0x1200   :  { %3942 = vmatmul.mubr.msk.bf16.vlgmr.msra.gmra.mrb[44].mxu0 %vm311_vm0, %v3338_v38 }
0x12d3   :  { %v3376_v60 = vpop.f32.mrb[44].mxu0 }
0x12d4   :  { %v3377_v42 = vadd.f32 %v4196_v58, %v3376_v60  ;;  %v3943_v8 = vpop.f32.mrb[45].mxu0 }
0x12d5   :  { %v3379_v52 = vpop.f32.mrb[46].mxu0 }
0x12d6   :  { %v3382_v30 = vmax.f32 %v3377_v42, 0.0  ;;  %v3944_v29 = vpop.f32.mrb[47].mxu0 }
0x12d8   :  { %v3383_v46 = vsel %vm1957_vm6, %v3382_v30, 0.0 }
0x12d9   :  { %3384 = vadd.xlane.f32.xlu0 %v3383_v46 }
0x1366   :  { %v3385_v32 = vpop.xlane.xlu0 %3384 }
0x1367   :  { %v3386_v61 = vmul.f32 0.03125, %v3385_v32 }
0x1369   :  { %v3387_v39 = vsub.f32 %v3382_v30, %v3386_v61 }
0x136b   :  { %v3388_v45 = vmul.f32 %v3387_v39, %v3387_v39 }
0x136d   :  { %v3389_v47 = vsel %vm1957_vm6, %v3388_v45, 0.0 }
0x136e   :  { %3390 = vadd.xlane.f32.xlu1 %v3389_v47 }
0x13fb   :  { %v3391_v31 = vpop.xlane.xlu1 %3390 }
0x13fc   :  { %v3392_v4 = vmul.f32 0.03125, %v3391_v31 }
0x13fe   :  { %v3393_v62 = vadd.f32 1e-12, %v3392_v4 }
0x1400   :  { %4180 = vrsqrt.f32 %v3393_v62 }
0x140a   :  { %v4181_v12 = vpop.eup %4180 }
0x140b   :  { %v3395_v26 = vmul.f32 %v4181_v12, %v3387_v39 }
0x140d   :  { %v3396_v16 = vmul.f32 %v3395_v26, %v6137_v17 }
0x140f   :  { %v3397_v48 = vadd.f32 %v3396_v16, %v6138_v49 }
0x1411   :  { %v3431_v53 = vrot.slane %v3397_v48, 1  ;;  %v3432_v11 = vrot.slane %v3397_v48, 2  ;;  %v3433_v23 = vrot.slane %v3397_v48, 3  ;;  %v3438_v3 = vadd.f32 %v3426_v24, %v3397_v48 }
0x1413   :  { %v3439_v35 = vadd.f32 %v3431_v53, %v3427_v50  ;;  %v3440_v43 = vadd.f32 %v3432_v11, %v3428_v20  ;;  %v3441_v7 = vadd.f32 %v3433_v23, %v3429_v25  ;;  %v3442_v38 = vpack.c.bf16 %v3438_v3, %v3438_v3 }
0x1415   :  { %v3443_v60 = vpack.c.bf16 %v3439_v35, %v3439_v35  ;;  %v3444_v58 = vpack.c.bf16 %v3440_v43, %v3440_v43  ;;  %v3445_v42 = vpack.c.bf16 %v3441_v7, %v3441_v7  ;;  %v3456_v29 = vunpack.c.l.b16 %v3442_v38 }
0x1417   :  { %v3457_v8 = vunpack.c.l.b16 %v3443_v60  ;;  %v3458_v52 = vunpack.c.l.b16 %v3444_v58  ;;  %v3459_v30 = vunpack.c.l.b16 %v3445_v42 }
0x1419   :  { %v3460_v46 = vrot.slane %v3457_v8, 7  ;;  %v3462_v9 = vrot.slane %v3458_v52, 6  ;;  %v3464_v61 = vrot.slane %v3459_v30, 5 }
0x141b   :  { %v3461_v32 = vsel %vm490_vm1, %v3460_v46, %v3456_v29 }
0x141c   :  { %v3463_v39 = vsel %vm492_vm2, %v3462_v9, %v3461_v32 }
0x141d   :  { %v3465_v45 = vsel %vm494_vm3, %v3464_v61, %v3463_v39 }
0x141e   :  { %v3466_v47 = vpack.c.b16 %v3465_v45, %v3465_v45 }
0x1420   :  { %3950 = vmatmul.mubr.msk.bf16.vlgmr.msra.gmra.mrb[48].mxu1 %vm311_vm0, %v3466_v47 }
0x14f3   :  { %v3516_v2 = vpop.f32.mrb[48].mxu1 }
0x14f4   :  { %v3517_v6 = vadd.f32 %v3632_v0, %v3516_v2  ;;  %v3951_v1 = vpop.f32.mrb[49].mxu1 }
0x14f5   :  { %v3519_v33 = vpop.f32.mrb[50].mxu1 }
0x14f6   :  { %3522 = vst [vmem:[#allocation26] sm:$0xf] %v3517_v6  ;;  %v3952_v57 = vpop.f32.mrb[51].mxu1 }
0x14f7   :  { %4538 = shalt.err (!%p4535_p12)
}
0x14f8   :  { %s6139_s4 = sld [smem:[#allocation44_spill]] }
0x14fe   :  { %s4539_s14 = scalar_lea.hbm %s6139_s4, 64 }
0x14ff   :  { %p4540_p13 = scmp.ne.s32.totalorder %s6139_s4, %s4539_s14  ;;  %p4543_p0 = scmp.lt.u32.totalorder %s4539_s14, %s6139_s4 }
0x1501   :  { %p4545_p1 = pnand %p4543_p0, %p4540_p13 }
0x1503   :  { %4548 = shalt.err (!%p4545_p1)
}
0x1504   :  { %3532 = dma.vmem_to_hbm [thread:$0]  %s3530_s8, 64, %s6139_s4, [#allocation4]  }
0x1505   :  { %4565 = dma.done.wait [#allocation4], 64  }
0x1506   :  { %4566 = vsyncadd [#allocation4], 4294967232 }
0x1507   :  { %3536 = vsyncpa [#allocation3], 1 }
0x1508   :  { %3537 = vsyncpa [#allocation6], 1 }
0x1509   :  { %3538 = vsyncpa [#allocation9], 1 }
0x150a   :  { %3539 = vsyncpa [#allocation12], 1 }
0x150b   :  { %3540 = vsyncpa [#allocation15], 1 }
0x150c   :  { %3541 = vsyncpa [#allocation18], 1 }
0x150d   :  { %3542 = vsyncpa [#allocation21], 1 }
0x150e   :  { %3543 = vsyncpa [#allocation24], 1 }
0x150f   :  { %3544 = vsyncpa [#allocation4], 1 }

</bundles_post_ra>
